<compile_context>
chip_gen: v6e
topology: v6e:2x2x1
jax: 0.10.0
libtpu: 0.0.40
codegen_flags: <defaults>
</compile_context>

<pallas_src>
import functools

import jax
import jax.numpy as jnp
import numpy as np
from jax.experimental import pallas as pl
from jax.experimental.pallas import tpu as pltpu


# ----------------------------------------------------------------------------
# Elementwise helpers (exact math only — no approximate reciprocals).
# ----------------------------------------------------------------------------
_ERF_ALPHA = (0.00022905065861350646, 0.0034082910107109506,
              0.050955695062380861, 0.18520832239976145, 1.128379143519084)
_ERF_BETA = (-1.1791602954361697e-07, 2.3547966471313185e-05,
             0.0010179625278914885, 0.014070470171167667,
             0.11098505178285362, 0.49746925110067538, 1.0)
_INV_SQRT2 = 0.7071067811865476


def _polyval(coeffs, x):
    acc = coeffs[0] * x + coeffs[1]
    for c in coeffs[2:]:
        acc = acc * x + c
    return acc


def _erf(x):
    # Rational approximation of f32 erf (|err| ~ 1e-6), exact divide.
    xc = jnp.clip(x, -4.0, 4.0)
    x2 = xc * xc
    return (xc * _polyval(_ERF_ALPHA, x2)) / _polyval(_ERF_BETA, x2)


def _gelu(x):  # exact GELU (matches torch nn.GELU default)
    return 0.5 * x * (1.0 + _erf(x * _INV_SQRT2))


def _sigmoid(x):  # exact: sigmoid(x) = 0.5*(tanh(x/2)+1); single EUP tanh
    return 0.5 * (jnp.tanh(0.5 * x) + 1.0)


# ----------------------------------------------------------------------------
# In-kernel building blocks (all operate on lane-dense (C, H*W) slabs)
# ----------------------------------------------------------------------------
def _depthwise_gn(slab, w_ref, *, k, pad, S, n, W, masks, gmat, inv_cnt,
                  eps=1e-5):
    """Depthwise k x k conv (stride 1, zero padding `pad`) + GroupNorm on the
    zero-bordered flattened image `slab` (value of shape (C, n + 2*S); the image
    lives at lane offsets [S, S+n), flat index h*W + w; the border is zero and
    supplies the H-edge padding; `masks` kill W-edge wraparound).

    w_ref columns: [0:k*k] per-channel taps, [k*k] conv bias, [k*k+1] GN gamma,
    [k*k+2] GN beta."""
    kk = k * k
    w = w_ref[...]                               # (C, kk+3), loaded once
    acc = None
    for di in range(k):
        dh = di - pad
        for dj in range(k):
            dw = dj - pad
            off = S + dh * W + dw
            tap = slab[:, off:off + n]           # static slice of resident value
            if dw != 0:                          # hoisted {0,1} W-edge mask
                tap = tap * masks[dw]
            term = w[:, di * k + dj:di * k + dj + 1] * tap
            acc = term if acc is None else acc + term
    acc = acc + w[:, kk:kk + 1]                  # conv bias

    # GroupNorm: reduce over lanes first, aggregate groups with tiny matmuls,
    # then a single fused affine pass (var = E[x^2] - mean^2).
    s1 = jnp.sum(acc, axis=1, keepdims=True)                       # (C, 1)
    s2 = jnp.sum(acc * acc, axis=1, keepdims=True)                 # (C, 1)
    mean = jnp.dot(gmat, s1, preferred_element_type=jnp.float32) * inv_cnt
    ex2 = jnp.dot(gmat, s2, preferred_element_type=jnp.float32) * inv_cnt
    var = ex2 - mean * mean
    a = jax.lax.rsqrt(var + eps) * w[:, kk + 1:kk + 2]             # scale*gamma
    b = w[:, kk + 2:kk + 3] - mean * a                             # beta - mean*a
    return acc * a + b


def _pointwise(x, w_ref, c_in):
    """1x1 conv as an MXU matmul; w_ref: (C_out, C_in + 1), bias in last col."""
    w = w_ref[:, :c_in]
    b = w_ref[:, c_in:c_in + 1]
    return jnp.dot(w, x, preferred_element_type=jnp.float32) + b


# ----------------------------------------------------------------------------
# The fused GatedAttentionUnit kernel (one batch block of `bt` images per step)
# ----------------------------------------------------------------------------
def _gau_kernel(x_ref, col_ref, gmat_ref,
                w1d, w1p, w2d, w2p, wod, wop, cwp,
                out_ref, xp_ref,
                *, H, W, bt, k, S, groups):
    n = H * W
    C = x_ref.shape[0]
    k1, k2 = k, k + 2
    pmax = k2 // 2

    # Hoisted W-edge masks: one {0,1} f32 (C, n) slab per lane offset, built
    # once per grid step and reused by every masked tap.
    col = col_ref[...]                                   # (1, n) int32 = flat % W
    masks = {}
    for d in range(-pmax, pmax + 1):
        if d == 0:
            continue
        ok = jnp.logical_and(col + d >= 0, col + d < W).astype(jnp.float32)
        masks[d] = jnp.broadcast_to(ok, (C, n))

    gmat = gmat_ref[...]                                 # (C, C) group-membership
    inv_cnt = 1.0 / float((C // groups) * n)

    # Zero only the two border strips; the interior [S, S+n) is always fully
    # overwritten before being read.  Done every step (not under program_id==0)
    # so it stays correct when the parallel batch axis is sharded across cores.
    xp_ref[:, :S] = jnp.zeros((C, S), jnp.float32)
    xp_ref[:, S + n:] = jnp.zeros((C, S), jnp.float32)

    dwgn = functools.partial(_depthwise_gn, S=S, n=n, W=W, masks=masks,
                             gmat=gmat, inv_cnt=inv_cnt)

    for b in range(bt):                                  # images in this block
        xi = x_ref[:, b * n:(b + 1) * n]                 # (C, n), lane-dense

        # Stage once; the padded slab value feeds BOTH the w1 and w2 branches.
        xp_ref[:, S:S + n] = xi
        slab = xp_ref[...]
        x1 = _sigmoid(_pointwise(dwgn(slab, w1d, k=k1, pad=k1 // 2), w1p, C))
        x2 = _gelu(_pointwise(dwgn(slab, w2d, k=k2, pad=k2 // 2), w2p, C))

        # wo branch on the gated signal (torch DepthWiseConv2d default padding=1).
        xp_ref[:, S:S + n] = x1 * x2
        slab = xp_ref[...]
        y = _gelu(_pointwise(dwgn(slab, wod, k=k1, pad=1), wop, C))

        out_ref[:, b * n:(b + 1) * n] = y + _pointwise(xi, cwp, C)


# ----------------------------------------------------------------------------
# Generation-aware sizing helpers
# ----------------------------------------------------------------------------
def _vmem_capacity_bytes():
    try:
        return int(pltpu.get_tpu_info().vmem_capacity_bytes)
    except Exception:
        return 64 * 1024 * 1024          # conservative (v7x per-TensorCore)


def _vmem_estimate(bt, c_in, c_out, n, S):
    nn = bt * n
    return 4 * (2 * c_in * nn            # double-buffered input block
                + 2 * c_out * nn         # double-buffered output block
                + c_in * (n + 2 * S)     # padded scratch (full width)
                + 10 * c_in * n + 4 * c_out * n   # live intermediates headroom
                + 8192)                  # packed weights / constant tables


def _pick_bt(batch, c_in, c_out, n, S, max_unroll=4):
    budget = _vmem_capacity_bytes() // 2
    best = 1
    for bt in range(1, min(batch, max_unroll) + 1):
        if batch % bt:
            continue
        if batch >= 2 and batch // bt < 2:
            continue                     # keep >= 2 grid steps (both v7x TCs busy)
        if bt != batch and (bt * n) % 128 != 0:
            continue                     # keep block lane dim 128-friendly
        if _vmem_estimate(bt, c_in, c_out, n, S) <= budget:
            best = bt
    if best != batch and (best * n) % 128 != 0:
        best = batch                     # correctness fallback: full-batch block
    return best


# ----------------------------------------------------------------------------
# Wrapper: parameter packing, layout plumbing, pallas_call
# ----------------------------------------------------------------------------
def gated_attention_unit(x, params, ksize):
    """Forward pass of GatedAttentionUnit. x: (B, C_in, H, W) float32."""
    B, C, H, W = x.shape
    Co = params["cw_b"].shape[0]
    groups = 4
    # The torch module's `wo` branch uses Conv2d(..., padding=1) (DepthWiseConv2d
    # default); its output only matches the residual `cw` branch spatially when
    # kernel_size == 3, so that is the only valid configuration.
    assert ksize == 3, "GatedAttentionUnit only shape-checks for kernel_size == 3"
    assert C % groups == 0, "GroupNorm(4, C) requires C % 4 == 0"

    n = H * W
    pmax = (ksize + 2) // 2
    S = ((pmax * W + pmax + 127) // 128) * 128    # lane-aligned zero border width
    bt = _pick_bt(B, C, Co, n, S)

    def dwpack(bp, k):
        cin = bp["dw_b"].shape[0]
        taps = bp["dw_w"].reshape(cin, k * k)     # torch (C,1,k,k) -> (C, k*k)
        return jnp.concatenate(
            [taps, bp["dw_b"][:, None], bp["gn_g"][:, None], bp["gn_b"][:, None]],
            axis=1).astype(jnp.float32)

    def pwpack(w, b):
        co, ci = w.shape[0], w.shape[1]
        return jnp.concatenate([w.reshape(co, ci), b[:, None]],
                               axis=1).astype(jnp.float32)

    weights = [
        dwpack(params["w1"], ksize),
        pwpack(params["w1"]["pw_w"], params["w1"]["pw_b"]),
        dwpack(params["w2"], ksize + 2),
        pwpack(params["w2"]["pw_w"], params["w2"]["pw_b"]),
        dwpack(params["wo"], ksize),
        pwpack(params["wo"]["pw_w"], params["wo"]["pw_b"]),
        pwpack(params["cw_w"], params["cw_b"]),
    ]

    # Host-built constant tables: flat-index % W (for the W-edge masks) and the
    # GroupNorm block-diagonal group-membership matrix.
    col = jnp.asarray((np.arange(n, dtype=np.int32) % W).reshape(1, n))
    gmat = jnp.asarray(np.kron(np.eye(groups, dtype=np.float32),
                               np.ones((C // groups, C // groups), np.float32)))

    # NCHW -> lane-dense (C, B*H*W)
    xr = jnp.transpose(x, (1, 0, 2, 3)).reshape(C, B * n)

    const_specs = [pl.BlockSpec(col.shape, lambda b: (0, 0)),
                   pl.BlockSpec(gmat.shape, lambda b: (0, 0))]
    w_specs = [pl.BlockSpec(wgt.shape, lambda b: (0, 0)) for wgt in weights]

    est = _vmem_estimate(bt, C, Co, n, S)
    vmem_limit = int(min(_vmem_capacity_bytes(),
                         max(2 * est, 32 * 1024 * 1024)))

    out_flat = pl.pallas_call(
        functools.partial(_gau_kernel, H=H, W=W, bt=bt, k=ksize, S=S,
                          groups=groups),
        out_shape=jax.ShapeDtypeStruct((Co, B * n), jnp.float32),
        grid=(B // bt,),
        in_specs=[pl.BlockSpec((C, bt * n), lambda b: (0, b))]
                 + const_specs + w_specs,
        out_specs=pl.BlockSpec((Co, bt * n), lambda b: (0, b)),
        scratch_shapes=[pltpu.VMEM((C, n + 2 * S), jnp.float32)],
        compiler_params=pltpu.CompilerParams(
            dimension_semantics=("parallel",),      # shard batch blocks over TCs
            vmem_limit_bytes=vmem_limit),
    )(xr, col, gmat, *weights)

    # lane-dense (Co, B*H*W) -> NCHW
    return out_flat.reshape(Co, B, H, W).transpose(1, 0, 2, 3)


# ----------------------------------------------------------------------------
# Deterministic parameter init (shapes from the PyTorch module __init__)
# ----------------------------------------------------------------------------
def init_params(key, in_c, out_c, ksize):
    def dw_block(k, cin, cout, ks):
        keys = jax.random.split(k, 6)
        return dict(
            dw_w=0.2 * jax.random.normal(keys[0], (cin, 1, ks, ks), jnp.float32),
            dw_b=0.1 * jax.random.normal(keys[1], (cin,), jnp.float32),
            gn_g=1.0 + 0.1 * jax.random.normal(keys[2], (cin,), jnp.float32),
            gn_b=0.1 * jax.random.normal(keys[3], (cin,), jnp.float32),
            pw_w=0.2 * jax.random.normal(keys[4], (cout, cin, 1, 1), jnp.float32),
            pw_b=0.1 * jax.random.normal(keys[5], (cout,), jnp.float32),
        )

    k1, k2, k3, k4 = jax.random.split(key, 4)
    kc1, kc2 = jax.random.split(k4)
    return dict(
        w1=dw_block(k1, in_c, in_c, ksize),
        w2=dw_block(k2, in_c, in_c, ksize + 2),
        wo=dw_block(k3, in_c, out_c, ksize),
        cw_w=0.2 * jax.random.normal(kc1, (out_c, in_c, 1, 1), jnp.float32),
        cw_b=0.1 * jax.random.normal(kc2, (out_c,), jnp.float32),
    )


# ----------------------------------------------------------------------------
# Pure-JAX reference (mirrors the PyTorch forward), used for verification.
# ----------------------------------------------------------------------------
def gau_reference(x, params, ksize):
    def conv1x1(y, w, b):
        o = jax.lax.conv_general_dilated(
            y, w, (1, 1), "VALID",
            dimension_numbers=("NCHW", "OIHW", "NCHW"))
        return o + b[None, :, None, None]

    def dw_block(y, bp, pad):
        C = y.shape[1]
        o = jax.lax.conv_general_dilated(
            y, bp["dw_w"], (1, 1), [(pad, pad), (pad, pad)],
            dimension_numbers=("NCHW", "OIHW", "NCHW"),
            feature_group_count=C)
        o = o + bp["dw_b"][None, :, None, None]
        B, C, H, W = o.shape
        orr = o.reshape(B, 4, C // 4, H, W)
        m = orr.mean(axis=(2, 3, 4), keepdims=True)
        v = ((orr - m) ** 2).mean(axis=(2, 3, 4), keepdims=True)
        on = ((orr - m) / jnp.sqrt(v + 1e-5)).reshape(B, C, H, W)
        on = on * bp["gn_g"][None, :, None, None] + bp["gn_b"][None, :, None, None]
        return conv1x1(on, bp["pw_w"], bp["pw_b"])

    x1 = jax.nn.sigmoid(dw_block(x, params["w1"], ksize // 2))
    x2 = jax.nn.gelu(dw_block(x, params["w2"], (ksize + 2) // 2),
                     approximate=False)
    y = jax.nn.gelu(dw_block(x1 * x2, params["wo"], 1), approximate=False)
    return y + conv1x1(x, params["cw_w"], params["cw_b"])


if __name__ == "__main__":
    B, C_IN, C_OUT, H, W, K = 2, 8, 16, 16, 16, 3
    key = jax.random.PRNGKey(0)
    kx, kp = jax.random.split(key)
    x = jax.random.normal(kx, (B, C_IN, H, W), jnp.float32)
    params = init_params(kp, C_IN, C_OUT, K)

    out = jax.block_until_ready(gated_attention_unit(x, params, K))
    ref = gau_reference(x, params, K)

    assert out.shape == (B, C_OUT, H, W), out.shape
    err = float(jnp.max(jnp.abs(out - ref)))
    assert err < 2e-3, f"max abs err {err}"
    print("KERNEL_OK")
</pallas_src>

<mosaic_0001>
module attributes {stable_mosaic.version = 11 : i64} {
  func.func @_gau_kernel(%arg0: i32, %arg1: memref<8x256xf32, #tpu.memory_space<vmem>>, %arg2: memref<1x256xi32, #tpu.memory_space<vmem>>, %arg3: memref<8x8xf32, #tpu.memory_space<vmem>>, %arg4: memref<8x12xf32, #tpu.memory_space<vmem>>, %arg5: memref<8x9xf32, #tpu.memory_space<vmem>>, %arg6: memref<8x28xf32, #tpu.memory_space<vmem>>, %arg7: memref<8x9xf32, #tpu.memory_space<vmem>>, %arg8: memref<8x12xf32, #tpu.memory_space<vmem>>, %arg9: memref<16x9xf32, #tpu.memory_space<vmem>>, %arg10: memref<16x9xf32, #tpu.memory_space<vmem>>, %arg11: memref<16x256xf32, #tpu.memory_space<vmem>>, %arg12: memref<8x512xf32, #tpu.memory_space<vmem>>) attributes {dimension_semantics = [#tpu.dimension_semantics<parallel>], iteration_bounds = array<i64: 2>, scalar_prefetch = 0 : i64, scratch_operands = 1 : i64, tpu.core_type = #tpu.core_type<tc>, window_params = [{transform_indices = @transform_0, window_bounds = array<i64: 8, 256>}, {pipeline_mode = #tpu.pipeline_mode<synchronous>, transform_indices = @transform_1, window_bounds = array<i64: 1, 256>}, {pipeline_mode = #tpu.pipeline_mode<synchronous>, transform_indices = @transform_2, window_bounds = array<i64: 8, 8>}, {pipeline_mode = #tpu.pipeline_mode<synchronous>, transform_indices = @transform_3, window_bounds = array<i64: 8, 12>}, {pipeline_mode = #tpu.pipeline_mode<synchronous>, transform_indices = @transform_4, window_bounds = array<i64: 8, 9>}, {pipeline_mode = #tpu.pipeline_mode<synchronous>, transform_indices = @transform_5, window_bounds = array<i64: 8, 28>}, {pipeline_mode = #tpu.pipeline_mode<synchronous>, transform_indices = @transform_6, window_bounds = array<i64: 8, 9>}, {pipeline_mode = #tpu.pipeline_mode<synchronous>, transform_indices = @transform_7, window_bounds = array<i64: 8, 12>}, {pipeline_mode = #tpu.pipeline_mode<synchronous>, transform_indices = @transform_8, window_bounds = array<i64: 16, 9>}, {pipeline_mode = #tpu.pipeline_mode<synchronous>, transform_indices = @transform_9, window_bounds = array<i64: 16, 9>}, {transform_indices = @transform_10, window_bounds = array<i64: 16, 256>}]} {
    %c0 = arith.constant 0 : index
    %c0_0 = arith.constant 0 : index
    %0 = vector.load %arg2[%c0, %c0_0] : memref<1x256xi32, #tpu.memory_space<vmem>>, vector<1x256xi32>
    %c-2_i32 = arith.constant -2 : i32
    %1 = vector.broadcast %c-2_i32 : i32 to vector<1x256xi32>
    %2 = arith.addi %0, %1 : vector<1x256xi32>
    %c0_i32 = arith.constant 0 : i32
    %3 = vector.broadcast %c0_i32 : i32 to vector<1x256xi32>
    %4 = arith.cmpi sge, %2, %3 : vector<1x256xi32>
    %c-2_i32_1 = arith.constant -2 : i32
    %5 = vector.broadcast %c-2_i32_1 : i32 to vector<1x256xi32>
    %6 = arith.addi %0, %5 : vector<1x256xi32>
    %c16_i32 = arith.constant 16 : i32
    %7 = vector.broadcast %c16_i32 : i32 to vector<1x256xi32>
    %8 = arith.cmpi slt, %6, %7 : vector<1x256xi32>
    %9 = arith.andi %4, %8 : vector<1x256xi1>
    %10 = arith.extui %9 : vector<1x256xi1> to vector<1x256xi32>
    %11 = arith.sitofp %10 : vector<1x256xi32> to vector<1x256xf32>
    %12 = vector.shape_cast %11 : vector<1x256xf32> to vector<1x256xf32>
    %13 = vector.broadcast %12 : vector<1x256xf32> to vector<8x256xf32>
    %c-1_i32 = arith.constant -1 : i32
    %14 = vector.broadcast %c-1_i32 : i32 to vector<1x256xi32>
    %15 = arith.addi %0, %14 : vector<1x256xi32>
    %c0_i32_2 = arith.constant 0 : i32
    %16 = vector.broadcast %c0_i32_2 : i32 to vector<1x256xi32>
    %17 = arith.cmpi sge, %15, %16 : vector<1x256xi32>
    %c-1_i32_3 = arith.constant -1 : i32
    %18 = vector.broadcast %c-1_i32_3 : i32 to vector<1x256xi32>
    %19 = arith.addi %0, %18 : vector<1x256xi32>
    %c16_i32_4 = arith.constant 16 : i32
    %20 = vector.broadcast %c16_i32_4 : i32 to vector<1x256xi32>
    %21 = arith.cmpi slt, %19, %20 : vector<1x256xi32>
    %22 = arith.andi %17, %21 : vector<1x256xi1>
    %23 = arith.extui %22 : vector<1x256xi1> to vector<1x256xi32>
    %24 = arith.sitofp %23 : vector<1x256xi32> to vector<1x256xf32>
    %25 = vector.shape_cast %24 : vector<1x256xf32> to vector<1x256xf32>
    %26 = vector.broadcast %25 : vector<1x256xf32> to vector<8x256xf32>
    %c1_i32 = arith.constant 1 : i32
    %27 = vector.broadcast %c1_i32 : i32 to vector<1x256xi32>
    %28 = arith.addi %0, %27 : vector<1x256xi32>
    %c0_i32_5 = arith.constant 0 : i32
    %29 = vector.broadcast %c0_i32_5 : i32 to vector<1x256xi32>
    %30 = arith.cmpi sge, %28, %29 : vector<1x256xi32>
    %c1_i32_6 = arith.constant 1 : i32
    %31 = vector.broadcast %c1_i32_6 : i32 to vector<1x256xi32>
    %32 = arith.addi %0, %31 : vector<1x256xi32>
    %c16_i32_7 = arith.constant 16 : i32
    %33 = vector.broadcast %c16_i32_7 : i32 to vector<1x256xi32>
    %34 = arith.cmpi slt, %32, %33 : vector<1x256xi32>
    %35 = arith.andi %30, %34 : vector<1x256xi1>
    %36 = arith.extui %35 : vector<1x256xi1> to vector<1x256xi32>
    %37 = arith.sitofp %36 : vector<1x256xi32> to vector<1x256xf32>
    %38 = vector.shape_cast %37 : vector<1x256xf32> to vector<1x256xf32>
    %39 = vector.broadcast %38 : vector<1x256xf32> to vector<8x256xf32>
    %c2_i32 = arith.constant 2 : i32
    %40 = vector.broadcast %c2_i32 : i32 to vector<1x256xi32>
    %41 = arith.addi %0, %40 : vector<1x256xi32>
    %c0_i32_8 = arith.constant 0 : i32
    %42 = vector.broadcast %c0_i32_8 : i32 to vector<1x256xi32>
    %43 = arith.cmpi sge, %41, %42 : vector<1x256xi32>
    %c2_i32_9 = arith.constant 2 : i32
    %44 = vector.broadcast %c2_i32_9 : i32 to vector<1x256xi32>
    %45 = arith.addi %0, %44 : vector<1x256xi32>
    %c16_i32_10 = arith.constant 16 : i32
    %46 = vector.broadcast %c16_i32_10 : i32 to vector<1x256xi32>
    %47 = arith.cmpi slt, %45, %46 : vector<1x256xi32>
    %48 = arith.andi %43, %47 : vector<1x256xi1>
    %49 = arith.extui %48 : vector<1x256xi1> to vector<1x256xi32>
    %50 = arith.sitofp %49 : vector<1x256xi32> to vector<1x256xf32>
    %51 = vector.shape_cast %50 : vector<1x256xf32> to vector<1x256xf32>
    %52 = vector.broadcast %51 : vector<1x256xf32> to vector<8x256xf32>
    %c0_11 = arith.constant 0 : index
    %c0_12 = arith.constant 0 : index
    %53 = vector.load %arg3[%c0_11, %c0_12] : memref<8x8xf32, #tpu.memory_space<vmem>>, vector<8x8xf32>
    %cst = arith.constant 0.000000e+00 : f32
    %54 = vector.broadcast %cst : f32 to vector<8x128xf32>
    %c0_13 = arith.constant 0 : index
    %c0_14 = arith.constant 0 : index
    %55 = vector.load %arg12[%c0_13, %c0_14] : memref<8x512xf32, #tpu.memory_space<vmem>>, vector<8x128xf32>
    tpu.vector_store %arg12[%c0_13, %c0_14], %54 {strides = array<i32>} : memref<8x512xf32, #tpu.memory_space<vmem>>, vector<8x128xf32>,
    %cst_15 = arith.constant 0.000000e+00 : f32
    %56 = vector.broadcast %cst_15 : f32 to vector<8x128xf32>
    %c0_16 = arith.constant 0 : index
    %c384 = arith.constant 384 : index
    %57 = vector.load %arg12[%c0_16, %c384] : memref<8x512xf32, #tpu.memory_space<vmem>>, vector<8x128xf32>
    tpu.vector_store %arg12[%c0_16, %c384], %56 {strides = array<i32>} : memref<8x512xf32, #tpu.memory_space<vmem>>, vector<8x128xf32>,
    %c0_17 = arith.constant 0 : index
    %c0_18 = arith.constant 0 : index
    %58 = vector.load %arg1[%c0_17, %c0_18] : memref<8x256xf32, #tpu.memory_space<vmem>>, vector<8x256xf32>
    %c0_19 = arith.constant 0 : index
    %c128 = arith.constant 128 : index
    %59 = vector.load %arg12[%c0_19, %c128] : memref<8x512xf32, #tpu.memory_space<vmem>>, vector<8x256xf32>
    tpu.vector_store %arg12[%c0_19, %c128], %58 {strides = array<i32>} : memref<8x512xf32, #tpu.memory_space<vmem>>, vector<8x256xf32>,
    %c0_20 = arith.constant 0 : index
    %c0_21 = arith.constant 0 : index
    %60 = vector.load %arg12[%c0_20, %c0_21] : memref<8x512xf32, #tpu.memory_space<vmem>>, vector<8x512xf32>
    %c0_22 = arith.constant 0 : index
    %c0_23 = arith.constant 0 : index
    %61 = vector.load %arg4[%c0_22, %c0_23] : memref<8x12xf32, #tpu.memory_space<vmem>>, vector<8x12xf32>
    %62 = vector.extract_strided_slice %60 {offsets = [0, 111], sizes = [8, 256], strides = [1, 1]} : vector<8x512xf32> to vector<8x256xf32>
    %63 = arith.mulf %62, %26 : vector<8x256xf32>
    %64 = vector.extract_strided_slice %61 {offsets = [0, 0], sizes = [8, 1], strides = [1, 1]} : vector<8x12xf32> to vector<8x1xf32>
    %65 = vector.broadcast %64 : vector<8x1xf32> to vector<8x256xf32>
    %66 = arith.mulf %65, %63 : vector<8x256xf32>
    %67 = vector.extract_strided_slice %60 {offsets = [0, 112], sizes = [8, 256], strides = [1, 1]} : vector<8x512xf32> to vector<8x256xf32>
    %68 = vector.extract_strided_slice %61 {offsets = [0, 1], sizes = [8, 1], strides = [1, 1]} : vector<8x12xf32> to vector<8x1xf32>
    %69 = vector.broadcast %68 : vector<8x1xf32> to vector<8x256xf32>
    %70 = arith.mulf %69, %67 : vector<8x256xf32>
    %71 = arith.addf %66, %70 : vector<8x256xf32>
    %72 = vector.extract_strided_slice %60 {offsets = [0, 113], sizes = [8, 256], strides = [1, 1]} : vector<8x512xf32> to vector<8x256xf32>
    %73 = arith.mulf %72, %39 : vector<8x256xf32>
    %74 = vector.extract_strided_slice %61 {offsets = [0, 2], sizes = [8, 1], strides = [1, 1]} : vector<8x12xf32> to vector<8x1xf32>
    %75 = vector.broadcast %74 : vector<8x1xf32> to vector<8x256xf32>
    %76 = arith.mulf %75, %73 : vector<8x256xf32>
    %77 = arith.addf %71, %76 : vector<8x256xf32>
    %78 = vector.extract_strided_slice %60 {offsets = [0, 127], sizes = [8, 256], strides = [1, 1]} : vector<8x512xf32> to vector<8x256xf32>
    %79 = arith.mulf %78, %26 : vector<8x256xf32>
    %80 = vector.extract_strided_slice %61 {offsets = [0, 3], sizes = [8, 1], strides = [1, 1]} : vector<8x12xf32> to vector<8x1xf32>
    %81 = vector.broadcast %80 : vector<8x1xf32> to vector<8x256xf32>
    %82 = arith.mulf %81, %79 : vector<8x256xf32>
    %83 = arith.addf %77, %82 : vector<8x256xf32>
    %84 = vector.extract_strided_slice %60 {offsets = [0, 128], sizes = [8, 256], strides = [1, 1]} : vector<8x512xf32> to vector<8x256xf32>
    %85 = vector.extract_strided_slice %61 {offsets = [0, 4], sizes = [8, 1], strides = [1, 1]} : vector<8x12xf32> to vector<8x1xf32>
    %86 = vector.broadcast %85 : vector<8x1xf32> to vector<8x256xf32>
    %87 = arith.mulf %86, %84 : vector<8x256xf32>
    %88 = arith.addf %83, %87 : vector<8x256xf32>
    %89 = vector.extract_strided_slice %60 {offsets = [0, 129], sizes = [8, 256], strides = [1, 1]} : vector<8x512xf32> to vector<8x256xf32>
    %90 = arith.mulf %89, %39 : vector<8x256xf32>
    %91 = vector.extract_strided_slice %61 {offsets = [0, 5], sizes = [8, 1], strides = [1, 1]} : vector<8x12xf32> to vector<8x1xf32>
    %92 = vector.broadcast %91 : vector<8x1xf32> to vector<8x256xf32>
    %93 = arith.mulf %92, %90 : vector<8x256xf32>
    %94 = arith.addf %88, %93 : vector<8x256xf32>
    %95 = vector.extract_strided_slice %60 {offsets = [0, 143], sizes = [8, 256], strides = [1, 1]} : vector<8x512xf32> to vector<8x256xf32>
    %96 = arith.mulf %95, %26 : vector<8x256xf32>
    %97 = vector.extract_strided_slice %61 {offsets = [0, 6], sizes = [8, 1], strides = [1, 1]} : vector<8x12xf32> to vector<8x1xf32>
    %98 = vector.broadcast %97 : vector<8x1xf32> to vector<8x256xf32>
    %99 = arith.mulf %98, %96 : vector<8x256xf32>
    %100 = arith.addf %94, %99 : vector<8x256xf32>
    %101 = vector.extract_strided_slice %60 {offsets = [0, 144], sizes = [8, 256], strides = [1, 1]} : vector<8x512xf32> to vector<8x256xf32>
    %102 = vector.extract_strided_slice %61 {offsets = [0, 7], sizes = [8, 1], strides = [1, 1]} : vector<8x12xf32> to vector<8x1xf32>
    %103 = vector.broadcast %102 : vector<8x1xf32> to vector<8x256xf32>
    %104 = arith.mulf %103, %101 : vector<8x256xf32>
    %105 = arith.addf %100, %104 : vector<8x256xf32>
    %106 = vector.extract_strided_slice %60 {offsets = [0, 145], sizes = [8, 256], strides = [1, 1]} : vector<8x512xf32> to vector<8x256xf32>
    %107 = arith.mulf %106, %39 : vector<8x256xf32>
    %108 = vector.extract_strided_slice %61 {offsets = [0, 8], sizes = [8, 1], strides = [1, 1]} : vector<8x12xf32> to vector<8x1xf32>
    %109 = vector.broadcast %108 : vector<8x1xf32> to vector<8x256xf32>
    %110 = arith.mulf %109, %107 : vector<8x256xf32>
    %111 = arith.addf %105, %110 : vector<8x256xf32>
    %112 = vector.extract_strided_slice %61 {offsets = [0, 9], sizes = [8, 1], strides = [1, 1]} : vector<8x12xf32> to vector<8x1xf32>
    %113 = vector.broadcast %112 : vector<8x1xf32> to vector<8x256xf32>
    %114 = arith.addf %111, %113 : vector<8x256xf32>
    %cst_24 = arith.constant dense<0.000000e+00> : vector<8xf32>
    %115 = vector.multi_reduction <add>, %114, %cst_24 [1] : vector<8x256xf32> to vector<8xf32>
    %116 = vector.shape_cast %115 : vector<8xf32> to vector<8x1xf32>
    %117 = arith.mulf %114, %114 : vector<8x256xf32>
    %cst_25 = arith.constant dense<0.000000e+00> : vector<8xf32>
    %118 = vector.multi_reduction <add>, %117, %cst_25 [1] : vector<8x256xf32> to vector<8xf32>
    %119 = vector.shape_cast %118 : vector<8xf32> to vector<8x1xf32>
    %cst_26 = arith.constant dense<0.000000e+00> : vector<8x1xf32>
    %120 = tpu.matmul %53, %116, %cst_26 {dimension_numbers = #tpu.dot_dimension_numbers<[1], [0], [0], [1], [0, 0, 1, 1], [], []>} : vector<8x8xf32>, vector<8x1xf32>, vector<8x1xf32> -> vector<8x1xf32>
    %cst_27 = arith.constant 0.001953125 : f32
    %121 = vector.broadcast %cst_27 : f32 to vector<8x1xf32>
    %122 = arith.mulf %120, %121 : vector<8x1xf32>
    %cst_28 = arith.constant dense<0.000000e+00> : vector<8x1xf32>
    %123 = tpu.matmul %53, %119, %cst_28 {dimension_numbers = #tpu.dot_dimension_numbers<[1], [0], [0], [1], [0, 0, 1, 1], [], []>} : vector<8x8xf32>, vector<8x1xf32>, vector<8x1xf32> -> vector<8x1xf32>
    %cst_29 = arith.constant 0.001953125 : f32
    %124 = vector.broadcast %cst_29 : f32 to vector<8x1xf32>
    %125 = arith.mulf %123, %124 : vector<8x1xf32>
    %126 = arith.mulf %122, %122 : vector<8x1xf32>
    %127 = arith.subf %125, %126 : vector<8x1xf32>
    %cst_30 = arith.constant 9.99999974E-6 : f32
    %128 = vector.broadcast %cst_30 : f32 to vector<8x1xf32>
    %129 = arith.addf %127, %128 : vector<8x1xf32>
    %130 = math.rsqrt %129 : vector<8x1xf32>
    %131 = vector.extract_strided_slice %61 {offsets = [0, 10], sizes = [8, 1], strides = [1, 1]} : vector<8x12xf32> to vector<8x1xf32>
    %132 = arith.mulf %130, %131 : vector<8x1xf32>
    %133 = vector.extract_strided_slice %61 {offsets = [0, 11], sizes = [8, 1], strides = [1, 1]} : vector<8x12xf32> to vector<8x1xf32>
    %134 = arith.mulf %122, %132 : vector<8x1xf32>
    %135 = arith.subf %133, %134 : vector<8x1xf32>
    %136 = vector.broadcast %132 : vector<8x1xf32> to vector<8x256xf32>
    %137 = arith.mulf %114, %136 : vector<8x256xf32>
    %138 = vector.broadcast %135 : vector<8x1xf32> to vector<8x256xf32>
    %139 = arith.addf %137, %138 : vector<8x256xf32>
    %c0_31 = arith.constant 0 : index
    %c0_32 = arith.constant 0 : index
    %140 = vector.load %arg5[%c0_31, %c0_32] : memref<8x9xf32, #tpu.memory_space<vmem>>, vector<8x8xf32>
    %c0_33 = arith.constant 0 : index
    %c8 = arith.constant 8 : index
    %141 = vector.load %arg5[%c0_33, %c8] : memref<8x9xf32, #tpu.memory_space<vmem>>, vector<8x1xf32>
    %cst_34 = arith.constant dense<0.000000e+00> : vector<8x256xf32>
    %142 = tpu.matmul %140, %139, %cst_34 {dimension_numbers = #tpu.dot_dimension_numbers<[1], [0], [0], [1], [0, 0, 1, 1], [], []>} : vector<8x8xf32>, vector<8x256xf32>, vector<8x256xf32> -> vector<8x256xf32>
    %143 = vector.broadcast %141 : vector<8x1xf32> to vector<8x256xf32>
    %144 = arith.addf %142, %143 : vector<8x256xf32>
    %cst_35 = arith.constant 5.000000e-01 : f32
    %145 = vector.broadcast %cst_35 : f32 to vector<8x256xf32>
    %146 = arith.mulf %145, %144 : vector<8x256xf32>
    %147 = math.tanh %146 : vector<8x256xf32>
    %cst_36 = arith.constant 1.000000e+00 : f32
    %148 = vector.broadcast %cst_36 : f32 to vector<8x256xf32>
    %149 = arith.addf %147, %148 : vector<8x256xf32>
    %cst_37 = arith.constant 5.000000e-01 : f32
    %150 = vector.broadcast %cst_37 : f32 to vector<8x256xf32>
    %151 = arith.mulf %150, %149 : vector<8x256xf32>
    %c0_38 = arith.constant 0 : index
    %c0_39 = arith.constant 0 : index
    %152 = vector.load %arg6[%c0_38, %c0_39] : memref<8x28xf32, #tpu.memory_space<vmem>>, vector<8x28xf32>
    %153 = vector.extract_strided_slice %60 {offsets = [0, 94], sizes = [8, 256], strides = [1, 1]} : vector<8x512xf32> to vector<8x256xf32>
    %154 = arith.mulf %153, %13 : vector<8x256xf32>
    %155 = vector.extract_strided_slice %152 {offsets = [0, 0], sizes = [8, 1], strides = [1, 1]} : vector<8x28xf32> to vector<8x1xf32>
    %156 = vector.broadcast %155 : vector<8x1xf32> to vector<8x256xf32>
    %157 = arith.mulf %156, %154 : vector<8x256xf32>
    %158 = vector.extract_strided_slice %60 {offsets = [0, 95], sizes = [8, 256], strides = [1, 1]} : vector<8x512xf32> to vector<8x256xf32>
    %159 = arith.mulf %158, %26 : vector<8x256xf32>
    %160 = vector.extract_strided_slice %152 {offsets = [0, 1], sizes = [8, 1], strides = [1, 1]} : vector<8x28xf32> to vector<8x1xf32>
    %161 = vector.broadcast %160 : vector<8x1xf32> to vector<8x256xf32>
    %162 = arith.mulf %161, %159 : vector<8x256xf32>
    %163 = arith.addf %157, %162 : vector<8x256xf32>
    %164 = vector.extract_strided_slice %60 {offsets = [0, 96], sizes = [8, 256], strides = [1, 1]} : vector<8x512xf32> to vector<8x256xf32>
    %165 = vector.extract_strided_slice %152 {offsets = [0, 2], sizes = [8, 1], strides = [1, 1]} : vector<8x28xf32> to vector<8x1xf32>
    %166 = vector.broadcast %165 : vector<8x1xf32> to vector<8x256xf32>
    %167 = arith.mulf %166, %164 : vector<8x256xf32>
    %168 = arith.addf %163, %167 : vector<8x256xf32>
    %169 = vector.extract_strided_slice %60 {offsets = [0, 97], sizes = [8, 256], strides = [1, 1]} : vector<8x512xf32> to vector<8x256xf32>
    %170 = arith.mulf %169, %39 : vector<8x256xf32>
    %171 = vector.extract_strided_slice %152 {offsets = [0, 3], sizes = [8, 1], strides = [1, 1]} : vector<8x28xf32> to vector<8x1xf32>
    %172 = vector.broadcast %171 : vector<8x1xf32> to vector<8x256xf32>
    %173 = arith.mulf %172, %170 : vector<8x256xf32>
    %174 = arith.addf %168, %173 : vector<8x256xf32>
    %175 = vector.extract_strided_slice %60 {offsets = [0, 98], sizes = [8, 256], strides = [1, 1]} : vector<8x512xf32> to vector<8x256xf32>
    %176 = arith.mulf %175, %52 : vector<8x256xf32>
    %177 = vector.extract_strided_slice %152 {offsets = [0, 4], sizes = [8, 1], strides = [1, 1]} : vector<8x28xf32> to vector<8x1xf32>
    %178 = vector.broadcast %177 : vector<8x1xf32> to vector<8x256xf32>
    %179 = arith.mulf %178, %176 : vector<8x256xf32>
    %180 = arith.addf %174, %179 : vector<8x256xf32>
    %181 = vector.extract_strided_slice %60 {offsets = [0, 110], sizes = [8, 256], strides = [1, 1]} : vector<8x512xf32> to vector<8x256xf32>
    %182 = arith.mulf %181, %13 : vector<8x256xf32>
    %183 = vector.extract_strided_slice %152 {offsets = [0, 5], sizes = [8, 1], strides = [1, 1]} : vector<8x28xf32> to vector<8x1xf32>
    %184 = vector.broadcast %183 : vector<8x1xf32> to vector<8x256xf32>
    %185 = arith.mulf %184, %182 : vector<8x256xf32>
    %186 = arith.addf %180, %185 : vector<8x256xf32>
    %187 = vector.extract_strided_slice %60 {offsets = [0, 111], sizes = [8, 256], strides = [1, 1]} : vector<8x512xf32> to vector<8x256xf32>
    %188 = arith.mulf %187, %26 : vector<8x256xf32>
    %189 = vector.extract_strided_slice %152 {offsets = [0, 6], sizes = [8, 1], strides = [1, 1]} : vector<8x28xf32> to vector<8x1xf32>
    %190 = vector.broadcast %189 : vector<8x1xf32> to vector<8x256xf32>
    %191 = arith.mulf %190, %188 : vector<8x256xf32>
    %192 = arith.addf %186, %191 : vector<8x256xf32>
    %193 = vector.extract_strided_slice %60 {offsets = [0, 112], sizes = [8, 256], strides = [1, 1]} : vector<8x512xf32> to vector<8x256xf32>
    %194 = vector.extract_strided_slice %152 {offsets = [0, 7], sizes = [8, 1], strides = [1, 1]} : vector<8x28xf32> to vector<8x1xf32>
    %195 = vector.broadcast %194 : vector<8x1xf32> to vector<8x256xf32>
    %196 = arith.mulf %195, %193 : vector<8x256xf32>
    %197 = arith.addf %192, %196 : vector<8x256xf32>
    %198 = vector.extract_strided_slice %60 {offsets = [0, 113], sizes = [8, 256], strides = [1, 1]} : vector<8x512xf32> to vector<8x256xf32>
    %199 = arith.mulf %198, %39 : vector<8x256xf32>
    %200 = vector.extract_strided_slice %152 {offsets = [0, 8], sizes = [8, 1], strides = [1, 1]} : vector<8x28xf32> to vector<8x1xf32>
    %201 = vector.broadcast %200 : vector<8x1xf32> to vector<8x256xf32>
    %202 = arith.mulf %201, %199 : vector<8x256xf32>
    %203 = arith.addf %197, %202 : vector<8x256xf32>
    %204 = vector.extract_strided_slice %60 {offsets = [0, 114], sizes = [8, 256], strides = [1, 1]} : vector<8x512xf32> to vector<8x256xf32>
    %205 = arith.mulf %204, %52 : vector<8x256xf32>
    %206 = vector.extract_strided_slice %152 {offsets = [0, 9], sizes = [8, 1], strides = [1, 1]} : vector<8x28xf32> to vector<8x1xf32>
    %207 = vector.broadcast %206 : vector<8x1xf32> to vector<8x256xf32>
    %208 = arith.mulf %207, %205 : vector<8x256xf32>
    %209 = arith.addf %203, %208 : vector<8x256xf32>
    %210 = vector.extract_strided_slice %60 {offsets = [0, 126], sizes = [8, 256], strides = [1, 1]} : vector<8x512xf32> to vector<8x256xf32>
    %211 = arith.mulf %210, %13 : vector<8x256xf32>
    %212 = vector.extract_strided_slice %152 {offsets = [0, 10], sizes = [8, 1], strides = [1, 1]} : vector<8x28xf32> to vector<8x1xf32>
    %213 = vector.broadcast %212 : vector<8x1xf32> to vector<8x256xf32>
    %214 = arith.mulf %213, %211 : vector<8x256xf32>
    %215 = arith.addf %209, %214 : vector<8x256xf32>
    %216 = vector.extract_strided_slice %60 {offsets = [0, 127], sizes = [8, 256], strides = [1, 1]} : vector<8x512xf32> to vector<8x256xf32>
    %217 = arith.mulf %216, %26 : vector<8x256xf32>
    %218 = vector.extract_strided_slice %152 {offsets = [0, 11], sizes = [8, 1], strides = [1, 1]} : vector<8x28xf32> to vector<8x1xf32>
    %219 = vector.broadcast %218 : vector<8x1xf32> to vector<8x256xf32>
    %220 = arith.mulf %219, %217 : vector<8x256xf32>
    %221 = arith.addf %215, %220 : vector<8x256xf32>
    %222 = vector.extract_strided_slice %60 {offsets = [0, 128], sizes = [8, 256], strides = [1, 1]} : vector<8x512xf32> to vector<8x256xf32>
    %223 = vector.extract_strided_slice %152 {offsets = [0, 12], sizes = [8, 1], strides = [1, 1]} : vector<8x28xf32> to vector<8x1xf32>
    %224 = vector.broadcast %223 : vector<8x1xf32> to vector<8x256xf32>
    %225 = arith.mulf %224, %222 : vector<8x256xf32>
    %226 = arith.addf %221, %225 : vector<8x256xf32>
    %227 = vector.extract_strided_slice %60 {offsets = [0, 129], sizes = [8, 256], strides = [1, 1]} : vector<8x512xf32> to vector<8x256xf32>
    %228 = arith.mulf %227, %39 : vector<8x256xf32>
    %229 = vector.extract_strided_slice %152 {offsets = [0, 13], sizes = [8, 1], strides = [1, 1]} : vector<8x28xf32> to vector<8x1xf32>
    %230 = vector.broadcast %229 : vector<8x1xf32> to vector<8x256xf32>
    %231 = arith.mulf %230, %228 : vector<8x256xf32>
    %232 = arith.addf %226, %231 : vector<8x256xf32>
    %233 = vector.extract_strided_slice %60 {offsets = [0, 130], sizes = [8, 256], strides = [1, 1]} : vector<8x512xf32> to vector<8x256xf32>
    %234 = arith.mulf %233, %52 : vector<8x256xf32>
    %235 = vector.extract_strided_slice %152 {offsets = [0, 14], sizes = [8, 1], strides = [1, 1]} : vector<8x28xf32> to vector<8x1xf32>
    %236 = vector.broadcast %235 : vector<8x1xf32> to vector<8x256xf32>
    %237 = arith.mulf %236, %234 : vector<8x256xf32>
    %238 = arith.addf %232, %237 : vector<8x256xf32>
    %239 = vector.extract_strided_slice %60 {offsets = [0, 142], sizes = [8, 256], strides = [1, 1]} : vector<8x512xf32> to vector<8x256xf32>
    %240 = arith.mulf %239, %13 : vector<8x256xf32>
    %241 = vector.extract_strided_slice %152 {offsets = [0, 15], sizes = [8, 1], strides = [1, 1]} : vector<8x28xf32> to vector<8x1xf32>
    %242 = vector.broadcast %241 : vector<8x1xf32> to vector<8x256xf32>
    %243 = arith.mulf %242, %240 : vector<8x256xf32>
    %244 = arith.addf %238, %243 : vector<8x256xf32>
    %245 = vector.extract_strided_slice %60 {offsets = [0, 143], sizes = [8, 256], strides = [1, 1]} : vector<8x512xf32> to vector<8x256xf32>
    %246 = arith.mulf %245, %26 : vector<8x256xf32>
    %247 = vector.extract_strided_slice %152 {offsets = [0, 16], sizes = [8, 1], strides = [1, 1]} : vector<8x28xf32> to vector<8x1xf32>
    %248 = vector.broadcast %247 : vector<8x1xf32> to vector<8x256xf32>
    %249 = arith.mulf %248, %246 : vector<8x256xf32>
    %250 = arith.addf %244, %249 : vector<8x256xf32>
    %251 = vector.extract_strided_slice %60 {offsets = [0, 144], sizes = [8, 256], strides = [1, 1]} : vector<8x512xf32> to vector<8x256xf32>
    %252 = vector.extract_strided_slice %152 {offsets = [0, 17], sizes = [8, 1], strides = [1, 1]} : vector<8x28xf32> to vector<8x1xf32>
    %253 = vector.broadcast %252 : vector<8x1xf32> to vector<8x256xf32>
    %254 = arith.mulf %253, %251 : vector<8x256xf32>
    %255 = arith.addf %250, %254 : vector<8x256xf32>
    %256 = vector.extract_strided_slice %60 {offsets = [0, 145], sizes = [8, 256], strides = [1, 1]} : vector<8x512xf32> to vector<8x256xf32>
    %257 = arith.mulf %256, %39 : vector<8x256xf32>
    %258 = vector.extract_strided_slice %152 {offsets = [0, 18], sizes = [8, 1], strides = [1, 1]} : vector<8x28xf32> to vector<8x1xf32>
    %259 = vector.broadcast %258 : vector<8x1xf32> to vector<8x256xf32>
    %260 = arith.mulf %259, %257 : vector<8x256xf32>
    %261 = arith.addf %255, %260 : vector<8x256xf32>
    %262 = vector.extract_strided_slice %60 {offsets = [0, 146], sizes = [8, 256], strides = [1, 1]} : vector<8x512xf32> to vector<8x256xf32>
    %263 = arith.mulf %262, %52 : vector<8x256xf32>
    %264 = vector.extract_strided_slice %152 {offsets = [0, 19], sizes = [8, 1], strides = [1, 1]} : vector<8x28xf32> to vector<8x1xf32>
    %265 = vector.broadcast %264 : vector<8x1xf32> to vector<8x256xf32>
    %266 = arith.mulf %265, %263 : vector<8x256xf32>
    %267 = arith.addf %261, %266 : vector<8x256xf32>
    %268 = vector.extract_strided_slice %60 {offsets = [0, 158], sizes = [8, 256], strides = [1, 1]} : vector<8x512xf32> to vector<8x256xf32>
    %269 = arith.mulf %268, %13 : vector<8x256xf32>
    %270 = vector.extract_strided_slice %152 {offsets = [0, 20], sizes = [8, 1], strides = [1, 1]} : vector<8x28xf32> to vector<8x1xf32>
    %271 = vector.broadcast %270 : vector<8x1xf32> to vector<8x256xf32>
    %272 = arith.mulf %271, %269 : vector<8x256xf32>
    %273 = arith.addf %267, %272 : vector<8x256xf32>
    %274 = vector.extract_strided_slice %60 {offsets = [0, 159], sizes = [8, 256], strides = [1, 1]} : vector<8x512xf32> to vector<8x256xf32>
    %275 = arith.mulf %274, %26 : vector<8x256xf32>
    %276 = vector.extract_strided_slice %152 {offsets = [0, 21], sizes = [8, 1], strides = [1, 1]} : vector<8x28xf32> to vector<8x1xf32>
    %277 = vector.broadcast %276 : vector<8x1xf32> to vector<8x256xf32>
    %278 = arith.mulf %277, %275 : vector<8x256xf32>
    %279 = arith.addf %273, %278 : vector<8x256xf32>
    %280 = vector.extract_strided_slice %60 {offsets = [0, 160], sizes = [8, 256], strides = [1, 1]} : vector<8x512xf32> to vector<8x256xf32>
    %281 = vector.extract_strided_slice %152 {offsets = [0, 22], sizes = [8, 1], strides = [1, 1]} : vector<8x28xf32> to vector<8x1xf32>
    %282 = vector.broadcast %281 : vector<8x1xf32> to vector<8x256xf32>
    %283 = arith.mulf %282, %280 : vector<8x256xf32>
    %284 = arith.addf %279, %283 : vector<8x256xf32>
    %285 = vector.extract_strided_slice %60 {offsets = [0, 161], sizes = [8, 256], strides = [1, 1]} : vector<8x512xf32> to vector<8x256xf32>
    %286 = arith.mulf %285, %39 : vector<8x256xf32>
    %287 = vector.extract_strided_slice %152 {offsets = [0, 23], sizes = [8, 1], strides = [1, 1]} : vector<8x28xf32> to vector<8x1xf32>
    %288 = vector.broadcast %287 : vector<8x1xf32> to vector<8x256xf32>
    %289 = arith.mulf %288, %286 : vector<8x256xf32>
    %290 = arith.addf %284, %289 : vector<8x256xf32>
    %291 = vector.extract_strided_slice %60 {offsets = [0, 162], sizes = [8, 256], strides = [1, 1]} : vector<8x512xf32> to vector<8x256xf32>
    %292 = arith.mulf %291, %52 : vector<8x256xf32>
    %293 = vector.extract_strided_slice %152 {offsets = [0, 24], sizes = [8, 1], strides = [1, 1]} : vector<8x28xf32> to vector<8x1xf32>
    %294 = vector.broadcast %293 : vector<8x1xf32> to vector<8x256xf32>
    %295 = arith.mulf %294, %292 : vector<8x256xf32>
    %296 = arith.addf %290, %295 : vector<8x256xf32>
    %297 = vector.extract_strided_slice %152 {offsets = [0, 25], sizes = [8, 1], strides = [1, 1]} : vector<8x28xf32> to vector<8x1xf32>
    %298 = vector.broadcast %297 : vector<8x1xf32> to vector<8x256xf32>
    %299 = arith.addf %296, %298 : vector<8x256xf32>
    %cst_40 = arith.constant dense<0.000000e+00> : vector<8xf32>
    %300 = vector.multi_reduction <add>, %299, %cst_40 [1] : vector<8x256xf32> to vector<8xf32>
    %301 = vector.shape_cast %300 : vector<8xf32> to vector<8x1xf32>
    %302 = arith.mulf %299, %299 : vector<8x256xf32>
    %cst_41 = arith.constant dense<0.000000e+00> : vector<8xf32>
    %303 = vector.multi_reduction <add>, %302, %cst_41 [1] : vector<8x256xf32> to vector<8xf32>
    %304 = vector.shape_cast %303 : vector<8xf32> to vector<8x1xf32>
    %cst_42 = arith.constant dense<0.000000e+00> : vector<8x1xf32>
    %305 = tpu.matmul %53, %301, %cst_42 {dimension_numbers = #tpu.dot_dimension_numbers<[1], [0], [0], [1], [0, 0, 1, 1], [], []>} : vector<8x8xf32>, vector<8x1xf32>, vector<8x1xf32> -> vector<8x1xf32>
    %cst_43 = arith.constant 0.001953125 : f32
    %306 = vector.broadcast %cst_43 : f32 to vector<8x1xf32>
    %307 = arith.mulf %305, %306 : vector<8x1xf32>
    %cst_44 = arith.constant dense<0.000000e+00> : vector<8x1xf32>
    %308 = tpu.matmul %53, %304, %cst_44 {dimension_numbers = #tpu.dot_dimension_numbers<[1], [0], [0], [1], [0, 0, 1, 1], [], []>} : vector<8x8xf32>, vector<8x1xf32>, vector<8x1xf32> -> vector<8x1xf32>
    %cst_45 = arith.constant 0.001953125 : f32
    %309 = vector.broadcast %cst_45 : f32 to vector<8x1xf32>
    %310 = arith.mulf %308, %309 : vector<8x1xf32>
    %311 = arith.mulf %307, %307 : vector<8x1xf32>
    %312 = arith.subf %310, %311 : vector<8x1xf32>
    %cst_46 = arith.constant 9.99999974E-6 : f32
    %313 = vector.broadcast %cst_46 : f32 to vector<8x1xf32>
    %314 = arith.addf %312, %313 : vector<8x1xf32>
    %315 = math.rsqrt %314 : vector<8x1xf32>
    %316 = vector.extract_strided_slice %152 {offsets = [0, 26], sizes = [8, 1], strides = [1, 1]} : vector<8x28xf32> to vector<8x1xf32>
    %317 = arith.mulf %315, %316 : vector<8x1xf32>
    %318 = vector.extract_strided_slice %152 {offsets = [0, 27], sizes = [8, 1], strides = [1, 1]} : vector<8x28xf32> to vector<8x1xf32>
    %319 = arith.mulf %307, %317 : vector<8x1xf32>
    %320 = arith.subf %318, %319 : vector<8x1xf32>
    %321 = vector.broadcast %317 : vector<8x1xf32> to vector<8x256xf32>
    %322 = arith.mulf %299, %321 : vector<8x256xf32>
    %323 = vector.broadcast %320 : vector<8x1xf32> to vector<8x256xf32>
    %324 = arith.addf %322, %323 : vector<8x256xf32>
    %c0_47 = arith.constant 0 : index
    %c0_48 = arith.constant 0 : index
    %325 = vector.load %arg7[%c0_47, %c0_48] : memref<8x9xf32, #tpu.memory_space<vmem>>, vector<8x8xf32>
    %c0_49 = arith.constant 0 : index
    %c8_50 = arith.constant 8 : index
    %326 = vector.load %arg7[%c0_49, %c8_50] : memref<8x9xf32, #tpu.memory_space<vmem>>, vector<8x1xf32>
    %cst_51 = arith.constant dense<0.000000e+00> : vector<8x256xf32>
    %327 = tpu.matmul %325, %324, %cst_51 {dimension_numbers = #tpu.dot_dimension_numbers<[1], [0], [0], [1], [0, 0, 1, 1], [], []>} : vector<8x8xf32>, vector<8x256xf32>, vector<8x256xf32> -> vector<8x256xf32>
    %328 = vector.broadcast %326 : vector<8x1xf32> to vector<8x256xf32>
    %329 = arith.addf %327, %328 : vector<8x256xf32>
    %cst_52 = arith.constant 5.000000e-01 : f32
    %330 = vector.broadcast %cst_52 : f32 to vector<8x256xf32>
    %331 = arith.mulf %330, %329 : vector<8x256xf32>
    %cst_53 = arith.constant 0.707106769 : f32
    %332 = vector.broadcast %cst_53 : f32 to vector<8x256xf32>
    %333 = arith.mulf %329, %332 : vector<8x256xf32>
    %cst_54 = arith.constant -4.000000e+00 : f32
    %cst_55 = arith.constant 4.000000e+00 : f32
    %334 = vector.broadcast %cst_54 : f32 to vector<8x256xf32>
    %335 = arith.maximumf %334, %333 : vector<8x256xf32>
    %336 = vector.broadcast %cst_55 : f32 to vector<8x256xf32>
    %337 = arith.minimumf %336, %335 : vector<8x256xf32>
    %338 = arith.mulf %337, %337 : vector<8x256xf32>
    %cst_56 = arith.constant 2.29050653E-4 : f32
    %339 = vector.broadcast %cst_56 : f32 to vector<8x256xf32>
    %340 = arith.mulf %339, %338 : vector<8x256xf32>
    %cst_57 = arith.constant 0.00340829091 : f32
    %341 = vector.broadcast %cst_57 : f32 to vector<8x256xf32>
    %342 = arith.addf %340, %341 : vector<8x256xf32>
    %343 = arith.mulf %342, %338 : vector<8x256xf32>
    %cst_58 = arith.constant 0.0509556942 : f32
    %344 = vector.broadcast %cst_58 : f32 to vector<8x256xf32>
    %345 = arith.addf %343, %344 : vector<8x256xf32>
    %346 = arith.mulf %345, %338 : vector<8x256xf32>
    %cst_59 = arith.constant 0.185208321 : f32
    %347 = vector.broadcast %cst_59 : f32 to vector<8x256xf32>
    %348 = arith.addf %346, %347 : vector<8x256xf32>
    %349 = arith.mulf %348, %338 : vector<8x256xf32>
    %cst_60 = arith.constant 1.12837911 : f32
    %350 = vector.broadcast %cst_60 : f32 to vector<8x256xf32>
    %351 = arith.addf %349, %350 : vector<8x256xf32>
    %352 = arith.mulf %337, %351 : vector<8x256xf32>
    %cst_61 = arith.constant -1.17916031E-7 : f32
    %353 = vector.broadcast %cst_61 : f32 to vector<8x256xf32>
    %354 = arith.mulf %353, %338 : vector<8x256xf32>
    %cst_62 = arith.constant 2.35479656E-5 : f32
    %355 = vector.broadcast %cst_62 : f32 to vector<8x256xf32>
    %356 = arith.addf %354, %355 : vector<8x256xf32>
    %357 = arith.mulf %356, %338 : vector<8x256xf32>
    %cst_63 = arith.constant 0.00101796258 : f32
    %358 = vector.broadcast %cst_63 : f32 to vector<8x256xf32>
    %359 = arith.addf %357, %358 : vector<8x256xf32>
    %360 = arith.mulf %359, %338 : vector<8x256xf32>
    %cst_64 = arith.constant 0.0140704699 : f32
    %361 = vector.broadcast %cst_64 : f32 to vector<8x256xf32>
    %362 = arith.addf %360, %361 : vector<8x256xf32>
    %363 = arith.mulf %362, %338 : vector<8x256xf32>
    %cst_65 = arith.constant 0.110985048 : f32
    %364 = vector.broadcast %cst_65 : f32 to vector<8x256xf32>
    %365 = arith.addf %363, %364 : vector<8x256xf32>
    %366 = arith.mulf %365, %338 : vector<8x256xf32>
    %cst_66 = arith.constant 0.497469246 : f32
    %367 = vector.broadcast %cst_66 : f32 to vector<8x256xf32>
    %368 = arith.addf %366, %367 : vector<8x256xf32>
    %369 = arith.mulf %368, %338 : vector<8x256xf32>
    %cst_67 = arith.constant 1.000000e+00 : f32
    %370 = vector.broadcast %cst_67 : f32 to vector<8x256xf32>
    %371 = arith.addf %369, %370 : vector<8x256xf32>
    %372 = arith.divf %352, %371 : vector<8x256xf32>
    %cst_68 = arith.constant 1.000000e+00 : f32
    %373 = vector.broadcast %cst_68 : f32 to vector<8x256xf32>
    %374 = arith.addf %373, %372 : vector<8x256xf32>
    %375 = arith.mulf %331, %374 : vector<8x256xf32>
    %376 = arith.mulf %151, %375 : vector<8x256xf32>
    %c0_69 = arith.constant 0 : index
    %c128_70 = arith.constant 128 : index
    %377 = vector.load %arg12[%c0_69, %c128_70] : memref<8x512xf32, #tpu.memory_space<vmem>>, vector<8x256xf32>
    tpu.vector_store %arg12[%c0_69, %c128_70], %376 {strides = array<i32>} : memref<8x512xf32, #tpu.memory_space<vmem>>, vector<8x256xf32>,
    %c0_71 = arith.constant 0 : index
    %c0_72 = arith.constant 0 : index
    %378 = vector.load %arg12[%c0_71, %c0_72] : memref<8x512xf32, #tpu.memory_space<vmem>>, vector<8x512xf32>
    %c0_73 = arith.constant 0 : index
    %c0_74 = arith.constant 0 : index
    %379 = vector.load %arg8[%c0_73, %c0_74] : memref<8x12xf32, #tpu.memory_space<vmem>>, vector<8x12xf32>
    %380 = vector.extract_strided_slice %378 {offsets = [0, 111], sizes = [8, 256], strides = [1, 1]} : vector<8x512xf32> to vector<8x256xf32>
    %381 = arith.mulf %380, %26 : vector<8x256xf32>
    %382 = vector.extract_strided_slice %379 {offsets = [0, 0], sizes = [8, 1], strides = [1, 1]} : vector<8x12xf32> to vector<8x1xf32>
    %383 = vector.broadcast %382 : vector<8x1xf32> to vector<8x256xf32>
    %384 = arith.mulf %383, %381 : vector<8x256xf32>
    %385 = vector.extract_strided_slice %378 {offsets = [0, 112], sizes = [8, 256], strides = [1, 1]} : vector<8x512xf32> to vector<8x256xf32>
    %386 = vector.extract_strided_slice %379 {offsets = [0, 1], sizes = [8, 1], strides = [1, 1]} : vector<8x12xf32> to vector<8x1xf32>
    %387 = vector.broadcast %386 : vector<8x1xf32> to vector<8x256xf32>
    %388 = arith.mulf %387, %385 : vector<8x256xf32>
    %389 = arith.addf %384, %388 : vector<8x256xf32>
    %390 = vector.extract_strided_slice %378 {offsets = [0, 113], sizes = [8, 256], strides = [1, 1]} : vector<8x512xf32> to vector<8x256xf32>
    %391 = arith.mulf %390, %39 : vector<8x256xf32>
    %392 = vector.extract_strided_slice %379 {offsets = [0, 2], sizes = [8, 1], strides = [1, 1]} : vector<8x12xf32> to vector<8x1xf32>
    %393 = vector.broadcast %392 : vector<8x1xf32> to vector<8x256xf32>
    %394 = arith.mulf %393, %391 : vector<8x256xf32>
    %395 = arith.addf %389, %394 : vector<8x256xf32>
    %396 = vector.extract_strided_slice %378 {offsets = [0, 127], sizes = [8, 256], strides = [1, 1]} : vector<8x512xf32> to vector<8x256xf32>
    %397 = arith.mulf %396, %26 : vector<8x256xf32>
    %398 = vector.extract_strided_slice %379 {offsets = [0, 3], sizes = [8, 1], strides = [1, 1]} : vector<8x12xf32> to vector<8x1xf32>
    %399 = vector.broadcast %398 : vector<8x1xf32> to vector<8x256xf32>
    %400 = arith.mulf %399, %397 : vector<8x256xf32>
    %401 = arith.addf %395, %400 : vector<8x256xf32>
    %402 = vector.extract_strided_slice %378 {offsets = [0, 128], sizes = [8, 256], strides = [1, 1]} : vector<8x512xf32> to vector<8x256xf32>
    %403 = vector.extract_strided_slice %379 {offsets = [0, 4], sizes = [8, 1], strides = [1, 1]} : vector<8x12xf32> to vector<8x1xf32>
    %404 = vector.broadcast %403 : vector<8x1xf32> to vector<8x256xf32>
    %405 = arith.mulf %404, %402 : vector<8x256xf32>
    %406 = arith.addf %401, %405 : vector<8x256xf32>
    %407 = vector.extract_strided_slice %378 {offsets = [0, 129], sizes = [8, 256], strides = [1, 1]} : vector<8x512xf32> to vector<8x256xf32>
    %408 = arith.mulf %407, %39 : vector<8x256xf32>
    %409 = vector.extract_strided_slice %379 {offsets = [0, 5], sizes = [8, 1], strides = [1, 1]} : vector<8x12xf32> to vector<8x1xf32>
    %410 = vector.broadcast %409 : vector<8x1xf32> to vector<8x256xf32>
    %411 = arith.mulf %410, %408 : vector<8x256xf32>
    %412 = arith.addf %406, %411 : vector<8x256xf32>
    %413 = vector.extract_strided_slice %378 {offsets = [0, 143], sizes = [8, 256], strides = [1, 1]} : vector<8x512xf32> to vector<8x256xf32>
    %414 = arith.mulf %413, %26 : vector<8x256xf32>
    %415 = vector.extract_strided_slice %379 {offsets = [0, 6], sizes = [8, 1], strides = [1, 1]} : vector<8x12xf32> to vector<8x1xf32>
    %416 = vector.broadcast %415 : vector<8x1xf32> to vector<8x256xf32>
    %417 = arith.mulf %416, %414 : vector<8x256xf32>
    %418 = arith.addf %412, %417 : vector<8x256xf32>
    %419 = vector.extract_strided_slice %378 {offsets = [0, 144], sizes = [8, 256], strides = [1, 1]} : vector<8x512xf32> to vector<8x256xf32>
    %420 = vector.extract_strided_slice %379 {offsets = [0, 7], sizes = [8, 1], strides = [1, 1]} : vector<8x12xf32> to vector<8x1xf32>
    %421 = vector.broadcast %420 : vector<8x1xf32> to vector<8x256xf32>
    %422 = arith.mulf %421, %419 : vector<8x256xf32>
    %423 = arith.addf %418, %422 : vector<8x256xf32>
    %424 = vector.extract_strided_slice %378 {offsets = [0, 145], sizes = [8, 256], strides = [1, 1]} : vector<8x512xf32> to vector<8x256xf32>
    %425 = arith.mulf %424, %39 : vector<8x256xf32>
    %426 = vector.extract_strided_slice %379 {offsets = [0, 8], sizes = [8, 1], strides = [1, 1]} : vector<8x12xf32> to vector<8x1xf32>
    %427 = vector.broadcast %426 : vector<8x1xf32> to vector<8x256xf32>
    %428 = arith.mulf %427, %425 : vector<8x256xf32>
    %429 = arith.addf %423, %428 : vector<8x256xf32>
    %430 = vector.extract_strided_slice %379 {offsets = [0, 9], sizes = [8, 1], strides = [1, 1]} : vector<8x12xf32> to vector<8x1xf32>
    %431 = vector.broadcast %430 : vector<8x1xf32> to vector<8x256xf32>
    %432 = arith.addf %429, %431 : vector<8x256xf32>
    %cst_75 = arith.constant dense<0.000000e+00> : vector<8xf32>
    %433 = vector.multi_reduction <add>, %432, %cst_75 [1] : vector<8x256xf32> to vector<8xf32>
    %434 = vector.shape_cast %433 : vector<8xf32> to vector<8x1xf32>
    %435 = arith.mulf %432, %432 : vector<8x256xf32>
    %cst_76 = arith.constant dense<0.000000e+00> : vector<8xf32>
    %436 = vector.multi_reduction <add>, %435, %cst_76 [1] : vector<8x256xf32> to vector<8xf32>
    %437 = vector.shape_cast %436 : vector<8xf32> to vector<8x1xf32>
    %cst_77 = arith.constant dense<0.000000e+00> : vector<8x1xf32>
    %438 = tpu.matmul %53, %434, %cst_77 {dimension_numbers = #tpu.dot_dimension_numbers<[1], [0], [0], [1], [0, 0, 1, 1], [], []>} : vector<8x8xf32>, vector<8x1xf32>, vector<8x1xf32> -> vector<8x1xf32>
    %cst_78 = arith.constant 0.001953125 : f32
    %439 = vector.broadcast %cst_78 : f32 to vector<8x1xf32>
    %440 = arith.mulf %438, %439 : vector<8x1xf32>
    %cst_79 = arith.constant dense<0.000000e+00> : vector<8x1xf32>
    %441 = tpu.matmul %53, %437, %cst_79 {dimension_numbers = #tpu.dot_dimension_numbers<[1], [0], [0], [1], [0, 0, 1, 1], [], []>} : vector<8x8xf32>, vector<8x1xf32>, vector<8x1xf32> -> vector<8x1xf32>
    %cst_80 = arith.constant 0.001953125 : f32
    %442 = vector.broadcast %cst_80 : f32 to vector<8x1xf32>
    %443 = arith.mulf %441, %442 : vector<8x1xf32>
    %444 = arith.mulf %440, %440 : vector<8x1xf32>
    %445 = arith.subf %443, %444 : vector<8x1xf32>
    %cst_81 = arith.constant 9.99999974E-6 : f32
    %446 = vector.broadcast %cst_81 : f32 to vector<8x1xf32>
    %447 = arith.addf %445, %446 : vector<8x1xf32>
    %448 = math.rsqrt %447 : vector<8x1xf32>
    %449 = vector.extract_strided_slice %379 {offsets = [0, 10], sizes = [8, 1], strides = [1, 1]} : vector<8x12xf32> to vector<8x1xf32>
    %450 = arith.mulf %448, %449 : vector<8x1xf32>
    %451 = vector.extract_strided_slice %379 {offsets = [0, 11], sizes = [8, 1], strides = [1, 1]} : vector<8x12xf32> to vector<8x1xf32>
    %452 = arith.mulf %440, %450 : vector<8x1xf32>
    %453 = arith.subf %451, %452 : vector<8x1xf32>
    %454 = vector.broadcast %450 : vector<8x1xf32> to vector<8x256xf32>
    %455 = arith.mulf %432, %454 : vector<8x256xf32>
    %456 = vector.broadcast %453 : vector<8x1xf32> to vector<8x256xf32>
    %457 = arith.addf %455, %456 : vector<8x256xf32>
    %c0_82 = arith.constant 0 : index
    %c0_83 = arith.constant 0 : index
    %458 = vector.load %arg9[%c0_82, %c0_83] : memref<16x9xf32, #tpu.memory_space<vmem>>, vector<16x8xf32>
    %c0_84 = arith.constant 0 : index
    %c8_85 = arith.constant 8 : index
    %459 = vector.load %arg9[%c0_84, %c8_85] : memref<16x9xf32, #tpu.memory_space<vmem>>, vector<16x1xf32>
    %cst_86 = arith.constant dense<0.000000e+00> : vector<16x256xf32>
    %460 = tpu.matmul %458, %457, %cst_86 {dimension_numbers = #tpu.dot_dimension_numbers<[1], [0], [0], [1], [0, 0, 1, 1], [], []>} : vector<16x8xf32>, vector<8x256xf32>, vector<16x256xf32> -> vector<16x256xf32>
    %461 = vector.broadcast %459 : vector<16x1xf32> to vector<16x256xf32>
    %462 = arith.addf %460, %461 : vector<16x256xf32>
    %cst_87 = arith.constant 5.000000e-01 : f32
    %463 = vector.broadcast %cst_87 : f32 to vector<16x256xf32>
    %464 = arith.mulf %463, %462 : vector<16x256xf32>
    %cst_88 = arith.constant 0.707106769 : f32
    %465 = vector.broadcast %cst_88 : f32 to vector<16x256xf32>
    %466 = arith.mulf %462, %465 : vector<16x256xf32>
    %cst_89 = arith.constant -4.000000e+00 : f32
    %cst_90 = arith.constant 4.000000e+00 : f32
    %467 = vector.broadcast %cst_89 : f32 to vector<16x256xf32>
    %468 = arith.maximumf %467, %466 : vector<16x256xf32>
    %469 = vector.broadcast %cst_90 : f32 to vector<16x256xf32>
    %470 = arith.minimumf %469, %468 : vector<16x256xf32>
    %471 = arith.mulf %470, %470 : vector<16x256xf32>
    %cst_91 = arith.constant 2.29050653E-4 : f32
    %472 = vector.broadcast %cst_91 : f32 to vector<16x256xf32>
    %473 = arith.mulf %472, %471 : vector<16x256xf32>
    %cst_92 = arith.constant 0.00340829091 : f32
    %474 = vector.broadcast %cst_92 : f32 to vector<16x256xf32>
    %475 = arith.addf %473, %474 : vector<16x256xf32>
    %476 = arith.mulf %475, %471 : vector<16x256xf32>
    %cst_93 = arith.constant 0.0509556942 : f32
    %477 = vector.broadcast %cst_93 : f32 to vector<16x256xf32>
    %478 = arith.addf %476, %477 : vector<16x256xf32>
    %479 = arith.mulf %478, %471 : vector<16x256xf32>
    %cst_94 = arith.constant 0.185208321 : f32
    %480 = vector.broadcast %cst_94 : f32 to vector<16x256xf32>
    %481 = arith.addf %479, %480 : vector<16x256xf32>
    %482 = arith.mulf %481, %471 : vector<16x256xf32>
    %cst_95 = arith.constant 1.12837911 : f32
    %483 = vector.broadcast %cst_95 : f32 to vector<16x256xf32>
    %484 = arith.addf %482, %483 : vector<16x256xf32>
    %485 = arith.mulf %470, %484 : vector<16x256xf32>
    %cst_96 = arith.constant -1.17916031E-7 : f32
    %486 = vector.broadcast %cst_96 : f32 to vector<16x256xf32>
    %487 = arith.mulf %486, %471 : vector<16x256xf32>
    %cst_97 = arith.constant 2.35479656E-5 : f32
    %488 = vector.broadcast %cst_97 : f32 to vector<16x256xf32>
    %489 = arith.addf %487, %488 : vector<16x256xf32>
    %490 = arith.mulf %489, %471 : vector<16x256xf32>
    %cst_98 = arith.constant 0.00101796258 : f32
    %491 = vector.broadcast %cst_98 : f32 to vector<16x256xf32>
    %492 = arith.addf %490, %491 : vector<16x256xf32>
    %493 = arith.mulf %492, %471 : vector<16x256xf32>
    %cst_99 = arith.constant 0.0140704699 : f32
    %494 = vector.broadcast %cst_99 : f32 to vector<16x256xf32>
    %495 = arith.addf %493, %494 : vector<16x256xf32>
    %496 = arith.mulf %495, %471 : vector<16x256xf32>
    %cst_100 = arith.constant 0.110985048 : f32
    %497 = vector.broadcast %cst_100 : f32 to vector<16x256xf32>
    %498 = arith.addf %496, %497 : vector<16x256xf32>
    %499 = arith.mulf %498, %471 : vector<16x256xf32>
    %cst_101 = arith.constant 0.497469246 : f32
    %500 = vector.broadcast %cst_101 : f32 to vector<16x256xf32>
    %501 = arith.addf %499, %500 : vector<16x256xf32>
    %502 = arith.mulf %501, %471 : vector<16x256xf32>
    %cst_102 = arith.constant 1.000000e+00 : f32
    %503 = vector.broadcast %cst_102 : f32 to vector<16x256xf32>
    %504 = arith.addf %502, %503 : vector<16x256xf32>
    %505 = arith.divf %485, %504 : vector<16x256xf32>
    %cst_103 = arith.constant 1.000000e+00 : f32
    %506 = vector.broadcast %cst_103 : f32 to vector<16x256xf32>
    %507 = arith.addf %506, %505 : vector<16x256xf32>
    %508 = arith.mulf %464, %507 : vector<16x256xf32>
    %c0_104 = arith.constant 0 : index
    %c0_105 = arith.constant 0 : index
    %509 = vector.load %arg10[%c0_104, %c0_105] : memref<16x9xf32, #tpu.memory_space<vmem>>, vector<16x8xf32>
    %c0_106 = arith.constant 0 : index
    %c8_107 = arith.constant 8 : index
    %510 = vector.load %arg10[%c0_106, %c8_107] : memref<16x9xf32, #tpu.memory_space<vmem>>, vector<16x1xf32>
    %cst_108 = arith.constant dense<0.000000e+00> : vector<16x256xf32>
    %511 = tpu.matmul %509, %58, %cst_108 {dimension_numbers = #tpu.dot_dimension_numbers<[1], [0], [0], [1], [0, 0, 1, 1], [], []>} : vector<16x8xf32>, vector<8x256xf32>, vector<16x256xf32> -> vector<16x256xf32>
    %512 = vector.broadcast %510 : vector<16x1xf32> to vector<16x256xf32>
    %513 = arith.addf %511, %512 : vector<16x256xf32>
    %514 = arith.addf %508, %513 : vector<16x256xf32>
    %c0_109 = arith.constant 0 : index
    %c0_110 = arith.constant 0 : index
    %515 = vector.load %arg11[%c0_109, %c0_110] : memref<16x256xf32, #tpu.memory_space<vmem>>, vector<16x256xf32>
    tpu.vector_store %arg11[%c0_109, %c0_110], %514 {strides = array<i32>} : memref<16x256xf32, #tpu.memory_space<vmem>>, vector<16x256xf32>,
    return
  }
  func.func @transform_0(%arg0: i32) -> (i32, i32) {
    %c0_i32 = arith.constant 0 : i32
    %c0_i32_0 = arith.constant 0 : i32
    return %c0_i32, %arg0 : i32, i32
  }
  func.func @transform_1(%arg0: i32) -> (i32, i32) {
    %c0_i32 = arith.constant 0 : i32
    %c0_i32_0 = arith.constant 0 : i32
    %c0_i32_1 = arith.constant 0 : i32
    return %c0_i32, %c0_i32_0 : i32, i32
  }
  func.func @transform_2(%arg0: i32) -> (i32, i32) {
    %c0_i32 = arith.constant 0 : i32
    %c0_i32_0 = arith.constant 0 : i32
    %c0_i32_1 = arith.constant 0 : i32
    return %c0_i32, %c0_i32_0 : i32, i32
  }
  func.func @transform_3(%arg0: i32) -> (i32, i32) {
    %c0_i32 = arith.constant 0 : i32
    %c0_i32_0 = arith.constant 0 : i32
    %c0_i32_1 = arith.constant 0 : i32
    return %c0_i32, %c0_i32_0 : i32, i32
  }
  func.func @transform_4(%arg0: i32) -> (i32, i32) {
    %c0_i32 = arith.constant 0 : i32
    %c0_i32_0 = arith.constant 0 : i32
    %c0_i32_1 = arith.constant 0 : i32
    return %c0_i32, %c0_i32_0 : i32, i32
  }
  func.func @transform_5(%arg0: i32) -> (i32, i32) {
    %c0_i32 = arith.constant 0 : i32
    %c0_i32_0 = arith.constant 0 : i32
    %c0_i32_1 = arith.constant 0 : i32
    return %c0_i32, %c0_i32_0 : i32, i32
  }
  func.func @transform_6(%arg0: i32) -> (i32, i32) {
    %c0_i32 = arith.constant 0 : i32
    %c0_i32_0 = arith.constant 0 : i32
    %c0_i32_1 = arith.constant 0 : i32
    return %c0_i32, %c0_i32_0 : i32, i32
  }
  func.func @transform_7(%arg0: i32) -> (i32, i32) {
    %c0_i32 = arith.constant 0 : i32
    %c0_i32_0 = arith.constant 0 : i32
    %c0_i32_1 = arith.constant 0 : i32
    return %c0_i32, %c0_i32_0 : i32, i32
  }
  func.func @transform_8(%arg0: i32) -> (i32, i32) {
    %c0_i32 = arith.constant 0 : i32
    %c0_i32_0 = arith.constant 0 : i32
    %c0_i32_1 = arith.constant 0 : i32
    return %c0_i32, %c0_i32_0 : i32, i32
  }
  func.func @transform_9(%arg0: i32) -> (i32, i32) {
    %c0_i32 = arith.constant 0 : i32
    %c0_i32_0 = arith.constant 0 : i32
    %c0_i32_1 = arith.constant 0 : i32
    return %c0_i32, %c0_i32_0 : i32, i32
  }
  func.func @transform_10(%arg0: i32) -> (i32, i32) {
    %c0_i32 = arith.constant 0 : i32
    %c0_i32_0 = arith.constant 0 : i32
    return %c0_i32, %arg0 : i32, i32
  }
}

</mosaic_0001>

<bundles_post_ra>
// kernel: tpu_custom_call.1
= control target key start
LH: loop header
LB: loop body
LE: loop exit
PB: predicated region body
PF: predicated region fallthrough
CT: control target
= control target key end

     0   :  { %s5480_s0 = inlined_call_operand.hbm [shape: f32[8,512], index: 0, kind: input, shape index: {}]   ;;  %s5481_s1 = inlined_call_operand.hbm [shape: s32[1,256], index: 1, kind: input, shape index: {}]   ;;  %s5482_s2 = inlined_call_operand.hbm [shape: f32[8,8], index: 2, kind: input, shape index: {}]   ;;  %s5483_s3 = inlined_call_operand.hbm [shape: f32[8,12], index: 3, kind: input, shape index: {}]   ;;  %s5484_s4 = inlined_call_operand.hbm [shape: f32[8,9], index: 4, kind: input, shape index: {}]   ;;  %s5485_s5 = inlined_call_operand.hbm [shape: f32[8,28], index: 5, kind: input, shape index: {}]   ;;  %s5486_s6 = inlined_call_operand.hbm [shape: f32[8,9], index: 6, kind: input, shape index: {}]   ;;  %s5487_s7 = inlined_call_operand.hbm [shape: f32[8,12], index: 7, kind: input, shape index: {}]   ;;  %s5488_s8 = inlined_call_operand.hbm [shape: f32[16,9], index: 8, kind: input, shape index: {}]   ;;  %s5489_s9 = inlined_call_operand.vmem [shape: f32[16,9], index: 9, kind: input, shape index: {}]   ;;  %s5490_s10 = inlined_call_operand.hbm [shape: f32[16,512], index: 10, kind: output, shape index: {}]  }
   0x1   :  { %5539 = sst [smem:[#allocation46_spill]] %s5481_s1 }
   0x2   :  { %5540 = sst [smem:[#allocation47_spill]] %s5482_s2 }
   0x3   :  { %5541 = sst [smem:[#allocation48_spill]] %s5483_s3 }
   0x4   :  { %5542 = sst [smem:[#allocation49_spill]] %s5484_s4 }
   0x5   :  { %5543 = sst [smem:[#allocation50_spill]] %s5485_s5 }
   0x6   :  { %15 = vsyncpa [#allocation4], 0 }
   0x7   :  { %17 = vsyncpa [#allocation4 + $0x1], 0 }
   0x8   :  { %18 = vsyncpa [#allocation7], 0 }
   0x9   :  { %19 = vsyncpa [#allocation10], 0 }
   0xa   :  { %20 = vsyncpa [#allocation13], 0 }
   0xb   :  { %21 = vsyncpa [#allocation16], 0 }
   0xc   :  { %22 = vsyncpa [#allocation5], 0 }
   0xd   :  { %24 = vsyncpa [#allocation5 + $0x1], 0  ;;  %s4139_s13 = smov 0   ;;  %s4141_s14 = smov 0  }
   0xe   :  { %s4143_s15 = smov 0   ;;  %s4145_s16 = smov 0  }
   0xf LB: > { %s3998_s17 = smov [#allocation6]   ;;  %s4160_s19 = sadd.s32 4294967295, %s3996_s16   ;;  %s3996_s16 = sphi %s4145_s16, %s5636_s16   ;;  %s3992_s15 = sphi %s4143_s15, %s5635_s15   ;;  %s3988_s14 = sphi %s4141_s14, %s5634_s14   ;;  %s3984_s13 = sphi %s4139_s13, %s5633_s13  }
  0x10   : > { %s289_s18 = sshll.u32 %s3998_s17, 4  ;;  %p3197_p0 = scmp.ge.s32.totalorder %s3996_s16, 1  ;;  %s290_s18 = int_to_ptr.vmem [resolvable:$true] %s289_s18 }
  0x11   : > { %p5491_p1 = scmp.eq.s32.totalorder %s4160_s19, 0  ;;  %p276_p2 = scmp.lt.s32.totalorder %s3996_s16, 3 }
  0x12   : > { %s3999_s21 = smov [#allocation9]   ;;  %s4000_s23 = smov [#allocation12]  }
  0x13   : > { %p4165_p3 = pnand %p3197_p0, %p276_p2  ;;  %s311_s22 = sshll.u32 %s3999_s21, 4  ;;  %s312_s22 = int_to_ptr.vmem [resolvable:$true] %s311_s22 }
  0x14   : > { %s333_s24 = sshll.u32 %s4000_s23, 4  ;;  %s4001_s26 = smov [#allocation15]   ;;  %s4178_s24 = int_to_ptr.vmem [resolvable:$true] %s333_s24 }
  0x15   : > { %s5544_s20 = scalar_select %p4165_p3, 1, 0 }
  0x16   : > { %p3328_p5 = pneg %p4165_p3  ;;  %s4180_s27 = sshll.u32 %s4001_s26, 4  ;;  %s356_s27 = int_to_ptr.vmem [resolvable:$true] %s4180_s27 }
  0x17   : > { %s3691_s29 = scalar_lea.vmem %s290_s18, 32  ;;  %p3699_p11 = scmp.lt.s32.totalorder %s290_s18, %s290_s18 }
  0x18   : > { %p4174_p6 = pnand %p3328_p5, %p5491_p1  ;;  %p3692_p8 = scmp.ne.s32.totalorder %s290_s18, %s3691_s29 }
  0x19   : > { %p3700_p12 = scmp.lt.s32.totalorder %s3691_s29, %s3691_s29 }
  0x1a   : > { %p4184_p7 = pneg %p4174_p6 }
  0x1b   : > { %p3701_p13 = por %p3700_p12, %p3699_p11 }
  0x1c   : > { %p3694_p9 = pnand %p3692_p8, %p4184_p7 }
  0x1e   : > { %p3695_p10 = pneg %p3694_p9 }
  0x20   : > { %p3702_p0 = pnand %p3701_p13, %p3695_p10 }
  0x22   : > { %3705 = shalt.err (!%p3702_p0)
}
  0x23   : > { %s5547_s1 = sld [smem:[#allocation46_spill]]  ;;  %s3717_s12 = scalar_lea.vmem %s312_s22, 128 }
  0x24   : > { %p3718_p2 = scmp.ne.s32.totalorder %s312_s22, %s3717_s12  ;;  %p3725_p1 = scmp.lt.s32.totalorder %s312_s22, %s312_s22 }
  0x25   : > { %p3726_p8 = scmp.lt.s32.totalorder %s3717_s12, %s3717_s12 }
  0x26   : > { %p3720_p5 = pnand %p3718_p2, %p4184_p7 }
  0x27   : > { %p3727_p9 = por %p3726_p8, %p3725_p1 }
  0x28   : > { %p3721_p4 = pneg %p3720_p5 }
  0x29   : > { %3331 = dma.hbm_to_vmem [thread:$0]  (!%p4174_p6), %s5547_s1, 32, %s290_s18, [#allocation7]  }
  0x2a   : > { %p3728_p3 = pnand %p3727_p9, %p3721_p4 }
  0x2c   : > { %3731 = shalt.err (!%p3728_p3)
}
  0x2d   : > { %s5548_s3 = sld [smem:[#allocation48_spill]]  ;;  %s3743_s18 = scalar_lea.vmem %s4178_s24, 128 }
  0x2e   : > { %p3744_p10 = scmp.ne.s32.totalorder %s4178_s24, %s3743_s18  ;;  %p3751_p13 = scmp.lt.s32.totalorder %s4178_s24, %s4178_s24 }
  0x2f   : > { %p3752_p1 = scmp.lt.s32.totalorder %s3743_s18, %s3743_s18 }
  0x30   : > { %p3746_p11 = pnand %p3744_p10, %p4184_p7 }
  0x31   : > { %p3753_p4 = por %p3752_p1, %p3751_p13 }
  0x32   : > { %p3747_p12 = pneg %p3746_p11 }
  0x33   : > { %3337 = dma.hbm_to_vmem [thread:$0]  (!%p4174_p6), %s5548_s3, 128, %s312_s22, [#allocation10]  }
  0x34   : > { %p3754_p3 = pnand %p3753_p4, %p3747_p12 }
  0x36   : > { %3757 = shalt.err (!%p3754_p3)
}
  0x37   : > { %s5549_s5 = sld [smem:[#allocation50_spill]]  ;;  %s4002_s22 = smov [#allocation8]  }
  0x38   : > { %s300_s29 = sshll.u32 %s4002_s22, 4  ;;  %s3769_s30 = scalar_lea.vmem %s356_s27, 128  ;;  %s301_s29 = int_to_ptr.vmem [resolvable:$true] %s300_s29 }
  0x39   : > { %p3770_p0 = scmp.ne.s32.totalorder %s356_s27, %s3769_s30  ;;  %p3777_p8 = scmp.lt.s32.totalorder %s356_s27, %s356_s27 }
  0x3a   : > { %p3778_p9 = scmp.lt.s32.totalorder %s3769_s30, %s3769_s30 }
  0x3b   : > { %p3772_p2 = pnand %p3770_p0, %p4184_p7 }
  0x3c   : > { %p3779_p10 = por %p3778_p9, %p3777_p8 }
  0x3d   : > { %3343 = dma.hbm_to_vmem [thread:$0]  (!%p4174_p6), %s5549_s5, 128, %s4178_s24, [#allocation13]  }
  0x3e   : > { %p3773_p5 = pneg %p3772_p2 }
  0x40   : > { %p3780_p11 = pnand %p3779_p10, %p3773_p5 }
  0x42   : > { %3783 = shalt.err (!%p3780_p11)
}
  0x43   : > { %3349 = dma.hbm_to_vmem [thread:$0]  (!%p4174_p6), %s5487_s7, 128, %s356_s27, [#allocation16]  }
  0x44   : > { %s3795_s24 = scalar_lea.vmem %s301_s29, 128  ;;  %p3803_p4 = scmp.lt.s32.totalorder %s301_s29, %s301_s29 }
  0x45   : > { %p3796_p12 = scmp.ne.s32.totalorder %s301_s29, %s3795_s24  ;;  %p3804_p3 = scmp.lt.s32.totalorder %s3795_s24, %s3795_s24 }
  0x47   : > { %p3798_p13 = pnand %p3796_p12, %p4184_p7  ;;  %p3805_p0 = por %p3804_p3, %p3803_p4 }
  0x49   : > { %p3799_p1 = pneg %p3798_p13 }
  0x4b   : > { %p3806_p2 = pnand %p3805_p0, %p3799_p1 }
  0x4d   : > { %3809 = shalt.err (!%p3806_p2)
}
  0x4e   : > { %s5550_s2 = sld [smem:[#allocation47_spill]]  ;;  %s4003_s18 = smov [#allocation11]  }
  0x4f   : > { %s322_s27 = sshll.u32 %s4003_s18, 4  ;;  %s4004_s23 = smov [#allocation14]   ;;  %s323_s27 = int_to_ptr.vmem [resolvable:$true] %s322_s27 }
  0x50   : > { %s344_s26 = sshll.u32 %s4004_s23, 4  ;;  %s3821_s22 = scalar_lea.vmem %s323_s27, 128  ;;  %s345_s26 = int_to_ptr.vmem [resolvable:$true] %s344_s26 }
  0x51   : > { %p3822_p5 = scmp.ne.s32.totalorder %s323_s27, %s3821_s22  ;;  %p3829_p10 = scmp.lt.s32.totalorder %s323_s27, %s323_s27 }
  0x52   : > { %p3830_p11 = scmp.lt.s32.totalorder %s3821_s22, %s3821_s22 }
  0x53   : > { %p3824_p8 = pnand %p3822_p5, %p4184_p7 }
  0x54   : > { %3334 = dma.hbm_to_vmem [thread:$0]  (!%p4174_p6), %s5550_s2, 128, %s301_s29, [#allocation7]  }
  0x55   : > { %p3825_p9 = pneg %p3824_p8  ;;  %p3831_p12 = por %p3830_p11, %p3829_p10 }
  0x57   : > { %p3832_p13 = pnand %p3831_p12, %p3825_p9 }
  0x59   : > { %3835 = shalt.err (!%p3832_p13)
}
  0x5a   : > { %s5551_s4 = sld [smem:[#allocation49_spill]]  ;;  %s3847_s29 = scalar_lea.vmem %s345_s26, 128 }
  0x5b   : > { %p3848_p1 = scmp.ne.s32.totalorder %s345_s26, %s3847_s29  ;;  %p3855_p0 = scmp.lt.s32.totalorder %s345_s26, %s345_s26 }
  0x5c   : > { %p3856_p2 = scmp.lt.s32.totalorder %s3847_s29, %s3847_s29 }
  0x5d   : > { %p3850_p4 = pnand %p3848_p1, %p4184_p7 }
  0x5e   : > { %p3857_p5 = por %p3856_p2, %p3855_p0 }
  0x5f   : > { %p3851_p3 = pneg %p3850_p4 }
  0x60   : > { %3340 = dma.hbm_to_vmem [thread:$0]  (!%p4174_p6), %s5551_s4, 128, %s323_s27, [#allocation10]  }
  0x61   : > { %p3858_p8 = pnand %p3857_p5, %p3851_p3 }
  0x63   : > { %3861 = shalt.err (!%p3858_p8)
}
  0x64   : > { %3346 = dma.hbm_to_vmem [thread:$0]  (!%p4174_p6), %s5486_s6, 128, %s345_s26, [#allocation13]  }
  0x65   : > { %s4005_s17 = smov [#allocation17]  }
  0x66   : > { %s365_s21 = sshll.u32 %s4005_s17, 4  ;;  %s366_s21 = int_to_ptr.vmem [resolvable:$true] %s365_s21 }
  0x67   : > { %s3873_s18 = scalar_lea.vmem %s366_s21, 256  ;;  %p3881_p12 = scmp.lt.s32.totalorder %s366_s21, %s366_s21 }
  0x68   : > { %p3874_p9 = scmp.ne.s32.totalorder %s366_s21, %s3873_s18  ;;  %p3882_p13 = scmp.lt.s32.totalorder %s3873_s18, %s3873_s18 }
  0x6a   : > { %p3876_p10 = pnand %p3874_p9, %p4184_p7  ;;  %p3883_p1 = por %p3882_p13, %p3881_p12 }
  0x6c   : > { %p3877_p11 = pneg %p3876_p10 }
  0x6e   : > { %p3884_p4 = pnand %p3883_p1, %p3877_p11 }
  0x70   : > { %3887 = shalt.err (!%p3884_p4)
}
  0x71   : > { %s4006_s27 = smov 128   ;;  %s4007_s28 = smov 8  }
  0x72   : > { %3352 = dma.hbm_to_vmem [thread:$0]  (!%p4174_p6), %s5488_s8, 256, %s366_s21, [#allocation16], %s4006_s27, %s4006_s27, %s4007_s28  }
  0x73   : > { %s3196_s22 = sadd.s32 4294967294, %s3996_s16   ;;  %s4252_s30 = sadd.s32 1, %s3996_s16  }
  0x74   : > { %s34_s11 = ssub.s32 %s3996_s16, %s4252_s30  ;;  %s37_s29 = sadd.s32 1, %s3992_s15 }
  0x75   : > { %p35_p7 = scmp.eq.s32.totalorder %s34_s11, 0  ;;  %p44_p3 = scmp.ne.s32.totalorder %s3992_s15, %s3988_s14 }
  0x76   : > { %p45_p0 = scmp.eq.s32.totalorder %s3996_s16, 0  ;;  %p50_p2 = scmp.ne.s32.totalorder %s3988_s14, %s3984_s13 }
  0x77   : > { %s4263_s12 = scalar_select %p35_p7, %s3992_s15, %s37_s29  }
  0x78   : > { %p4265_p5 = por %p45_p0, %p44_p3  ;;  %p5553_p8 = scmp.eq.s32.totalorder %s4160_s19, 0 }
  0x79   : > { %p263_p9 = scmp.eq.s32.totalorder %s4160_s19, 1  ;;  %p269_p10 = scmp.eq.s32.totalorder %s3196_s22, 1 }
  0x7a   : > { %p4271_p6 = por %p5553_p8, %p50_p2  ;;  %p3369_p11 = scmp.lt.s32.totalorder %s3996_s16, 2 }
  0x7b   : > { %s382_s17 = sand.u32 1, %s3992_s15   ;;  %p4278_p12 = por %p263_p9, %p44_p3 }
  0x7c   : > { %s5554_s24 = scalar_select %p4271_p6, 1, 0 }
  0x7d   : > { %s5555_s21 = scalar_select %p4278_p12, 1, 0 }
  0x7e   : > { %p4282_p13 = por %p269_p10, %p50_p2  ;;  %s3207_s27 = sshll.u32 %s382_s17, 4 }
  0x7f   : > { %s3248_s28 = sshll.u32 %s3996_s16, 8  ;;  %s386_s22 = scalar_lea.vmem [#allocation3], %s3207_s27 }
  0x80   : > { %s5556_s18 = scalar_select %p4282_p13, 1, 0 }
  0x81   : > { %s4290_s11 = scalar_lea.hbm %s5480_s0, %s3248_s28  ;;  %s394_s29 = sshll.u32 %s386_s22, 4  ;;  %s395_s29 = int_to_ptr.vmem [resolvable:$true] %s394_s29 }
  0x82   : > { %p4294_p1 = pnand %p3369_p11, %p4265_p5  ;;  %s383_s2 = scalar_lea.sflag [#allocation4], %s382_s17 }
  0x83   : > { %s3888_s3 = scalar_lea.hbm %s4290_s11, 256  ;;  %s3893_s26 = scalar_lea.hbm %s5480_s0, 512 }
  0x84   : > { %p3889_p4 = scmp.ne.s32.totalorder %s4290_s11, %s3888_s3  ;;  %p3890_p7 = pneg %p4294_p1 }
  0x85   : > { %p3894_p2 = scmp.lt.s32.totalorder %s4290_s11, %s5480_s0  ;;  %p3895_p5 = scmp.lt.s32.totalorder %s3893_s26, %s3888_s3 }
  0x86   : > { %p3891_p3 = pnand %p3890_p7, %p3889_p4 }
  0x87   : > { %p3896_p8 = por %p3895_p5, %p3894_p2 }
  0x88   : > { %p3892_p0 = pneg %p3891_p3 }
  0x8a   : > { %p3897_p9 = pnand %p3896_p8, %p3892_p0 }
  0x8c   : > { %3900 = shalt.err (!%p3897_p9)
}
  0x8d   : > { %s3901_s25 = scalar_lea.vmem %s395_s29, 256  ;;  %s4008_s17 = smov [#allocation3]  }
  0x8e   : > { %p3902_p10 = scmp.ne.s32.totalorder %s395_s29, %s3901_s25  ;;  %s3906_s4 = sshll.u32 %s4008_s17, 4  ;;  %s3907_s4 = int_to_ptr.vmem [resolvable:$false] %s3906_s4 }
  0x8f   : > { %s3908_s5 = scalar_lea.vmem %s3907_s4, 512  ;;  %p3909_p4 = scmp.lt.s32.totalorder %s395_s29, %s3907_s4 }
  0x90   : > { %p3904_p11 = pnand %p3902_p10, %p3890_p7  ;;  %p3910_p3 = scmp.lt.s32.totalorder %s3908_s5, %s3901_s25 }
  0x92   : > { %p3905_p13 = pneg %p3904_p11  ;;  %p3911_p12 = por %p3910_p3, %p3909_p4 }
  0x94   : > { %p3912_p6 = pnand %p3911_p12, %p3905_p13 }
  0x96   : > { %3915 = shalt.err (!%p3912_p6)
}
  0x97   : > { %3356 = dma.hbm_to_vmem [thread:$0]  (!%p4294_p1), %s4290_s11, 256, %s395_s29, %s383_s2  }
  0x98   : > { %p5558_p0 = scmp.ne.s32.totalorder %s5544_s20, 0 }
  0x9a   : > { %403 = sbr.rel (%p5558_p0) target bundleno = 3442 (0xd72), region = 60 }
  0x9f   : > { %s4315_s3 = sand.u32 1, %s3988_s14   ;;  %p5559_p7 = scmp.ne.s32.totalorder %s5554_s24, 0 }
  0xa0   : > { %s3211_s28 = sshll.u32 %s4315_s3, 4  ;;  %s406_s23 = scalar_lea.sflag [#allocation4], %s4315_s3 }
  0xa1   : > { %s4319_s4 = scalar_lea.vmem [#allocation3], %s3211_s28 }
  0xa2   : > { %3959 = dma.done.wait (%p5559_p7), %s406_s23, 256  }
  0xa3   : > { %3961 = vsyncadd (%p5559_p7), %s406_s23, 4294967040  ;;  %p5560_p6 = scmp.eq.s32.totalorder %s4160_s19, 0 }
  0xa5   : > { %3963 = dma.done.wait (%p5560_p6), [#allocation7], 160   ;;  %p5561_p12 = pmov %p5560_p6 }
  0xa6   : > { %p5562_p13 = pmov %p5560_p6 }
  0xa7   : > { %3965 = vsyncadd (%p5561_p12), [#allocation7], 4294967136 }
  0xa8   : > { %3967 = dma.done.wait (%p5562_p13), [#allocation10], 256   ;;  %p5563_p1 = pmov %p5560_p6 }
  0xaa   : > { %3969 = vsyncadd (%p5563_p1), [#allocation10], 4294967040  ;;  %p5564_p2 = pmov %p5563_p1 }
  0xab   : > { %p5565_p5 = pmov %p5563_p1 }
  0xac   : > { %3971 = dma.done.wait (%p5564_p2), [#allocation13], 256  }
  0xad   : > { %3973 = vsyncadd (%p5565_p5), [#allocation13], 4294967040  ;;  %p5566_p8 = pmov %p5563_p1 }
  0xae   : > { %p5567_p9 = pmov %p5563_p1 }
  0xaf   : > { %3975 = dma.done.wait (%p5566_p8), [#allocation16], 384  }
  0xb0   : > { %3977 = vsyncadd (%p5567_p9), [#allocation16], 4294966912  ;;  %v5511_v0 = vmov 3   ;;  %v5496_v1 = vmov 1   ;;  %v488_v2 = vlaneseq  ;;  %v5513_v3 = vmov 0.0   ;;  %v4345_v5 = vld [vmem:[#allocation9] sm:$0xff] }
  0xb1   : > { %3497 = vset.pattern.permute.xlu1 %v5511_v0  ;;  %3495 = vset.pattern.permute.xlu0 %v5496_v1  ;;  %v4347_v6 = vld [vmem:[#allocation6] sm:$0x3]  ;;  %v5503_v11 = vmov 5   ;;  %v5495_v12 = vmov 2   ;;  %s4014_s1 = smov 113   ;;  %v5507_v20 = vmov 4  }
  0xb2   : > { %3262 = vmatprep.subr.mxu0 %v5513_v3  ;;  %3267 = vmatprep.subr.mxu1 %v5513_v3  ;;  %v489_v4 = vshrl.u32 %v488_v2, 7  ;;  %v511_v7 = vadd.s32 1, %v4347_v6  ;;  %v496_v8 = vadd.s32 4294967295, %v4347_v6  ;;  %v5501_v22 = vmov 7   ;;  %s4017_s2 = smov 127   ;;  %s4019_s5 = smov 1  }
  0xb3   : > { %647 = vperm.xlu1 %3497, %v4345_v5   ;;  %574 = vperm.xlu0 %3495, %v4345_v5   ;;  %v5509_v23 = vmov 6   ;;  %v5499_v24 = vmov 8   ;;  %s4021_s20 = smov 15   ;;  %s4022_s24 = smov 111   ;;  %v5497_v25 = vmov 0   ;;  %v5505_v26 = vmov 9  }
  0xb4   : > { %v4353_v9 = vsub.s32 0, %v489_v4  ;;  %v4355_v10 = vsub.s32 1, %v489_v4  ;;  %vm512_vm0 = vcmp.ge.s32.totalorder %v511_v7, 0  ;;  %vm513_vm1 = vcmp.lt.s32.totalorder %v511_v7, 16  ;;  %s4023_s11 = smov 17   ;;  %v4393_v27 = vld [vmem:[%s4319_s4] sm:$0xff] }
  0xb5   : > { %vm497_vm2 = vcmp.ge.s32.totalorder %v496_v8, 0  ;;  %vm498_vm3 = vcmp.lt.s32.totalorder %v496_v8, 16  ;;  %vm514_vm4 = vmand %vm512_vm0, %vm513_vm1  ;;  %v4398_v30 = vld [vmem:[%s4319_s4 + $0x8] sm:$0xff]  ;;  %s4026_s29 = smov 126   ;;  %s4027_s26 = smov 112   ;;  %vm602_vm6 = vcmask 924672  }
  0xb6   : > { %v3223_v13 = vsel %vm514_vm4, 1.0, %v5513_v3  ;;  %vm499_vm5 = vmand %vm497_vm2, %vm498_vm3  ;;  %s4028_s27 = smov 110   ;;  %s4029_s22 = smov 96   ;;  %vm589_vm7 = vcmask 1039360   ;;  %vm694_vm8 = vcmask 7168   ;;  %vm731_vm9 = vcmask 121856  }
  0xb7   : > { %3499 = vset.pattern.permute.xlu1 %v5503_v11  ;;  %3496 = vset.pattern.permute.xlu0 %v5495_v12  ;;  %v521_v14 = vrot.slane %v3223_v13, %v4353_v9  ;;  %v525_v15 = vrot.slane %v3223_v13, %v4355_v10  ;;  %v3222_v16 = vsel %vm499_vm5, 1.0, %v5513_v3  ;;  %s4030_s25 = smov 95   ;;  %vm793_vm10 = vcmask 138240   ;;  %s4031_s17 = smov 94  }
  0xb8   : > { %703 = vperm.xlu1 %3499, %v4345_v5   ;;  %611 = vperm.xlu0 %3496, %v4345_v5   ;;  %v506_v17 = vrot.slane %v3222_v16, %v4353_v9  ;;  %v510_v18 = vrot.slane %v3222_v16, %v4355_v10  ;;  %vm557_vm11 = vcmask 908288   ;;  %vm626_vm12 = vcmask 1031168   ;;  %s4033_s28 = smov 97   ;;  %s4034_s23 = smov 98  }
  0xb9   : > { %v4367_v19 = vpack.i.bf16 %v525_v15, %v521_v14  ;;  %vm662_vm13 = vcmask 916480   ;;  %vm718_vm14 = vcmask 900096   ;;  %vm755_vm15 = vcmask 785408   ;;  %p5630_p11 = scmp.ne.s32.totalorder %s5555_s21, 0 }
  0xba   : > { %v4371_v21 = vpack.i.bf16 %v510_v18, %v506_v17  ;;  %vm780_vm0 = vcmask 777216   ;;  %vm817_vm1 = vcmask 769024   ;;  %vm4032_vm2 = vmmov 0  }
  0xbc   : > { %3501 = vrot.lane.b32.xlu1 %v4367_v19, %s4014_s1  ;;  %3498 = vset.pattern.permute.xlu0 %v5507_v20  ;;  %s4036_s1 = smov 2  }
  0xbd   : > { %672 = vperm.xlu0 %3498, %v4345_v5   ;;  %3521 = vset.pattern.permute.xlu1 %v5501_v22 }
  0xc0   : > { %3506 = vrot.lane.b32.xlu1 %v4371_v21, %s4017_s2 }
  0xc1   : > { %3515 = vset.pattern.permute.xlu0 %v5509_v23 }
  0xc2   : > { %740 = vperm.xlu0 %3515, %v4345_v5  }
  0xc4   : > { %3511 = vrot.lane.b32.xlu1 %v4367_v19, %s4019_s5  ;;  %s4038_s5 = smov 14  }
  0xc6   : > { %3522 = vset.pattern.permute.xlu0 %v5499_v24 }
  0xc7   : > { %802 = vperm.xlu0 %3522, %v4345_v5  }
  0xc8   : > { %3517 = vrot.lane.b32.xlu1 %v4371_v21, %s4021_s20  ;;  %s4039_s20 = smov 114  }
  0xcb   : > { %3530 = vrot.lane.b32.xlu0 %v4371_v21, %s4022_s24 }
  0xcc   : > { %765 = vperm.xlu1 %3521, %v4345_v5   ;;  %3535 = vset.pattern.permute.xlu0 %v5496_v1 }
  0xd0   : > { %3524 = vrot.lane.b32.xlu1 %v4367_v19, %s4023_s11 }
  0xd1   : > { %3528 = vset.pattern.permute.xlu1 %v5497_v25 }
  0xd4   : > { %567 = vperm.xlu1 %3528, %v4345_v5  }
  0xd8   : > { %3534 = vset.pattern.permute.xlu1 %v5505_v26 }
 0x12e   : > { %v4395_v28 = vpop.permute.xlu1 %647  ;;  %v575_v29 = vpop.permute.xlu0 %574 }
 0x12f   : > { %v577_v31 = vmul.f32 0.0, %v575_v29  ;;  %v578_v32 = vmul.f32 %v575_v29, %v4393_v27  ;;  %v579_v33 = vmul.f32 %v575_v29, %v4398_v30 }
 0x131   : > { %583 = vrot.lane.b32.xlu1 %v577_v31, %s4017_s2  ;;  %585 = vrot.lane.b32.xlu0 %v578_v32, %s4017_s2 }
 0x133   : > { %v4404_v34 = vpop.permute.xlu1 %703  ;;  %v4409_v38 = vpop.permute.xlu0 %611 }
 0x135   : > { %587 = vrot.lane.b32.xlu1 %v579_v33, %s4017_s2 }
 0x137   : > { %v3502_v35 = vpop.permute.xlu1 %3501 }
 0x138   : > { %v4407_v36 = vunpack.i.h.bf16 %v3502_v35  ;;  %v3503_v37 = vunpack.i.l.bf16 %v3502_v35  ;;  %v673_v47 = vpop.permute.xlu0 %672 }
 0x139   : > { %v675_v52 = vmul.f32 %v673_v47, %v4393_v27  ;;  %v676_v58 = vmul.f32 %v673_v47, %v4398_v30 }
 0x13a   : > { %5568 = vst [vmem:[#allocation25_spill] sm:$0xff] %v4407_v36  ;;  %v4411_v39 = vmul.f32 0.0, %v3503_v37  ;;  %v4419_v44 = vmul.f32 %v4407_v36, %v4398_v30  ;;  %v4468_v16 = vsel %vm602_vm6, %v3503_v37, %v4407_v36 }
 0x13b   : > { %v3507_v40 = vpop.permute.xlu1 %3506  ;;  %5576 = vst [vmem:[#allocation33_spill] sm:$0xff] %v4468_v16  ;;  %v4481_v32 = vmul.f32 %v4468_v16, %v4393_v27 }
 0x13c   : > { %5569 = vst [vmem:[#allocation26_spill] sm:$0xff] %v4411_v39  ;;  %v4413_v41 = vunpack.i.h.bf16 %v3507_v40  ;;  %v3508_v42 = vunpack.i.l.bf16 %v3507_v40  ;;  %v614_v43 = vmul.f32 %v4409_v38, %v4411_v39  ;;  %v616_v49 = vmul.f32 %v4409_v38, %v4419_v44 }
 0x13d   : > { %v741_v60 = vpop.permute.xlu0 %740 }
 0x13e   : > { %5570 = vst [vmem:[#allocation27_spill] sm:$0xff] %v4413_v41  ;;  %v4421_v45 = vmul.f32 0.0, %v3508_v42  ;;  %620 = vrot.lane.b32.xlu0 %v614_v43, %s4026_s29  ;;  %v4432_v51 = vmul.f32 %v4413_v41, %v4398_v30  ;;  %v4472_v17 = vsel %vm589_vm7, %v3508_v42, %v4413_v41  ;;  %v615_v43 = vmul.f32 %v4409_v38, %v4481_v32 }
 0x13f   : > { %v3512_v46 = vpop.permute.xlu1 %3511  ;;  %5577 = vst [vmem:[#allocation34_spill] sm:$0xff] %v4472_v17  ;;  %v4485_v33 = vmul.f32 %v4472_v17, %v4393_v27 }
 0x140   : > { %5571 = vst [vmem:[#allocation28_spill] sm:$0xff] %v4421_v45  ;;  %v4424_v48 = vunpack.i.l.bf16 %v3512_v46  ;;  %v650_v50 = vmul.f32 %v4395_v28, %v4421_v45  ;;  %v3514_v54 = vunpack.i.h.bf16 %v3512_v46  ;;  %v652_v56 = vmul.f32 %v4395_v28, %v4432_v51 }
 0x141   : > { %v651_v46 = vmul.f32 %v4395_v28, %v4485_v33 }
 0x142   : > { %5572 = vst [vmem:[#allocation29_spill] sm:$0xff] %v4424_v48  ;;  %624 = vrot.lane.b32.xlu0 %v616_v49, %s4026_s29  ;;  %656 = vrot.lane.b32.xlu1 %v650_v50, %s4027_s26  ;;  %v4443_v57 = vmul.f32 %v4424_v48, %v4393_v27  ;;  %v4452_v61 = vmul.f32 0.0, %v3514_v54  ;;  %v4488_v35 = vsel %vm694_vm8, %v4424_v48, %v3514_v54  ;;  %v803_v42 = vpop.permute.xlu0 %802 }
 0x143   : > { %v3518_v53 = vpop.permute.xlu1 %3517  ;;  %5579 = vst [vmem:[#allocation36_spill] sm:$0xff] %v4488_v35  ;;  %v4502_v47 = vmul.f32 %v4488_v35, %v4398_v30 }
 0x144   : > { %v4437_v55 = vunpack.i.l.bf16 %v3518_v53  ;;  %5574 = vst [vmem:[#allocation31_spill] sm:$0xff] %v4452_v61  ;;  %v3520_v62 = vunpack.i.h.bf16 %v3518_v53  ;;  %v706_v63 = vmul.f32 %v4404_v34, %v4443_v57  ;;  %v708_v8 = vmul.f32 %v4404_v34, %v4452_v61 }
 0x145   : > { %v707_v28 = vmul.f32 %v4404_v34, %v4502_v47 }
 0x146   : > { %5573 = vst [vmem:[#allocation30_spill] sm:$0xff] %v4437_v55  ;;  %679 = vrot.lane.b32.xlu0 %v675_v52, %s4022_s24  ;;  %660 = vrot.lane.b32.xlu1 %v652_v56, %s4027_s26  ;;  %v4450_v59 = vmul.f32 %v4437_v55, %v4393_v27  ;;  %v4459_v7 = vmul.f32 0.0, %v3520_v62  ;;  %v4505_v49 = vsel %vm731_vm9, %v4437_v55, %v3520_v62 }
 0x147   : > { %v766_v4 = vpop.permute.xlu1 %765  ;;  %5580 = vst [vmem:[#allocation37_spill] sm:$0xff] %v4505_v49  ;;  %v4518_v52 = vmul.f32 %v4505_v49, %v4398_v30 }
 0x148   : > { %v743_v2 = vmul.f32 %v741_v60, %v4450_v59  ;;  %5575 = vst [vmem:[#allocation32_spill] sm:$0xff] %v4459_v7  ;;  %v768_v13 = vmul.f32 %v766_v4, %v4393_v27  ;;  %v745_v15 = vmul.f32 %v741_v60, %v4459_v7  ;;  %v770_v18 = vmul.f32 0.0, %v766_v4 }
 0x149   : > { %v769_v29 = vmul.f32 %v766_v4, %v4398_v30  ;;  %v744_v56 = vmul.f32 %v741_v60, %v4518_v52 }
 0x14a   : > { %712 = vrot.lane.b32.xlu0 %v706_v63, %s4028_s27  ;;  %681 = vrot.lane.b32.xlu1 %v676_v58, %s4022_s24  ;;  %v3531_v63 = vpop.permute.xlu0 %3530 }
 0x14b   : > { %v3525_v14 = vpop.permute.xlu1 %3524 }
 0x14c   : > { %v4477_v31 = vunpack.i.l.bf16 %v3525_v14  ;;  %v3527_v40 = vunpack.i.h.bf16 %v3525_v14 }
 0x14e   : > { %716 = vrot.lane.b32.xlu0 %v708_v8, %s4028_s27  ;;  %749 = vrot.lane.b32.xlu1 %v743_v2, %s4029_s22  ;;  %5578 = vst [vmem:[#allocation35_spill] sm:$0xff] %v4477_v31  ;;  %v4494_v37 = vmul.f32 %v4477_v31, %v4393_v27  ;;  %v4512_v38 = vsel %vm793_vm10, %v4477_v31, %v3527_v40  ;;  %v4520_v53 = vmul.f32 0.0, %v3527_v40 }
 0x14f   : > { %5581 = vst [vmem:[#allocation38_spill] sm:$0xff] %v4512_v38  ;;  %v4526_v54 = vmul.f32 %v4512_v38, %v4398_v30  ;;  %v568_v62 = vpop.permute.xlu1 %567 }
 0x150   : > { %v805_v50 = vmul.f32 %v803_v42, %v4494_v37  ;;  %5582 = vst [vmem:[#allocation39_spill] sm:$0xff] %v4520_v53  ;;  %v807_v58 = vmul.f32 %v803_v42, %v4520_v53 }
 0x151   : > { %v806_v34 = vmul.f32 %v803_v42, %v4526_v54  ;;  %v3532_v42 = vunpack.i.l.bf16 %v3531_v63 }
 0x152   : > { %774 = vrot.lane.b32.xlu0 %v768_v13, %s4030_s25  ;;  %753 = vrot.lane.b32.xlu1 %v745_v15, %s4029_s22 }
 0x156   : > { %778 = vrot.lane.b32.xlu0 %v770_v18, %s4030_s25  ;;  %776 = vrot.lane.b32.xlu1 %v769_v29, %s4030_s25 }
 0x15a   : > { %622 = vrot.lane.b32.xlu1 %v615_v43, %s4026_s29  ;;  %658 = vrot.lane.b32.xlu0 %v651_v46, %s4027_s26  ;;  %v4536_v43 = vunpack.i.h.bf16 %v3531_v63 }
 0x15c   : > { %5583 = vst [vmem:[#allocation40_spill] sm:$0xff] %v4536_v43 }
 0x15e   : > { %714 = vrot.lane.b32.xlu1 %v707_v28, %s4028_s27  ;;  %811 = vrot.lane.b32.xlu0 %v805_v50, %s4031_s17  ;;  %v4540_v28 = vsel %vm557_vm11, %v3532_v42, %v4536_v43 }
 0x15f   : > { %5584 = vst [vmem:[#allocation41_spill] sm:$0xff] %v4540_v28 }
 0x162   : > { %827 = vperm.xlu1 %3534, %v4345_v5   ;;  %751 = vrot.lane.b32.xlu0 %v744_v56, %s4029_s22  ;;  %v4542_v56 = vmul.f32 0.0, %v3532_v42  ;;  %v4554_v42 = vmul.f32 %v4536_v43, %v4398_v30 }
 0x164   : > { %5585 = vst [vmem:[#allocation42_spill] sm:$0xff] %v4542_v56  ;;  %v570_v1 = vmul.f32 %v568_v62, %v4542_v56 }
 0x166   : > { %813 = vrot.lane.b32.xlu1 %v806_v34, %s4031_s17  ;;  %815 = vrot.lane.b32.xlu0 %v807_v58, %s4031_s17  ;;  %v4546_v34 = vmul.f32 %v4540_v28, %v4393_v27 }
 0x167   : > { %3541 = vset.pattern.permute.xlu1 %v5495_v12 }
 0x168   : > { %v571_v25 = vmul.f32 %v568_v62, %v4546_v34 }
 0x1a3   : > { %v584_v2 = vpop.permute.xlu1 %583  ;;  %v586_v4 = vpop.permute.xlu0 %585 }
 0x1a4   : > { %v590_v22 = vsel %vm589_vm7, %v584_v2, %v586_v4  ;;  %v572_v2 = vmul.f32 %v568_v62, %v4554_v42 }
 0x1a5   : > { %v595_v26 = vadd.f32 %v590_v22, %v570_v1 }
 0x1a7   : > { %v588_v8 = vpop.permute.xlu1 %587 }
 0x1a8   : > { %v591_v11 = vsel %vm589_vm7, %v586_v4, %v588_v8  ;;  %v597_v1 = vadd.f32 %v588_v8, %v572_v2 }
 0x1a9   : > { %v596_v20 = vadd.f32 %v591_v11, %v571_v25 }
 0x1b0   : > { %v621_v60 = vpop.permute.xlu0 %620 }
 0x1b4   : > { %v625_v13 = vpop.permute.xlu0 %624  ;;  %v657_v14 = vpop.permute.xlu1 %656 }
 0x1b5   : > { %v634_v25 = vadd.f32 %v625_v13, %v597_v1 }
 0x1b8   : > { %v680_v15 = vpop.permute.xlu0 %679  ;;  %v661_v18 = vpop.permute.xlu1 %660 }
 0x1bc   : > { %v713_v29 = vpop.permute.xlu0 %712  ;;  %v682_v40 = vpop.permute.xlu1 %681 }
 0x1bd   : > { %v683_v22 = vsel %vm557_vm11, %v680_v15, %v682_v40 }
 0x1c0   : > { %v717_v46 = vpop.permute.xlu0 %716  ;;  %v750_v50 = vpop.permute.xlu1 %749 }
 0x1c4   : > { %v775_v58 = vpop.permute.xlu0 %774  ;;  %v754_v12 = vpop.permute.xlu1 %753 }
 0x1c8   : > { %v779_v63 = vpop.permute.xlu0 %778  ;;  %v777_v24 = vpop.permute.xlu1 %776 }
 0x1cc   : > { %v623_v23 = vpop.permute.xlu1 %622  ;;  %v659_v0 = vpop.permute.xlu0 %658 }
 0x1cd   : > { %v627_v3 = vsel %vm626_vm12, %v621_v60, %v623_v23  ;;  %v628_v28 = vsel %vm626_vm12, %v623_v23, %v625_v13  ;;  %v663_v4 = vsel %vm662_vm13, %v657_v14, %v659_v0  ;;  %v664_v35 = vsel %vm662_vm13, %v659_v0, %v661_v18 }
 0x1ce   : > { %v632_v38 = vadd.f32 %v627_v3, %v595_v26  ;;  %v633_v49 = vadd.f32 %v628_v28, %v596_v20  ;;  %v670_v23 = vadd.f32 %v661_v18, %v634_v25 }
 0x1d0   : > { %v668_v31 = vadd.f32 %v663_v4, %v632_v38  ;;  %v669_v43 = vadd.f32 %v664_v35, %v633_v49  ;;  %v812_v41 = vpop.permute.xlu0 %811  ;;  %v715_v60 = vpop.permute.xlu1 %714  ;;  %v689_v0 = vadd.f32 %v682_v40, %v670_v23 }
 0x1d1   : > { %v719_v26 = vsel %vm718_vm14, %v713_v29, %v715_v60  ;;  %v720_v62 = vsel %vm718_vm14, %v715_v60, %v717_v46 }
 0x1d2   : > { %v687_v11 = vadd.f32 %v680_v15, %v668_v31  ;;  %v688_v36 = vadd.f32 %v683_v22, %v669_v43  ;;  %v726_v49 = vadd.f32 %v720_v62, %v689_v0  ;;  %v781_v43 = vsel %vm780_vm0, %v775_v58, %v777_v24 }
 0x1d4   : > { %v724_v3 = vadd.f32 %v713_v29, %v687_v11  ;;  %v752_v20 = vpop.permute.xlu0 %751  ;;  %v725_v38 = vadd.f32 %v719_v26, %v688_v36  ;;  %v782_v29 = vsel %vm780_vm0, %v777_v24, %v779_v63 }
 0x1d5   : > { %v756_v35 = vsel %vm755_vm15, %v750_v50, %v752_v20  ;;  %v757_v31 = vsel %vm755_vm15, %v752_v20, %v754_v12 }
 0x1d6   : > { %v761_v8 = vadd.f32 %v750_v50, %v724_v3  ;;  %v762_v13 = vadd.f32 %v756_v35, %v725_v38  ;;  %v763_v14 = vadd.f32 %v757_v31, %v726_v49 }
 0x1d8   : > { %v786_v18 = vadd.f32 %v775_v58, %v761_v8  ;;  %v816_v28 = vpop.permute.xlu0 %815  ;;  %v787_v40 = vadd.f32 %v781_v43, %v762_v13  ;;  %v788_v36 = vadd.f32 %v782_v29, %v763_v14  ;;  %v5589_v8 = vmov 0.0   ;;  %v4602_v14 = vld [vmem:[#allocation12] sm:$0xff] }
 0x1d9   : > { %3264 = vmatprep.mubr.msk.f32.mxu0 %vm4032_vm2, %v5589_v8  ;;  %3269 = vmatprep.mubr.msk.f32.mxu1 %vm4032_vm2, %v5589_v8  ;;  %v526_v13 = vadd.s32 2, %v4347_v6  ;;  %v5591_v29 = vmov 6  }
 0x1da   : > { %v823_v4 = vadd.f32 %v812_v41, %v786_v18  ;;  %v5590_v18 = vmov 3  }
 0x1db   : > { %vm527_vm3 = vcmp.ge.s32.totalorder %v526_v13, 0  ;;  %vm528_vm4 = vcmp.lt.s32.totalorder %v526_v13, 16  ;;  %v541_v13 = vld [vmem:[#allocation8] sm:$0xff] }
 0x1dc   : > { %vm529_vm5 = vmand %vm527_vm3, %vm528_vm4  ;;  %vm868_vm3 = vcmask 64512   ;;  %vm1227_vm4 = vcmask 793600  }
 0x1dd   : > { %v828_v15 = vpop.permute.xlu1 %827  ;;  %v3224_v43 = vsel %vm529_vm5, 1.0, %v5589_v8  ;;  %vm1264_vm5 = vcmask 801792  }
 0x1de   : > { %v4570_v11 = vadd.f32 %v828_v15, %v823_v4  ;;  %v5593_v4 = vmov 9  }
 0x1e0   : > { %5586 = vst [vmem:[#allocation43_spill] sm:$0xff] %v4570_v11  ;;  %v849_v24 = vmul.f32 %v4570_v11, %v4570_v11 }
 0x1e1   : > { %v814_v46 = vpop.permute.xlu1 %813 }
 0x1e2   : > { %v818_v2 = vsel %vm817_vm1, %v812_v41, %v814_v46  ;;  %v819_v12 = vsel %vm817_vm1, %v814_v46, %v816_v28  ;;  %v536_v28 = vrot.slane %v3224_v43, %v4353_v9  ;;  %v5592_v46 = vmov 4  }
 0x1e3   : > { %v824_v50 = vadd.f32 %v818_v2, %v787_v40  ;;  %v825_v1 = vadd.f32 %v819_v12, %v788_v36 }
 0x1e5   : > { %v4572_v22 = vadd.f32 %v828_v15, %v824_v50  ;;  %v4574_v25 = vadd.f32 %v828_v15, %v825_v1  ;;  %v481_v15 = vadd.s32 4294967294, %v4347_v6  ;;  %v540_v6 = vrot.slane %v3224_v43, %v4355_v10 }
 0x1e6   : > { %v5594_v1 = vmov 5  }
 0x1e7   : > { %5587 = vst [vmem:[#allocation44_spill] sm:$0xff] %v4572_v22  ;;  %5588 = vst [vmem:[#allocation45_spill] sm:$0xff] %v4574_v25  ;;  %838 = vrot.lane.b32.xlu0 %v4572_v22, %s4023_s11  ;;  %840 = vrot.lane.b32.xlu1 %v4574_v25, %s4023_s11  ;;  %v850_v41 = vmul.f32 %v4572_v22, %v4572_v22  ;;  %v851_v58 = vmul.f32 %v4574_v25, %v4574_v25  ;;  %vm482_vm6 = vcmp.ge.s32.totalorder %v481_v15, 0 }
 0x1e8   : > { %vm483_vm8 = vcmp.lt.s32.totalorder %v481_v15, 16  ;;  %v3549_v36 = vpack.i.bf16 %v540_v6, %v536_v28 }
 0x1e9   : > { %vm484_vm9 = vmand %vm482_vm6, %vm483_vm8  ;;  %vm1409_vm6 = vcmask 932864   ;;  %vm1549_vm8 = vcmask 15360  }
 0x1ea   : > { %v3221_v40 = vsel %vm484_vm9, 1.0, %v5589_v8  ;;  %vm1586_vm9 = vcmask 113664  }
 0x1eb   : > { %855 = vrot.lane.b32.xlu0 %v849_v24, %s4023_s11  ;;  %836 = vrot.lane.b32.xlu1 %v4570_v11, %s4023_s11  ;;  %v491_v2 = vrot.slane %v3221_v40, %v4353_v9  ;;  %v495_v12 = vrot.slane %v3221_v40, %v4355_v10  ;;  %v4035_v24 = vmov 12   ;;  %v5595_v9 = vmov 7  }
 0x1ec   : > { %v4037_v10 = vmov 17  }
 0x1ed   : > { %v4622_v50 = vpack.i.bf16 %v495_v12, %v491_v2 }
 0x1ef   : > { %857 = vrot.lane.b32.xlu1 %v850_v41, %s4023_s11  ;;  %859 = vrot.lane.b32.xlu0 %v851_v58, %s4023_s11  ;;  %v5596_v41 = vmov 8   ;;  %v4040_v58 = vmov 10  }
 0x259   : > { %v841_v63 = vpop.permute.xlu1 %840  ;;  %v839_v60 = vpop.permute.xlu0 %838 }
 0x25a   : > { %v843_v26 = vsel %vm793_vm10, %v839_v60, %v841_v63  ;;  %v4042_v63 = vmov 23  }
 0x25d   : > { %v837_v23 = vpop.permute.xlu1 %836  ;;  %v856_v3 = vpop.permute.xlu0 %855 }
 0x25e   : > { %v842_v20 = vsel %vm793_vm10, %v837_v23, %v839_v60  ;;  %v5523_v60 = vmov 11   ;;  %v4046_v23 = vmov 13  }
 0x25f   : > { %v846_v62 = vadd.f32 %v843_v26, %v842_v20  ;;  %v5597_v20 = vmov 0   ;;  %v4049_v26 = vmov 15  }
 0x261   : > { %v858_v0 = vpop.permute.xlu1 %857  ;;  %847 = vadd.xlane.f32.xlu1 %v846_v62  ;;  %v860_v38 = vpop.permute.xlu0 %859  ;;  %v4051_v62 = vmov 18  }
 0x262   : > { %v862_v35 = vsel %vm793_vm10, %v858_v0, %v860_v38  ;;  %v861_v31 = vsel %vm793_vm10, %v856_v3, %v858_v0  ;;  %v4048_v3 = vmov 14   ;;  %v4052_v0 = vmov 19  }
 0x263   : > { %v865_v49 = vadd.f32 %v862_v35, %v861_v31  ;;  %v4053_v38 = vmov 20   ;;  %v4054_v35 = vmov 21   ;;  %v4055_v31 = vmov 22  }
 0x265   : > { %866 = vadd.xlane.f32.xlu0 %v865_v49  ;;  %v4057_v49 = vmov 24  }
 0x272   : > { %3537 = vrot.lane.b32.xlu1 %v4371_v21, %s4030_s25 }
 0x276   : > { %1200 = vperm.xlu1 %3541, %v4602_v14  }
 0x27a   : > { %3542 = vset.pattern.permute.xlu1 %v5590_v18 }
 0x27b   : > { %1236 = vperm.xlu1 %3542, %v4602_v14   ;;  %1176 = vperm.xlu0 %3535, %v4602_v14  }
 0x27f   : > { %3544 = vrot.lane.b32.xlu1 %v4367_v19, %s4033_s28  ;;  %3560 = vset.pattern.permute.xlu0 %v5591_v29  ;;  %s4041_s28 = smov 18  }
 0x280   : > { %1333 = vperm.xlu0 %3560, %v4602_v14   ;;  %3548 = vset.pattern.permute.xlu1 %v5592_v46 }
 0x283   : > { %1273 = vperm.xlu1 %3548, %v4602_v14  }
 0x284   : > { %3563 = vset.pattern.permute.xlu0 %v5593_v4 }
 0x285   : > { %1418 = vperm.xlu0 %3563, %v4602_v14  }
 0x287   : > { %3550 = vrot.lane.b32.xlu1 %v3549_v36, %s4034_s23  ;;  %s4043_s23 = smov 30  }
 0x288   : > { %3554 = vset.pattern.permute.xlu1 %v5594_v1 }
 0x289   : > { %3571 = vrot.lane.b32.xlu0 %v4622_v50, %s4026_s29 }
 0x28a   : > { %3576 = vset.pattern.permute.xlu0 %v4035_v24 }
 0x28b   : > { %1309 = vperm.xlu1 %3554, %v4602_v14  }
 0x28d   : > { %1502 = vperm.xlu0 %3576, %v4602_v14  }
 0x28f   : > { %3556 = vrot.lane.b32.xlu1 %v4622_v50, %s4028_s27 }
 0x290   : > { %3561 = vset.pattern.permute.xlu1 %v5595_v9 }
 0x291   : > { %3580 = vrot.lane.b32.xlu0 %v3549_v36, %s4036_s1  ;;  %s4045_s1 = smov 31  }
 0x292   : > { %3591 = vset.pattern.permute.xlu0 %v4037_v10 }
 0x293   : > { %1357 = vperm.xlu1 %3561, %v4602_v14  }
 0x295   : > { %3586 = vrot.lane.b32.xlu0 %v4622_v50, %s4038_s5  ;;  %s4047_s5 = smov 34  }
 0x297   : > { %3562 = vset.pattern.permute.xlu1 %v5596_v41 }
 0x298   : > { %1381 = vperm.xlu1 %3562, %v4602_v14  }
 0x299   : > { %1645 = vperm.xlu0 %3591, %v4602_v14  }
 0x29c   : > { %3565 = vrot.lane.b32.xlu1 %v3549_v36, %s4039_s20  ;;  %s4056_s20 = smov 33  }
 0x29d   : > { %3569 = vset.pattern.permute.xlu1 %v4040_v58  ;;  %3595 = vrot.lane.b32.xlu0 %v3549_v36, %s4041_s28  ;;  %s4058_s28 = smov 118  }
 0x29e   : > { %3612 = vset.pattern.permute.xlu0 %v4042_v63 }
 0x2a0   : > { %1454 = vperm.xlu1 %3569, %v4602_v14  }
 0x2a1   : > { %3601 = vrot.lane.b32.xlu0 %v4622_v50, %s4043_s23  ;;  %s4060_s23 = smov 125  }
 0x2a4   : > { %3575 = vset.pattern.permute.xlu1 %v5523_v60 }
 0x2a5   : > { %1478 = vperm.xlu1 %3575, %v4602_v14   ;;  %3607 = vrot.lane.b32.xlu0 %v4371_v21, %s4045_s1  ;;  %v4050_v21 = vmov 16   ;;  %s4061_s1 = smov 124  }
 0x2a9   : > { %3577 = vset.pattern.permute.xlu1 %v4046_v23  ;;  %1843 = vperm.xlu0 %3612, %v4602_v14  }
 0x2aa   : > { %1521 = vperm.xlu1 %3577, %v4602_v14  }
 0x2ad   : > { %3620 = vrot.lane.b32.xlu0 %v3549_v36, %s4047_s5 }
 0x2ae   : > { %3578 = vset.pattern.permute.xlu1 %v4048_v3  ;;  %3624 = vset.pattern.permute.xlu0 %v5597_v20 }
 0x2af   : > { %1558 = vperm.xlu1 %3578, %v4602_v14  }
 0x2b1   : > { %1158 = vperm.xlu0 %3624, %v4602_v14  }
 0x2b3   : > { %3584 = vset.pattern.permute.xlu1 %v4049_v26 }
 0x2b4   : > { %1595 = vperm.xlu1 %3584, %v4602_v14  }
 0x2b8   : > { %3590 = vset.pattern.permute.xlu1 %v4050_v21 }
 0x2b9   : > { %1620 = vperm.xlu1 %3590, %v4602_v14  }
 0x2bd   : > { %3592 = vset.pattern.permute.xlu1 %v4051_v62 }
 0x2be   : > { %1670 = vperm.xlu1 %3592, %v4602_v14  }
 0x2c2   : > { %3593 = vset.pattern.permute.xlu1 %v4052_v0 }
 0x2c3   : > { %1707 = vperm.xlu1 %3593, %v4602_v14  }
 0x2c7   : > { %3599 = vset.pattern.permute.xlu1 %v4053_v38 }
 0x2c8   : > { %1744 = vperm.xlu1 %3599, %v4602_v14  }
 0x2cc   : > { %3605 = vset.pattern.permute.xlu1 %v4054_v35 }
 0x2cd   : > { %1781 = vperm.xlu1 %3605, %v4602_v14  }
 0x2d1   : > { %3611 = vset.pattern.permute.xlu1 %v4055_v31 }
 0x2d2   : > { %1806 = vperm.xlu1 %3611, %v4602_v14  }
 0x2d6   : > { %3614 = vrot.lane.b32.xlu1 %v4367_v19, %s4056_s20  ;;  %s4062_s20 = smov 109  }
 0x2d7   : > { %3618 = vset.pattern.permute.xlu1 %v4057_v49 }
 0x2da   : > { %1880 = vperm.xlu1 %3618, %v4602_v14  }
 0x2de   : > { %1018 = vrot.lane.b32.xlu1 %v4345_v5, %s4058_s28 }
 0x2e2   : > { %3626 = vrot.lane.b32.xlu1 %v4622_v50, %s4031_s17 }
 0x2ea   : > { %v848_v15 = vpop.xlane.xlu1 %847 }
 0x2eb   : > { %3263 = vmatpush3.msra.mxu0 %v848_v15 }
 0x2ec   : > { %3265 = vmatmul.mubr.msk.f32.vlgmr.msra.gmra.mxu0 %vm868_vm3, %v541_v13 }
 0x2ed   : > { %1129 = vmatprep.mubr.f32.mxu0 %v5589_v8 }
 0x2ee   : > { %v3538_v19 = vpop.permute.xlu1 %3537  ;;  %v867_v43 = vpop.xlane.xlu0 %866 }
 0x2ef   : > { %v3540_v28 = vunpack.i.h.bf16 %v3538_v19  ;;  %v3539_v6 = vunpack.i.l.bf16 %v3538_v19  ;;  %3268 = vmatpush3.msra.mxu1 %v867_v43 }
 0x2f0   : > { %3270 = vmatmul.mubr.msk.f32.vlgmr.msra.gmra.mxu1 %vm868_vm3, %v541_v13  ;;  %3272 = vmatprep.subr.mxu1 %v5589_v8  ;;  %v4059_v13 = vmov 25  }
 0x2f1   : > { %v1168_v5 = vsel %vm780_vm0, %v3539_v6, %v3540_v28  ;;  %3274 = vmatprep.mubr.msk.f32.mxu1 %vm4032_vm2, %v5589_v8  ;;  %v1172_v36 = vmul.f32 0.0, %v3539_v6  ;;  %v1174_v12 = vmul.f32 %v3540_v28, %v4398_v30  ;;  %3630 = vset.pattern.permute.xlu1 %v4059_v13 }
 0x2f2   : > { %v1201_v40 = vpop.permute.xlu1 %1200  ;;  %v1173_v2 = vmul.f32 %v1168_v5, %v4393_v27 }
 0x2f3   : > { %v1203_v23 = vmul.f32 0.0, %v1201_v40  ;;  %v1204_v62 = vmul.f32 %v1201_v40, %v4393_v27  ;;  %v1205_v38 = vmul.f32 %v1201_v40, %v4398_v30 }
 0x2f6   : > { %v1237_v50 = vpop.permute.xlu1 %1236  ;;  %v1177_v24 = vpop.permute.xlu0 %1176 }
 0x2f7   : > { %v1179_v10 = vmul.f32 %v1177_v24, %v1172_v36  ;;  %v1180_v58 = vmul.f32 %v1177_v24, %v1173_v2  ;;  %v1181_v63 = vmul.f32 %v1177_v24, %v1174_v12 }
 0x2f9   : > { %1187 = vrot.lane.b32.xlu0 %v1180_v58, %s4017_s2  ;;  %1185 = vrot.lane.b32.xlu1 %v1179_v10, %s4017_s2 }
 0x2fa   : > { %v3545_v3 = vpop.permute.xlu1 %3544 }
 0x2fb   : > { %v3547_v26 = vunpack.i.h.bf16 %v3545_v3  ;;  %v3546_v21 = vunpack.i.l.bf16 %v3545_v3 }
 0x2fd   : > { %v1232_v0 = vmul.f32 0.0, %v3546_v21  ;;  %1209 = vrot.lane.b32.xlu0 %v1203_v23, %s4026_s29  ;;  %1189 = vrot.lane.b32.xlu1 %v1181_v63, %s4017_s2  ;;  %v1228_v35 = vsel %vm1227_vm4, %v3546_v21, %v3547_v26  ;;  %v1234_v15 = vmul.f32 %v3547_v26, %v4398_v30  ;;  %vm1698_vm4 = vcmask 146432  }
 0x2fe   : > { %v1274_v31 = vpop.permute.xlu1 %1273  ;;  %v1233_v49 = vmul.f32 %v1228_v35, %v4393_v27 }
 0x2ff   : > { %v1239_v43 = vmul.f32 %v1237_v50, %v1232_v0  ;;  %v1241_v12 = vmul.f32 %v1237_v50, %v1234_v15  ;;  %v1334_v15 = vpop.permute.xlu0 %1333 }
 0x300   : > { %v1240_v19 = vmul.f32 %v1237_v50, %v1233_v49 }
 0x301   : > { %1213 = vrot.lane.b32.xlu0 %v1205_v38, %s4026_s29  ;;  %1211 = vrot.lane.b32.xlu1 %v1204_v62, %s4026_s29 }
 0x302   : > { %v3551_v28 = vpop.permute.xlu1 %3550 }
 0x303   : > { %v3553_v6 = vunpack.i.h.bf16 %v3551_v28  ;;  %v3552_v5 = vunpack.i.l.bf16 %v3551_v28  ;;  %v1337_v28 = vmul.f32 %v1334_v15, %v4546_v34 }
 0x305   : > { %v1271_v40 = vmul.f32 %v3553_v6, %v4398_v30  ;;  %v1265_v36 = vsel %vm1264_vm5, %v3552_v5, %v3553_v6  ;;  %v1269_v2 = vmul.f32 0.0, %v3552_v5  ;;  %1247 = vrot.lane.b32.xlu0 %v1240_v19, %s4060_s23  ;;  %1245 = vrot.lane.b32.xlu1 %v1239_v43, %s4060_s23  ;;  %v1336_v43 = vmul.f32 %v1334_v15, %v4542_v56 }
 0x306   : > { %v1270_v24 = vmul.f32 %v1265_v36, %v4393_v27  ;;  %v1310_v10 = vpop.permute.xlu1 %1309  ;;  %v1338_v5 = vmul.f32 %v1334_v15, %v4554_v42  ;;  %v1419_v36 = vpop.permute.xlu0 %1418  ;;  %vm1735_vm5 = vcmask 244736  }
 0x307   : > { %v1276_v58 = vmul.f32 %v1274_v31, %v1269_v2  ;;  %v1278_v63 = vmul.f32 %v1274_v31, %v1271_v40 }
 0x308   : > { %v1277_v23 = vmul.f32 %v1274_v31, %v1270_v24 }
 0x309   : > { %1282 = vrot.lane.b32.xlu0 %v1276_v58, %s4061_s1  ;;  %1249 = vrot.lane.b32.xlu1 %v1241_v12, %s4060_s23  ;;  %s4063_s23 = smov 108  }
 0x30a   : > { %v3557_v3 = vpop.permute.xlu1 %3556  ;;  %v3572_v34 = vpop.permute.xlu0 %3571 }
 0x30b   : > { %v3559_v26 = vunpack.i.h.bf16 %v3557_v3  ;;  %v3558_v21 = vunpack.i.l.bf16 %v3557_v3 }
 0x30d   : > { %v1307_v62 = vmul.f32 %v3559_v26, %v4398_v30  ;;  %v1305_v0 = vmul.f32 0.0, %v3558_v21  ;;  %1286 = vrot.lane.b32.xlu0 %v1278_v63, %s4061_s1  ;;  %1284 = vrot.lane.b32.xlu1 %v1277_v23, %s4061_s1  ;;  %v1301_v38 = vsel %vm718_vm14, %v3558_v21, %v3559_v26  ;;  %v3574_v26 = vunpack.i.h.bf16 %v3572_v34  ;;  %s4064_s1 = smov 93  }
 0x30e   : > { %v1358_v50 = vpop.permute.xlu1 %1357  ;;  %v1306_v35 = vmul.f32 %v1301_v38, %v4393_v27  ;;  %v3573_v21 = vunpack.i.l.bf16 %v3572_v34 }
 0x30f   : > { %v1312_v49 = vmul.f32 %v1310_v10, %v1305_v0  ;;  %v1314_v19 = vmul.f32 %v1310_v10, %v1307_v62  ;;  %v1360_v40 = vmul.f32 0.0, %v1358_v50  ;;  %v1361_v2 = vmul.f32 %v1358_v50, %v4393_v27 }
 0x310   : > { %v1313_v13 = vmul.f32 %v1310_v10, %v1306_v35  ;;  %v1362_v58 = vmul.f32 %v1358_v50, %v4398_v30  ;;  %v1450_v15 = vmul.f32 0.0, %v3573_v21 }
 0x311   : > { %1318 = vrot.lane.b32.xlu1 %v1312_v49, %s4027_s26 }
 0x312   : > { %1320 = vrot.lane.b32.xlu0 %v1313_v13, %s4027_s26  ;;  %v1446_v13 = vsel %vm626_vm12, %v3573_v21, %v3574_v26 }
 0x313   : > { %v1382_v31 = vpop.permute.xlu1 %1381 }
 0x314   : > { %v1384_v23 = vmul.f32 %v1382_v31, %v4411_v39  ;;  %v1385_v0 = vmul.f32 %v1382_v31, %v4481_v32  ;;  %v1386_v38 = vmul.f32 %v1382_v31, %v4419_v44 }
 0x315   : > { %1322 = vrot.lane.b32.xlu1 %v1314_v19, %s4027_s26 }
 0x316   : > { %1342 = vrot.lane.b32.xlu0 %v1336_v43, %s4022_s24 }
 0x317   : > { %v3566_v6 = vpop.permute.xlu1 %3565 }
 0x318   : > { %v3568_v12 = vunpack.i.h.bf16 %v3566_v6  ;;  %v3567_v24 = vunpack.i.l.bf16 %v3566_v6  ;;  %v1452_v6 = vmul.f32 %v3574_v26, %v4398_v30 }
 0x319   : > { %1344 = vrot.lane.b32.xlu1 %v1337_v28, %s4022_s24  ;;  %v1451_v28 = vmul.f32 %v1446_v13, %v4393_v27 }
 0x31a   : > { %1346 = vrot.lane.b32.xlu0 %v1338_v5, %s4022_s24  ;;  %v1410_v42 = vsel %vm1409_vm6, %v3567_v24, %v3568_v12  ;;  %v1414_v3 = vmul.f32 0.0, %v3567_v24  ;;  %v1416_v50 = vmul.f32 %v3568_v12, %v4398_v30  ;;  %vm1772_vm6 = vcmask 252928  }
 0x31b   : > { %v1455_v10 = vpop.permute.xlu1 %1454  ;;  %v1415_v62 = vmul.f32 %v1410_v42, %v4393_v27 }
 0x31c   : > { %v1421_v35 = vmul.f32 %v1419_v36, %v1414_v3  ;;  %v1423_v43 = vmul.f32 %v1419_v36, %v1416_v50  ;;  %v1457_v44 = vmul.f32 %v1455_v10, %v1450_v15  ;;  %v1458_v31 = vmul.f32 %v1455_v10, %v1451_v28 }
 0x31d   : > { %1366 = vrot.lane.b32.xlu1 %v1360_v40, %s4028_s27  ;;  %v1422_v19 = vmul.f32 %v1419_v36, %v1415_v62  ;;  %v1459_v5 = vmul.f32 %v1455_v10, %v1452_v6 }
 0x31e   : > { %1368 = vrot.lane.b32.xlu0 %v1361_v2, %s4028_s27  ;;  %v1503_v2 = vpop.permute.xlu0 %1502 }
 0x31f   : > { %v1505_v34 = vmul.f32 %v1503_v2, %v4393_v27  ;;  %v1506_v3 = vmul.f32 %v1503_v2, %v4398_v30 }
 0x320   : > { %v1479_v63 = vpop.permute.xlu1 %1478 }
 0x321   : > { %1370 = vrot.lane.b32.xlu1 %v1362_v58, %s4028_s27  ;;  %v1481_v36 = vmul.f32 %v1479_v63, %v4421_v45  ;;  %v1482_v12 = vmul.f32 %v1479_v63, %v4485_v33  ;;  %v1483_v10 = vmul.f32 %v1479_v63, %v4432_v51 }
 0x322   : > { %1390 = vrot.lane.b32.xlu0 %v1384_v23, %s4062_s20  ;;  %v3581_v58 = vpop.permute.xlu0 %3580 }
 0x323   : > { %v3583_v42 = vunpack.i.h.bf16 %v3581_v58  ;;  %v3582_v23 = vunpack.i.l.bf16 %v3581_v58 }
 0x325   : > { %1392 = vrot.lane.b32.xlu1 %v1385_v0, %s4062_s20  ;;  %v1522_v49 = vpop.permute.xlu1 %1521  ;;  %v1550_v33 = vsel %vm1549_vm8, %v3582_v23, %v3583_v42  ;;  %v1554_v0 = vmul.f32 %v3582_v23, %v4393_v27  ;;  %v1556_v15 = vmul.f32 0.0, %v3583_v42  ;;  %vm1834_vm8 = vcmask 269312  }
 0x326   : > { %1394 = vrot.lane.b32.xlu0 %v1386_v38, %s4062_s20  ;;  %v3587_v21 = vpop.permute.xlu0 %3586  ;;  %v1524_v62 = vmul.f32 %v1522_v49, %v4443_v57  ;;  %v1555_v51 = vmul.f32 %v1550_v33, %v4398_v30  ;;  %v1526_v13 = vmul.f32 %v1522_v49, %v4452_v61  ;;  %s4065_s20 = smov 92   ;;  %v4747_v33 = vld [vmem:[%s4319_s4 + $0x8] sm:$0xff] }
 0x327   : > { %v3589_v63 = vunpack.i.h.bf16 %v3587_v21  ;;  %v3588_v38 = vunpack.i.l.bf16 %v3587_v21 }
 0x329   : > { %1427 = vrot.lane.b32.xlu1 %v1421_v35, %s4063_s23  ;;  %v1525_v35 = vmul.f32 %v1522_v49, %v4502_v47  ;;  %v1591_v28 = vmul.f32 %v3588_v38, %v4393_v27  ;;  %v1593_v47 = vmul.f32 0.0, %v3589_v63 }
 0x32a   : > { %1429 = vrot.lane.b32.xlu0 %v1422_v19, %s4063_s23  ;;  %v1559_v32 = vpop.permute.xlu1 %1558  ;;  %v1646_v19 = vpop.permute.xlu0 %1645 }
 0x32b   : > { %v1561_v57 = vmul.f32 %v1559_v32, %v1554_v0  ;;  %v1562_v6 = vmul.f32 %v1559_v32, %v1555_v51  ;;  %v1649_v21 = vmul.f32 %v4747_v33, %v1646_v19 }
 0x32d   : > { %1431 = vrot.lane.b32.xlu1 %v1423_v43, %s4063_s23  ;;  %v1587_v43 = vsel %vm1586_vm9, %v3588_v38, %v3589_v63  ;;  %s4066_s23 = smov 80   ;;  %vm1871_vm9 = vcmask 277504  }
 0x32e   : > { %1463 = vrot.lane.b32.xlu0 %v1457_v44, %s4029_s22  ;;  %v3596_v49 = vpop.permute.xlu0 %3595 }
 0x32f   : > { %v1596_v40 = vpop.permute.xlu1 %1595 }
 0x330   : > { %v1598_v2 = vmul.f32 %v1596_v40, %v1591_v28  ;;  %v1600_v27 = vmul.f32 %v1596_v40, %v1593_v47 }
 0x331   : > { %1465 = vrot.lane.b32.xlu1 %v1458_v31, %s4029_s22  ;;  %v1592_v31 = vmul.f32 %v1587_v43, %v4398_v30 }
 0x332   : > { %1467 = vrot.lane.b32.xlu0 %v1459_v5, %s4029_s22  ;;  %v1563_v5 = vmul.f32 %v1559_v32, %v1556_v15  ;;  %v3602_v58 = vpop.permute.xlu0 %3601 }
 0x334   : > { %v1621_v24 = vpop.permute.xlu1 %1620 }
 0x335   : > { %1487 = vrot.lane.b32.xlu1 %v1481_v36, %s4030_s25  ;;  %v1623_v30 = vmul.f32 %v1621_v24, %v4450_v59  ;;  %v1624_v32 = vmul.f32 %v1621_v24, %v4518_v52  ;;  %v1625_v23 = vmul.f32 %v1621_v24, %v4459_v7  ;;  %v1650_v59 = vmul.f32 0.0, %v1646_v19 }
 0x336   : > { %1489 = vrot.lane.b32.xlu0 %v1482_v12, %s4030_s25  ;;  %v1599_v12 = vmul.f32 %v1596_v40, %v1592_v31  ;;  %v3597_v52 = vunpack.i.l.bf16 %v3596_v49 }
 0x339   : > { %1491 = vrot.lane.b32.xlu1 %v1483_v10, %s4030_s25  ;;  %v4718_v26 = vpop.permute.xlu1 %1670  ;;  %v4740_v10 = vld [vmem:[%s4319_s4] sm:$0xff] }
 0x33a   : > { %1509 = vrot.lane.b32.xlu0 %v1505_v34, %s4031_s17  ;;  %v1648_v42 = vmul.f32 %v4740_v10, %v1646_v19  ;;  %v1703_v63 = vmul.f32 %v4740_v10, %v3597_v52  ;;  %v1673_v38 = vmul.f32 %v4718_v26, %v4494_v37  ;;  %v1674_v15 = vmul.f32 %v4718_v26, %v4526_v54 }
 0x33b   : > { %v1675_v28 = vmul.f32 %v4718_v26, %v4520_v53 }
 0x33d   : > { %1511 = vrot.lane.b32.xlu1 %v1506_v3, %s4031_s17  ;;  %v3608_v3 = vpop.permute.xlu0 %3607 }
 0x33e   : > { %1530 = vrot.lane.b32.xlu0 %v1524_v62, %s4064_s1  ;;  %v4725_v50 = vpop.permute.xlu1 %1707  ;;  %v3598_v62 = vunpack.i.h.bf16 %v3596_v49  ;;  %v3609_v49 = vunpack.i.l.bf16 %v3608_v3 }
 0x33f   : > { %v1710_v43 = vmul.f32 %v4725_v50, %v1703_v63 }
 0x340   : > { %v1699_v24 = vsel %vm1698_vm4, %v3597_v52, %v3598_v62  ;;  %v1705_v19 = vmul.f32 0.0, %v3598_v62  ;;  %vm1251_vm4 = vcmask 1022976  }
 0x341   : > { %1532 = vrot.lane.b32.xlu1 %v1525_v35, %s4064_s1  ;;  %v4750_v0 = vpop.permute.xlu0 %1843  ;;  %v3604_v35 = vunpack.i.h.bf16 %v3602_v58 }
 0x342   : > { %1534 = vrot.lane.b32.xlu0 %v1526_v13, %s4064_s1  ;;  %s4067_s1 = smov 79   ;;  %v3603_v13 = vunpack.i.l.bf16 %v3602_v58 }
 0x343   : > { %v4730_v44 = vpop.permute.xlu1 %1744  ;;  %v1742_v26 = vmul.f32 0.0, %v3604_v35 }
 0x345   : > { %1567 = vrot.lane.b32.xlu1 %v1561_v57, %s4065_s20  ;;  %v1704_v57 = vmul.f32 %v4747_v33, %v1699_v24  ;;  %v4763_v31 = vpop.permute.xlu0 %3620 }
 0x346   : > { %1569 = vrot.lane.b32.xlu0 %v1562_v6, %s4065_s20  ;;  %v1736_v6 = vsel %vm1735_vm5, %v3603_v13, %v3604_v35  ;;  %vm1288_vm5 = vcmask 1014784  }
 0x347   : > { %v1711_v54 = vmul.f32 %v4725_v50, %v1704_v57  ;;  %v1741_v47 = vmul.f32 %v4747_v33, %v1736_v6 }
 0x348   : > { %v4733_v36 = vpop.permute.xlu1 %1781 }
 0x349   : > { %1571 = vrot.lane.b32.xlu1 %v1563_v5, %s4065_s20  ;;  %s4068_s20 = smov 78   ;;  %v1740_v5 = vmul.f32 %v4740_v10, %v3603_v13 }
 0x34a   : > { %1604 = vrot.lane.b32.xlu0 %v1598_v2, %s4066_s23  ;;  %v3610_v2 = vunpack.i.h.bf16 %v3608_v3 }
 0x34d   : > { %1606 = vrot.lane.b32.xlu1 %v1599_v12, %s4066_s23  ;;  %v4735_v34 = vpop.permute.xlu1 %1806  ;;  %v1712_v12 = vmul.f32 %v4725_v50, %v1705_v19  ;;  %v1749_v50 = vmul.f32 %v4730_v44, %v1742_v26 }
 0x34e   : > { %1608 = vrot.lane.b32.xlu0 %v1600_v27, %s4066_s23  ;;  %s4069_s23 = smov 77   ;;  %v4771_v27 = vpop.permute.xlu0 %1158  ;;  %v1810_v57 = vmul.f32 %v4747_v33, %v4735_v34  ;;  %v1811_v6 = vmul.f32 0.0, %v4735_v34 }
 0x351   : > { %1629 = vrot.lane.b32.xlu1 %v1623_v30, %s4067_s1  ;;  %v4744_v40 = vpop.permute.xlu1 %3614  ;;  %v1747_v30 = vmul.f32 %v4730_v44, %v1740_v5  ;;  %v3622_v5 = vunpack.i.l.bf16 %v4763_v31 }
 0x352   : > { %1631 = vrot.lane.b32.xlu0 %v1624_v32, %s4067_s1  ;;  %v1773_v32 = vsel %vm1772_vm6, %v3609_v49, %v3610_v2  ;;  %v3616_v63 = vunpack.i.l.bf16 %v4744_v40  ;;  %v3617_v13 = vunpack.i.h.bf16 %v4744_v40  ;;  %vm1396_vm6 = vcmask 891904  }
 0x353   : > { %v1778_v3 = vmul.f32 %v4747_v33, %v1773_v32 }
 0x354   : > { %v1839_v19 = vmul.f32 %v4740_v10, %v3616_v63 }
 0x355   : > { %1633 = vrot.lane.b32.xlu1 %v1625_v23, %s4067_s1  ;;  %v4752_v51 = vpop.permute.xlu1 %1880  ;;  %s4070_s1 = smov 76   ;;  %v1748_v23 = vmul.f32 %v4730_v44, %v1741_v47  ;;  %v1785_v24 = vmul.f32 %v4733_v36, %v1778_v3 }
 0x356   : > { %1654 = vrot.lane.b32.xlu0 %v1648_v42, %s4068_s20  ;;  %v1777_v42 = vmul.f32 %v4740_v10, %v3609_v49  ;;  %v1846_v40 = vmul.f32 %v4750_v0, %v1839_v19  ;;  %v1841_v49 = vmul.f32 0.0, %v3617_v13 }
 0x359   : > { %1656 = vrot.lane.b32.xlu1 %v1649_v21, %s4068_s20  ;;  %v4765_v37 = vpop.permute.xlu1 %1018  ;;  %v1779_v21 = vmul.f32 0.0, %v3610_v2 }
 0x35a   : > { %1658 = vrot.lane.b32.xlu0 %v1650_v59, %s4068_s20  ;;  %s4071_s20 = smov 64   ;;  %v1784_v59 = vmul.f32 %v4733_v36, %v1777_v42  ;;  %v1848_v42 = vmul.f32 %v4750_v0, %v1841_v49 }
 0x35d   : > { %1679 = vrot.lane.b32.xlu1 %v1673_v38, %s4069_s23  ;;  %v4773_v58 = vpop.permute.xlu1 %3626  ;;  %v1786_v38 = vmul.f32 %v4733_v36, %v1779_v21 }
 0x35e   : > { %1681 = vrot.lane.b32.xlu0 %v1674_v15, %s4069_s23  ;;  %v1809_v15 = vmul.f32 %v4740_v10, %v4735_v34  ;;  %v1876_v34 = vmul.f32 %v4740_v10, %v3622_v5 }
 0x361   : > { %1683 = vrot.lane.b32.xlu1 %v1675_v28, %s4069_s23  ;;  %s4072_s23 = smov 63   ;;  %v1835_v28 = vsel %vm1834_vm8, %v3616_v63, %v3617_v13  ;;  %vm1433_vm8 = vcmask 883712  }
 0x362   : > { %1716 = vrot.lane.b32.xlu0 %v1710_v43, %s4070_s1 }
 0x365   : > { %1718 = vrot.lane.b32.xlu1 %v1711_v54, %s4070_s1  ;;  %v1840_v54 = vmul.f32 %v4747_v33, %v1835_v28 }
 0x366   : > { %1720 = vrot.lane.b32.xlu0 %v1712_v12, %s4070_s1  ;;  %s4073_s1 = smov 62   ;;  %v3623_v12 = vunpack.i.h.bf16 %v4763_v31  ;;  %v1883_v31 = vmul.f32 %v4752_v51, %v1876_v34 }
 0x367   : > { %v1847_v26 = vmul.f32 %v4750_v0, %v1840_v54 }
 0x369   : > { %1753 = vrot.lane.b32.xlu1 %v1747_v30, %s4071_s20 }
 0x36a   : > { %1755 = vrot.lane.b32.xlu0 %v1748_v23, %s4071_s20  ;;  %v1872_v23 = vsel %vm1871_vm9, %v3622_v5, %v3623_v12 }
 0x36b   : > { %v4781_v62 = vpop.permute.xlu0 %1187  ;;  %v4783_v52 = vpop.permute.xlu1 %1185  ;;  %v1877_v3 = vmul.f32 %v4747_v33, %v1872_v23 }
 0x36c   : > { %v1191_v29 = vsel %vm589_vm7, %v4783_v52, %v4781_v62 }
 0x36d   : > { %1757 = vrot.lane.b32.xlu1 %v1749_v50, %s4071_s20  ;;  %s4074_s20 = smov 61   ;;  %v1884_v0 = vmul.f32 %v4752_v51, %v1877_v3 }
 0x36e   : > { %1790 = vrot.lane.b32.xlu0 %v1784_v59, %s4072_s23  ;;  %v1878_v59 = vmul.f32 0.0, %v3623_v12 }
 0x36f   : > { %v4788_v35 = vpop.permute.xlu0 %1209  ;;  %v4790_v44 = vpop.permute.xlu1 %1189 }
 0x371   : > { %1792 = vrot.lane.b32.xlu1 %v1785_v24, %s4072_s23 }
 0x372   : > { %1794 = vrot.lane.b32.xlu0 %v1786_v38, %s4072_s23  ;;  %s4075_s23 = smov 60   ;;  %v1885_v38 = vmul.f32 %v4752_v51, %v1878_v59 }
 0x373   : > { %v4798_v43 = vpop.permute.xlu0 %1213  ;;  %v4800_v36 = vpop.permute.xlu1 %1211 }
 0x375   : > { %1815 = vrot.lane.b32.xlu1 %v1809_v15, %s4073_s1 }
 0x376   : > { %1817 = vrot.lane.b32.xlu0 %v1810_v57, %s4073_s1 }
 0x377   : > { %v4806_v47 = vpop.permute.xlu0 %1247  ;;  %v4808_v2 = vpop.permute.xlu1 %1245 }
 0x379   : > { %1819 = vrot.lane.b32.xlu1 %v1811_v6, %s4073_s1  ;;  %s4076_s1 = smov 11  }
 0x37a   : > { %1852 = vrot.lane.b32.xlu0 %v1846_v40, %s4074_s20 }
 0x37b   : > { %v4813_v30 = vpop.permute.xlu0 %1282  ;;  %v4815_v32 = vpop.permute.xlu1 %1249 }
 0x37d   : > { %1854 = vrot.lane.b32.xlu1 %v1847_v26, %s4074_s20 }
 0x37e   : > { %1856 = vrot.lane.b32.xlu0 %v1848_v42, %s4074_s20  ;;  %s4077_s20 = smov 102  }
 0x37f   : > { %v4821_v50 = vpop.permute.xlu0 %1286  ;;  %v4823_v21 = vpop.permute.xlu1 %1284 }
 0x381   : > { %1905 = vperm.xlu1 %3630, %v4602_v14  }
 0x382   : > { %1889 = vrot.lane.b32.xlu0 %v1883_v31, %s4075_s23 }
 0x383   : > { %v4826_v24 = vpop.permute.xlu1 %1318 }
 0x384   : > { %v4829_v63 = vpop.permute.xlu0 %1320 }
 0x385   : > { %1891 = vrot.lane.b32.xlu1 %v1884_v0, %s4075_s23 }
 0x386   : > { %1893 = vrot.lane.b32.xlu0 %v1885_v38, %s4075_s23  ;;  %3631 = vset.pattern.permute.xlu1 %v5597_v20  ;;  %s4079_s23 = smov 27  }
 0x387   : > { %v4833_v13 = vpop.permute.xlu1 %1322 }
 0x388   : > { %v4835_v15 = vpop.permute.xlu0 %1342 }
 0x38b   : > { %v4837_v57 = vpop.permute.xlu1 %1344 }
 0x38c   : > { %v4839_v14 = vpop.permute.xlu0 %1346 }
 0x38f   : > { %v4841_v19 = vpop.permute.xlu1 %1366 }
 0x390   : > { %v4843_v28 = vpop.permute.xlu0 %1368 }
 0x393   : > { %v4845_v6 = vpop.permute.xlu1 %1370 }
 0x394   : > { %v4847_v40 = vpop.permute.xlu0 %1390 }
 0x397   : > { %v4849_v51 = vpop.permute.xlu1 %1392 }
 0x398   : > { %v4851_v5 = vpop.permute.xlu0 %1394 }
 0x39b   : > { %v4853_v54 = vpop.permute.xlu1 %1427 }
 0x39c   : > { %v4855_v49 = vpop.permute.xlu0 %1429 }
 0x39f   : > { %v4857_v12 = vpop.permute.xlu1 %1431 }
 0x3a0   : > { %v4859_v34 = vpop.permute.xlu0 %1463 }
 0x3a3   : > { %v4861_v26 = vpop.permute.xlu1 %1465 }
 0x3a4   : > { %v4863_v42 = vpop.permute.xlu0 %1467 }
 0x3a7   : > { %v4865_v23 = vpop.permute.xlu1 %1487 }
 0x3a8   : > { %v4867_v31 = vpop.permute.xlu0 %1489 }
 0x3ab   : > { %v4869_v3 = vpop.permute.xlu1 %1491 }
 0x3ac   : > { %v938_v59 = vpop.f32.mrf.mxu0  ;;  %v4871_v0 = vpop.permute.xlu0 %1509 }
 0x3ad   : > { %v942_v38 = vmul.f32 0.001953125, %v938_v59 }
 0x3ae   : > { %v3266_v60 = vpop.f32.mrf.mxu0 }
 0x3af   : > { %v1014_v56 = vmul.f32 %v942_v38, %v942_v38  ;;  %v4873_v53 = vpop.permute.xlu1 %1511  ;;  %v3628_v60 = vunpack.i.l.bf16 %v4773_v58 }
 0x3b0   : > { %v1009_v48 = vpop.f32.mrf.mxu1  ;;  %v4875_v55 = vpop.permute.xlu0 %1530 }
 0x3b1   : > { %v1013_v17 = vmul.f32 0.001953125, %v1009_v48  ;;  %v1153_v46 = vmul.f32 0.0, %v3628_v60 }
 0x3b2   : > { %v3271_v16 = vpop.f32.mrf.mxu1 }
 0x3b3   : > { %v1015_v61 = vsub.f32 %v1013_v17, %v1014_v56  ;;  %v4877_v39 = vpop.permute.xlu1 %1532  ;;  %v3629_v17 = vunpack.i.h.bf16 %v4773_v58 }
 0x3b4   : > { %v4879_v7 = vpop.permute.xlu0 %1534 }
 0x3b5   : > { %v1016_v45 = vadd.f32 1e-05, %v1015_v61  ;;  %v1161_v61 = vmul.f32 %v4771_v27, %v1153_v46  ;;  %v1149_v8 = vsel %vm817_vm1, %v3628_v60, %v3629_v17  ;;  %v1215_v46 = vsel %vm626_vm12, %v4788_v35, %v4800_v36 }
 0x3b6   : > { %v1154_v52 = vmul.f32 %v4740_v10, %v1149_v8 }
 0x3b7   : > { %3651 = vrsqrt.f32 %v1016_v45  ;;  %v4881_v9 = vpop.permute.xlu1 %1567  ;;  %v1196_v11 = vadd.f32 %v1191_v29, %v1161_v61 }
 0x3b8   : > { %v4883_v1 = vpop.permute.xlu0 %1569  ;;  %v1162_v35 = vmul.f32 %v4771_v27, %v1154_v52 }
 0x3b9   : > { %v1220_v60 = vadd.f32 %v1215_v46, %v1196_v11  ;;  %v1192_v11 = vsel %vm589_vm7, %v4781_v62, %v4790_v44  ;;  %v1216_v62 = vsel %vm626_vm12, %v4800_v36, %v4798_v43  ;;  %v1397_v36 = vsel %vm1396_vm6, %v4847_v40, %v4849_v51 }
 0x3ba   : > { %v1197_v46 = vadd.f32 %v1192_v11, %v1162_v35  ;;  %v1325_v40 = vsel %vm662_vm13, %v4829_v63, %v4833_v13 }
 0x3bb   : > { %v4886_v59 = vpop.permute.xlu1 %1571 }
 0x3bc   : > { %v4888_v4 = vpop.permute.xlu0 %1604  ;;  %v1221_v35 = vadd.f32 %v1216_v62, %v1197_v46  ;;  %v1469_v46 = vsel %vm755_vm15, %v4859_v34, %v4861_v26  ;;  %v1373_v34 = vsel %vm718_vm14, %v4843_v28, %v4845_v6 }
 0x3bf   : > { %v4890_v48 = vpop.permute.xlu1 %1606 }
 0x3c0   : > { %v4892_v16 = vpop.permute.xlu0 %1608 }
 0x3c3   : > { %v4896_v45 = vpop.permute.xlu1 %1629 }
 0x3c4   : > { %v3652_v56 = vpop.eup %3651  ;;  %v4901_v18 = vpop.permute.xlu0 %1631 }
 0x3c5   : > { %v4904_v41 = vmul.f32 %v3652_v56, %v4765_v37  ;;  %v1155_v37 = vmul.f32 %v4747_v33, %v3629_v17  ;;  %v1289_v33 = vsel %vm1288_vm5, %v4813_v30, %v4823_v21  ;;  %v1348_v30 = vsel %vm557_vm11, %v4835_v15, %v4837_v57 }
 0x3c7   : > { %v4907_v25 = vpop.permute.xlu1 %1633  ;;  %v1022_v58 = vmul.f32 %v4904_v41, %v942_v38  ;;  %v1252_v38 = vsel %vm1251_vm4, %v4808_v2, %v4806_v47  ;;  %v1163_v56 = vmul.f32 %v4771_v27, %v1155_v37  ;;  %v1324_v2 = vsel %vm662_vm13, %v4826_v24, %v4829_v63 }
 0x3c8   : > { %v4913_v22 = vpop.permute.xlu0 %1654  ;;  %v1257_v8 = vadd.f32 %v1252_v38, %v1220_v60  ;;  %v1372_v24 = vsel %vm718_vm14, %v4841_v19, %v4843_v28  ;;  %v1493_v63 = vsel %vm780_vm0, %v4865_v23, %v4867_v31  ;;  %v1435_v28 = vsel %vm1433_vm8, %v4855_v49, %v4857_v12 }
 0x3c9   : > { %1024 = vrot.lane.b32.xlu1 %v1022_v58, %s4076_s1  ;;  %v1198_v27 = vadd.f32 %v4790_v44, %v1163_v56  ;;  %v1253_v44 = vsel %vm1251_vm4, %v4806_v47, %v4815_v32  ;;  %v1290_v56 = vsel %vm1288_vm5, %v4823_v21, %v4821_v50  ;;  %v1434_v47 = vsel %vm1433_vm8, %v4853_v54, %v4855_v49 }
 0x3ca   : > { %v1294_v58 = vadd.f32 %v1289_v33, %v1257_v8  ;;  %v1258_v11 = vadd.f32 %v1253_v44, %v1221_v35  ;;  %v1398_v44 = vsel %vm1396_vm6, %v4849_v51, %v4851_v5  ;;  %vm1536_vm4 = vcmask 760832  }
 0x3cb   : > { %v4918_v29 = vpop.permute.xlu1 %1656  ;;  %v1222_v15 = vadd.f32 %v4798_v43, %v1198_v27  ;;  %vm1573_vm5 = vcmask 752640   ;;  %vm1610_vm6 = vcmask 654336   ;;  %vm1635_vm8 = vcmask 646144  }
 0x3cc   : > { %v4923_v61 = vpop.permute.xlu0 %1658  ;;  %v1329_v37 = vadd.f32 %v1324_v2, %v1294_v58  ;;  %v1295_v21 = vadd.f32 %v1290_v56, %v1258_v11 }
 0x3cd   : > { %v1259_v8 = vadd.f32 %v4815_v32, %v1222_v15  ;;  %v1349_v32 = vsel %vm557_vm11, %v4837_v57, %v4839_v14 }
 0x3ce   : > { %v1353_v38 = vadd.f32 %v1348_v30, %v1329_v37  ;;  %v1330_v30 = vadd.f32 %v1325_v40, %v1295_v21 }
 0x3cf   : > { %v4933_v10 = vpop.permute.xlu1 %1679  ;;  %v1296_v58 = vadd.f32 %v4821_v50, %v1259_v8  ;;  %v1494_v8 = vsel %vm780_vm0, %v4867_v31, %v4869_v3  ;;  %v1537_v31 = vsel %vm1536_vm4, %v4875_v55, %v4877_v39 }
 0x3d0   : > { %v4938_v17 = vpop.permute.xlu0 %1681  ;;  %v1377_v19 = vadd.f32 %v1372_v24, %v1353_v38  ;;  %v1354_v24 = vadd.f32 %v1349_v32, %v1330_v30 }
 0x3d1   : > { %v1331_v62 = vadd.f32 %v4833_v13, %v1296_v58 }
 0x3d2   : > { %v1402_v2 = vadd.f32 %v1397_v36, %v1377_v19  ;;  %v1378_v13 = vadd.f32 %v1373_v34, %v1354_v24 }
 0x3d3   : > { %v4947_v52 = vpop.permute.xlu1 %1683  ;;  %v1355_v57 = vadd.f32 %v4839_v14, %v1331_v62  ;;  %v1470_v14 = vsel %vm755_vm15, %v4861_v26, %v4863_v42  ;;  %v1513_v26 = vsel %vm817_vm1, %v4871_v0, %v4873_v53 }
 0x3d4   : > { %v4952_v60 = vpop.permute.xlu0 %1716  ;;  %v1439_v27 = vadd.f32 %v1434_v47, %v1402_v2  ;;  %v1403_v36 = vadd.f32 %v1398_v44, %v1378_v13 }
 0x3d5   : > { %v1379_v15 = vadd.f32 %v4845_v6, %v1355_v57 }
 0x3d6   : > { %v1474_v37 = vadd.f32 %v1469_v46, %v1439_v27  ;;  %v1440_v19 = vadd.f32 %v1435_v28, %v1403_v36 }
 0x3d7   : > { %v4964_v33 = vpop.permute.xlu1 %1718  ;;  %v1404_v56 = vadd.f32 %v4851_v5, %v1379_v15 }
 0x3d8   : > { %v4970_v43 = vpop.permute.xlu0 %1720  ;;  %v1498_v38 = vadd.f32 %v1493_v63, %v1474_v37  ;;  %v1475_v47 = vadd.f32 %v1470_v14, %v1440_v19 }
 0x3d9   : > { %v1441_v6 = vadd.f32 %v4857_v12, %v1404_v56 }
 0x3da   : > { %v1517_v51 = vadd.f32 %v4871_v0, %v1498_v38  ;;  %v1499_v2 = vadd.f32 %v1494_v8, %v1475_v47  ;;  %v1574_v0 = vsel %vm1573_vm5, %v4881_v9, %v4883_v1 }
 0x3db   : > { %v4982_v54 = vpop.permute.xlu1 %1753  ;;  %v1476_v5 = vadd.f32 %v4863_v42, %v1441_v6  ;;  %v1538_v42 = vsel %vm1536_vm4, %v4877_v39, %v4879_v7  ;;  %v1611_v39 = vsel %vm1610_vm6, %v4888_v4, %v4890_v48  ;;  %v1612_v7 = vsel %vm1610_vm6, %v4890_v48, %v4892_v16 }
 0x3dc   : > { %v4988_v50 = vpop.permute.xlu0 %1755  ;;  %v1542_v49 = vadd.f32 %v4875_v55, %v1517_v51  ;;  %v1518_v32 = vadd.f32 %v1513_v26, %v1499_v2  ;;  %vm1660_vm4 = vcmask 637952   ;;  %vm1722_vm6 = vcmask 621568  }
 0x3dd   : > { %v1500_v58 = vadd.f32 %v4869_v3, %v1476_v5  ;;  %v1575_v3 = vsel %vm1573_vm5, %v4883_v1, %v4886_v59  ;;  %v1636_v1 = vsel %vm1635_vm8, %v4896_v45, %v4901_v18  ;;  %v1637_v59 = vsel %vm1635_vm8, %v4901_v18, %v4907_v25 }
 0x3de   : > { %v1579_v12 = vadd.f32 %v4881_v9, %v1542_v49  ;;  %v1543_v62 = vadd.f32 %v1537_v31, %v1518_v32  ;;  %vm1685_vm5 = vcmask 629760   ;;  %v1662_v48 = vsel %vm1660_vm4, %v4918_v29, %v4923_v61 }
 0x3df   : > { %v4998_v35 = vpop.permute.xlu1 %1757  ;;  %v1519_v27 = vadd.f32 %v4873_v53, %v1500_v58  ;;  %v1686_v25 = vsel %vm1685_vm5, %v4933_v10, %v4938_v17  ;;  %v1687_v18 = vsel %vm1685_vm5, %v4938_v17, %v4947_v52  ;;  %vm1759_vm8 = vcmask 523264  }
 0x3e0   : > { %v5000_v23 = vpop.permute.xlu0 %1790  ;;  %v1616_v46 = vadd.f32 %v4888_v4, %v1579_v12  ;;  %v1580_v37 = vadd.f32 %v1574_v0, %v1543_v62  ;;  %v1661_v4 = vsel %vm1660_vm4, %v4913_v22, %v4918_v29  ;;  %v1723_v29 = vsel %vm1722_vm6, %v4952_v60, %v4964_v33 }
 0x3e1   : > { %v1544_v63 = vadd.f32 %v1538_v42, %v1519_v27  ;;  %v1724_v61 = vsel %vm1722_vm6, %v4964_v33, %v4970_v43  ;;  %vm1796_vm4 = vcmask 515072   ;;  %v1761_v17 = vsel %vm1759_vm8, %v4988_v50, %v4998_v35 }
 0x3e2   : > { %v1641_v30 = vadd.f32 %v4896_v45, %v1616_v46  ;;  %v1617_v57 = vadd.f32 %v1611_v39, %v1580_v37  ;;  %vm1821_vm5 = vcmask 506880   ;;  %vm1858_vm6 = vcmask 498688   ;;  %v3675_v37 = vld [vmem:[#allocation9] sm:$0xff] }
 0x3e3   : > { %v5018_v40 = vpop.permute.xlu1 %1792  ;;  %v1581_v9 = vadd.f32 %v1575_v3, %v1544_v63 }
 0x3e4   : > { %v5011_v11 = vpop.permute.xlu0 %1794  ;;  %v1666_v53 = vadd.f32 %v4913_v22, %v1641_v30  ;;  %v1642_v38 = vadd.f32 %v1636_v1, %v1617_v57  ;;  %v1797_v33 = vsel %vm1796_vm4, %v5000_v23, %v5018_v40 }
 0x3e5   : > { %v1618_v44 = vadd.f32 %v1612_v7, %v1581_v9  ;;  %v1798_v43 = vsel %vm1796_vm4, %v5018_v40, %v5011_v11  ;;  %v5598_v7 = vmov 11  }
 0x3e6   : > { %v1691_v24 = vadd.f32 %v4933_v10, %v1666_v53  ;;  %v1667_v36 = vadd.f32 %v1661_v4, %v1642_v38  ;;  %v1760_v10 = vsel %vm1759_vm8, %v4982_v54, %v4988_v50  ;;  %vm1895_vm8 = vcmask 490496  }
 0x3e7   : > { %v1816_v55 = vpop.permute.xlu1 %1815  ;;  %v1643_v13 = vadd.f32 %v1637_v59, %v1618_v44 }
 0x3e8   : > { %v5025_v21 = vpop.permute.xlu0 %1817  ;;  %v1728_v16 = vadd.f32 %v4952_v60, %v1691_v24  ;;  %v1692_v14 = vadd.f32 %v1686_v25, %v1667_v36  ;;  %v5599_v25 = vld [vmem:[#allocation44_spill] sm:$0xff] }
 0x3e9   : > { %v1668_v22 = vadd.f32 %v1662_v48, %v1643_v13 }
 0x3ea   : > { %v1765_v28 = vadd.f32 %v4982_v54, %v1728_v16  ;;  %v1729_v19 = vadd.f32 %v1723_v29, %v1692_v14  ;;  %v1822_v54 = vsel %vm1821_vm5, %v1816_v55, %v5025_v21 }
 0x3eb   : > { %v1820_v45 = vpop.permute.xlu1 %1819  ;;  %v1693_v51 = vadd.f32 %v1687_v18, %v1668_v22 }
 0x3ec   : > { %v1853_v34 = vpop.permute.xlu0 %1852  ;;  %v1802_v56 = vadd.f32 %v5000_v23, %v1765_v28  ;;  %v1766_v47 = vadd.f32 %v1760_v10, %v1729_v19  ;;  %v1823_v50 = vsel %vm1821_vm5, %v5025_v21, %v1820_v45  ;;  %v5600_v28 = vld [vmem:[#allocation45_spill] sm:$0xff]  ;;  %v3676_v10 = vld [vmem:[#allocation12] sm:$0xff]  ;;  %v5602_v19 = vmov 0.0  }
 0x3ed   : > { %v1730_v6 = vadd.f32 %v1724_v61, %v1693_v51 }
 0x3ee   : > { %v1827_v52 = vadd.f32 %v1816_v55, %v1802_v56  ;;  %v1803_v26 = vadd.f32 %v1797_v33, %v1766_v47  ;;  %v5601_v56 = vld [vmem:[#allocation43_spill] sm:$0xff] }
 0x3ef   : > { %v1855_v8 = vpop.permute.xlu1 %1854  ;;  %v1767_v5 = vadd.f32 %v1761_v17, %v1730_v6 }
 0x3f0   : > { %v1857_v15 = vpop.permute.xlu0 %1856  ;;  %v1864_v49 = vadd.f32 %v1853_v34, %v1827_v52  ;;  %v1859_v58 = vsel %vm1858_vm6, %v1853_v34, %v1855_v8  ;;  %v1828_v23 = vadd.f32 %v1822_v54, %v1803_v26  ;;  %v5107_v52 = vld [vmem:[#allocation8] sm:$0xff] }
 0x3f1   : > { %v1804_v12 = vadd.f32 %v1798_v43, %v1767_v5  ;;  %v1860_v31 = vsel %vm1858_vm6, %v1855_v8, %v1857_v15 }
 0x3f2   : > { %v1865_v11 = vadd.f32 %v1859_v58, %v1828_v23 }
 0x3f3   : > { %v1829_v46 = vadd.f32 %v1823_v50, %v1804_v12 }
 0x3f4   : > { %v1890_v60 = vpop.permute.xlu0 %1889 }
 0x3f5   : > { %v1901_v35 = vadd.f32 %v1890_v60, %v1864_v49  ;;  %v1866_v40 = vadd.f32 %v1860_v31, %v1829_v46  ;;  %v1044_v49 = vld [vmem:[#allocation11] sm:$0xff] }
 0x3f8   : > { %v1894_v32 = vpop.permute.xlu0 %1893 }
 0x3fc   : > { %v1906_v2 = vpop.permute.xlu1 %1905 }
 0x3fd   : > { %v5073_v42 = vadd.f32 %v1906_v2, %v1901_v35 }
 0x3ff   : > { %1914 = vrot.lane.b32.xlu0 %v5073_v42, %s4047_s5  ;;  %v1927_v55 = vmul.f32 %v5073_v42, %v5073_v42 }
 0x400   : > { %v1892_v27 = vpop.permute.xlu1 %1891 }
 0x401   : > { %v1896_v0 = vsel %vm1895_vm8, %v1890_v60, %v1892_v27  ;;  %v1897_v21 = vsel %vm1895_vm8, %v1892_v27, %v1894_v32 }
 0x402   : > { %v1902_v3 = vadd.f32 %v1896_v0, %v1865_v11  ;;  %v1903_v30 = vadd.f32 %v1897_v21, %v1866_v40  ;;  %v4078_v11 = vmov 27   ;;  %v5603_v21 = vmov 8  }
 0x403   : > { %3634 = vset.pattern.permute.xlu0 %v4078_v11 }
 0x404   : > { %v5077_v62 = vadd.f32 %v1906_v2, %v1902_v3  ;;  %v5079_v63 = vadd.f32 %v1906_v2, %v1903_v30 }
 0x406   : > { %1916 = vrot.lane.b32.xlu1 %v5077_v62, %s4047_s5  ;;  %1918 = vrot.lane.b32.xlu0 %v5079_v63, %s4047_s5  ;;  %v1928_v34 = vmul.f32 %v5077_v62, %v5077_v62  ;;  %v1929_v39 = vmul.f32 %v5079_v63, %v5079_v63 }
 0x40a   : > { %1030 = vperm.xlu1 %3631, %v4904_v41   ;;  %1933 = vrot.lane.b32.xlu0 %v1927_v55, %s4047_s5 }
 0x40e   : > { %1935 = vrot.lane.b32.xlu1 %v1928_v34, %s4047_s5  ;;  %1937 = vrot.lane.b32.xlu0 %v1929_v39, %s4047_s5 }
 0x40f   : > { %3632 = vset.pattern.permute.xlu1 %v5598_v7 }
 0x43b   : > { %v1025_v53 = vpop.permute.xlu1 %1024 }
 0x43c   : > { %v1027_v9 = vsub.f32 %v3675_v37, %v1025_v53 }
 0x43e   : > { %1038 = vperm.xlu1 %3632, %v1027_v9  }
 0x442   : > { %3633 = vset.pattern.permute.xlu1 %v5597_v20 }
 0x471   : > { %v1915_v41 = vpop.permute.xlu0 %1914 }
 0x478   : > { %v1917_v1 = vpop.permute.xlu1 %1916  ;;  %v1919_v59 = vpop.permute.xlu0 %1918 }
 0x479   : > { %v1920_v24 = vsel %vm1871_vm9, %v1915_v41, %v1917_v1  ;;  %v1921_v57 = vsel %vm1871_vm9, %v1917_v1, %v1919_v59  ;;  %v2118_v59 = vld [vmem:[#allocation14] sm:$0xff] }
 0x47a   : > { %v1924_v44 = vadd.f32 %v1921_v57, %v1920_v24  ;;  %v5135_v24 = vld [vmem:[#allocation15] sm:$0xff]  ;;  %v5607_v57 = vmov 2  }
 0x47c   : > { %1925 = vadd.xlane.f32.xlu0 %v1924_v44  ;;  %v1934_v4 = vpop.permute.xlu0 %1933  ;;  %v5608_v44 = vmov 4  }
 0x480   : > { %v1938_v16 = vpop.permute.xlu0 %1937 }
 0x485   : > { %v1031_v48 = vpop.permute.xlu1 %1030 }
 0x486   : > { %v1034_v18 = vmul.f32 %v1031_v48, %v5599_v25  ;;  %v1035_v36 = vmul.f32 %v1031_v48, %v5600_v28  ;;  %v1033_v14 = vmul.f32 %v1031_v48, %v5601_v56  ;;  %v5610_v48 = vmov 5  }
 0x489   : > { %v1936_v38 = vpop.permute.xlu1 %1935 }
 0x48a   : > { %v1939_v13 = vsel %vm1871_vm9, %v1934_v4, %v1936_v38  ;;  %v1940_v45 = vsel %vm1871_vm9, %v1936_v38, %v1938_v16  ;;  %v5609_v4 = vmov 9   ;;  %v5611_v16 = vmov 7  }
 0x48b   : > { %v1943_v15 = vadd.f32 %v1940_v45, %v1939_v13 }
 0x48d   : > { %1944 = vadd.xlane.f32.xlu1 %v1943_v15 }
 0x4b9   : > { %v1039_v22 = vpop.permute.xlu1 %1038 }
 0x4ba   : > { %v1042_v29 = vadd.f32 %v1039_v22, %v1034_v18  ;;  %v1043_v61 = vadd.f32 %v1039_v22, %v1035_v36  ;;  %v1041_v51 = vadd.f32 %v1039_v22, %v1033_v14  ;;  %v5613_v14 = vld [vmem:[#allocation32_spill] sm:$0xff] }
 0x4bc   : > { %1055 = vrot.lane.b32.xlu0 %v1042_v29, %s4023_s11  ;;  %1057 = vrot.lane.b32.xlu1 %v1043_v61, %s4023_s11 }
 0x4c0   : > { %1053 = vrot.lane.b32.xlu0 %v1041_v51, %s4023_s11  ;;  %2092 = vrot.lane.b32.xlu1 %v3676_v10, %s4077_s20 }
 0x505   : > { %v1926_v17 = vpop.xlane.xlu0 %1925 }
 0x506   : > { %3273 = vmatpush3.msra.mxu1 %v1926_v17  ;;  %v5614_v17 = vld [vmem:[#allocation26_spill] sm:$0xff] }
 0x507   : > { %3275 = vmatmul.mubr.msk.f32.vlgmr.msra.gmra.mxu1 %vm868_vm3, %v5107_v52 }
 0x508   : > { %2203 = vmatprep.mubr.f32.mxu1 %v5602_v19 }
 0x516   : > { %v1945_v6 = vpop.xlane.xlu1 %1944 }
 0x52e   : > { %v1058_v8 = vpop.permute.xlu1 %1057  ;;  %v1056_v60 = vpop.permute.xlu0 %1055 }
 0x52f   : > { %v1060_v33 = vsel %vm793_vm10, %v1056_v60, %v1058_v8 }
 0x530   : > { %1095 = vmatprep.subr.mxu0 %v1060_v33  ;;  %v5615_v33 = vld [vmem:[#allocation31_spill] sm:$0xff] }
 0x532   : > { %v1054_v43 = vpop.permute.xlu0 %1053  ;;  %v2093_v40 = vpop.permute.xlu1 %2092 }
 0x533   : > { %v1059_v47 = vsel %vm793_vm10, %v1054_v43, %v1056_v60 }
 0x534   : > { %1096 = vmatpush1.msra.mxu0 %v1059_v47 }
 0x535   : > { %3227 = vmatmul.mubr.msk.f32.vlgmr.msra.gmra.mxu0 %vm868_vm3, %v1044_v49  ;;  %3277 = vmatprep.subr.mxu0 %v5602_v19 }
 0x536   : > { %3278 = vmatpush3.msra.mxu0 %v1945_v6  ;;  %3279 = vmatprep.mubr.msk.f32.mxu0 %vm4032_vm2, %v5602_v19 }
 0x537   : > { %3282 = vmatprep.subr.mxu0 %v5602_v19 }
 0x539   : > { %3280 = vmatmul.mubr.msk.f32.vlgmr.msra.gmra.mxu0 %vm868_vm3, %v5107_v52 }
 0x53a   : > { %3284 = vmatprep.mubr.msk.f32.mxu0 %vm4032_vm2, %v5602_v19 }
 0x5c7   : > { %v2012_v5 = vpop.f32.mrf.mxu1 }
 0x5c8   : > { %v2016_v50 = vmul.f32 0.001953125, %v2012_v5 }
 0x5c9   : > { %v3276_v54 = vpop.f32.mrf.mxu1 }
 0x5ca   : > { %v2088_v12 = vmul.f32 %v2016_v50, %v2016_v50 }
 0x5f5   : > { %v5123_v35 = vpop.f32.mrf.mxu0 }
 0x5f7   : > { %v5125_v26 = vpop.f32.mrf.mxu0 }
 0x5f9   : > { %v2083_v2 = vpop.f32.mrf.mxu0 }
 0x5fa   : > { %v2087_v58 = vmul.f32 0.001953125, %v2083_v2 }
 0x5fb   : > { %v3281_v31 = vpop.f32.mrf.mxu0 }
 0x5fc   : > { %v2089_v23 = vsub.f32 %v2087_v58, %v2088_v12 }
 0x5fe   : > { %v2090_v46 = vadd.f32 1e-05, %v2089_v23 }
 0x600   : > { %3653 = vrsqrt.f32 %v2090_v46 }
 0x60d   : > { %v3654_v32 = vpop.eup %3653 }
 0x60e   : > { %v2095_v27 = vmul.f32 %v3654_v32, %v2093_v40 }
 0x610   : > { %v2096_v0 = vmul.f32 %v2095_v27, %v2016_v50  ;;  %2104 = vperm.xlu1 %3633, %v2095_v27  }
 0x612   : > { %2098 = vrot.lane.b32.xlu0 %v2096_v0, %s4079_s23 }
 0x614   : > { %3635 = vset.pattern.permute.xlu1 %v5603_v21 }
 0x684   : > { %v2099_v3 = vpop.permute.xlu0 %2098 }
 0x685   : > { %v2101_v30 = vsub.f32 %v3676_v10, %v2099_v3 }
 0x687   : > { %2112 = vperm.xlu0 %3634, %v2101_v30  }
 0x68b   : > { %3636 = vset.pattern.permute.xlu0 %v5603_v21  ;;  %v2105_v55 = vpop.permute.xlu1 %2104 }
 0x68c   : > { %v2107_v34 = vmul.f32 %v2105_v55, %v5073_v42  ;;  %v2108_v39 = vmul.f32 %v2105_v55, %v5077_v62  ;;  %v2109_v41 = vmul.f32 %v2105_v55, %v5079_v63  ;;  %v5604_v42 = vmov 3  }
 0x68d   : > { %v5605_v62 = vmov 1   ;;  %v5606_v63 = vmov 6  }
 0x702   : > { %v2113_v53 = vpop.permute.xlu0 %2112 }
 0x703   : > { %v2115_v37 = vadd.f32 %v2113_v53, %v2107_v34  ;;  %v2116_v9 = vadd.f32 %v2113_v53, %v2108_v39  ;;  %v2117_v1 = vadd.f32 %v2113_v53, %v2109_v41 }
 0x705   : > { %2129 = vrot.lane.b32.xlu1 %v2116_v9, %s4047_s5  ;;  %2127 = vrot.lane.b32.xlu0 %v2115_v37, %s4047_s5 }
 0x709   : > { %2131 = vrot.lane.b32.xlu1 %v2117_v1, %s4047_s5  ;;  %1047 = vperm.xlu0 %3636, %v1044_v49  }
 0x70d   : > { %2121 = vperm.xlu1 %3635, %v2118_v59   ;;  %3639 = vset.pattern.permute.xlu0 %v5604_v42 }
 0x70e   : > { %2345 = vperm.xlu0 %3639, %v5135_v24  }
 0x711   : > { %3637 = vset.pattern.permute.xlu1 %v5605_v62 }
 0x712   : > { %2291 = vperm.xlu1 %3637, %v5135_v24   ;;  %3642 = vset.pattern.permute.xlu0 %v5606_v63 }
 0x713   : > { %2418 = vperm.xlu0 %3642, %v5135_v24  }
 0x716   : > { %3638 = vset.pattern.permute.xlu1 %v5607_v57 }
 0x717   : > { %2318 = vperm.xlu1 %3638, %v5135_v24   ;;  %3645 = vset.pattern.permute.xlu0 %v5597_v20 }
 0x718   : > { %2284 = vperm.xlu0 %3645, %v5135_v24  }
 0x71b   : > { %3640 = vset.pattern.permute.xlu1 %v5608_v44 }
 0x71c   : > { %2369 = vperm.xlu1 %3640, %v5135_v24   ;;  %3646 = vset.pattern.permute.xlu0 %v5609_v4 }
 0x720   : > { %3641 = vset.pattern.permute.xlu1 %v5610_v48 }
 0x721   : > { %2391 = vperm.xlu1 %3641, %v5135_v24  }
 0x725   : > { %3643 = vset.pattern.permute.xlu1 %v5611_v16 }
 0x726   : > { %2442 = vperm.xlu1 %3643, %v5135_v24  }
 0x72a   : > { %3644 = vset.pattern.permute.xlu1 %v5603_v21 }
 0x72b   : > { %2469 = vperm.xlu1 %3644, %v5135_v24  }
 0x72f   : > { %3647 = vset.pattern.permute.xlu1 %v5597_v20  ;;  %v5612_v20 = vld [vmem:[#allocation28_spill] sm:$0xff] }
 0x777   : > { %v2130_v38 = vpop.permute.xlu1 %2129  ;;  %v2128_v13 = vpop.permute.xlu0 %2127 }
 0x778   : > { %v2133_v25 = vsel %vm1871_vm9, %v2128_v13, %v2130_v38 }
 0x77b   : > { %v2132_v45 = vpop.permute.xlu1 %2131 }
 0x77c   : > { %v2134_v15 = vsel %vm1871_vm9, %v2130_v38, %v2132_v45 }
 0x77d   : > { %2169 = vmatprep.subr.mxu1 %v2134_v15 }
 0x77e   : > { %2170 = vmatpush1.msra.mxu1 %v2133_v25 }
 0x77f   : > { %3230 = vmatmul.mubr.msk.f32.vlgmr.msra.gmra.mxu1 %vm868_vm3, %v2118_v59  ;;  %3287 = vmatprep.subr.mxu1 %v5602_v19 }
 0x780   : > { %3289 = vmatprep.mubr.msk.f32.mxu1 %vm4032_vm2, %v5602_v19 }
 0x784   : > { %v1048_v18 = vpop.permute.xlu0 %1047 }
 0x785   : > { %v1132_v57 = vadd.f32 %v5123_v35, %v1048_v18  ;;  %v1134_v13 = vadd.f32 %v5125_v26, %v1048_v18 }
 0x787   : > { %v1136_v15 = vmul.f32 0.5, %v1132_v57 }
 0x788   : > { %v2122_v28 = vpop.permute.xlu1 %2121 }
 0x789   : > { %v5163_v36 = vpop.permute.xlu0 %2345  ;;  %3655 = vtanh.f32 %v1136_v15 }
 0x78a   : > { %v2348_v22 = vmul.f32 %v5163_v36, %v5612_v20 }
 0x78c   : > { %2354 = vrot.lane.b32.xlu0 %v2348_v22, %s4027_s26 }
 0x78d   : > { %v5168_v29 = vpop.permute.xlu1 %2291 }
 0x78e   : > { %v2294_v61 = vmul.f32 0.0, %v5168_v29  ;;  %v5171_v56 = vpop.permute.xlu0 %2418 }
 0x78f   : > { %v2423_v51 = vmul.f32 %v5171_v56, %v5613_v14  ;;  %v1137_v14 = vmul.f32 0.5, %v1134_v13  ;;  %v5619_v13 = vld [vmem:[#allocation29_spill] sm:$0xff] }
 0x790   : > { %2300 = vrot.lane.b32.xlu1 %v2294_v61, %s4017_s2 }
 0x791   : > { %2431 = vrot.lane.b32.xlu0 %v2423_v51, %s4029_s22 }
 0x792   : > { %v5177_v10 = vpop.permute.xlu1 %2318 }
 0x793   : > { %v2321_v6 = vmul.f32 %v5177_v10, %v5614_v17 }
 0x795   : > { %2327 = vrot.lane.b32.xlu1 %v2321_v6, %s4026_s29 }
 0x797   : > { %v5182_v8 = vpop.permute.xlu1 %2369 }
 0x79c   : > { %v5184_v60 = vpop.permute.xlu1 %2391 }
 0x79d   : > { %v2396_v43 = vmul.f32 %v5184_v60, %v5615_v33 }
 0x79f   : > { %2404 = vrot.lane.b32.xlu1 %v2396_v43, %s4028_s27 }
 0x7a1   : > { %v5189_v49 = vpop.permute.xlu1 %2442 }
 0x7a2   : > { %v2447_v47 = vmul.f32 0.0, %v5189_v49 }
 0x7a4   : > { %2455 = vrot.lane.b32.xlu1 %v2447_v47, %s4030_s25 }
 0x83f   : > { %v2205_v5 = vpop.f32.mrf.mxu1 }
 0x840   : > { %v5193_v54 = vadd.f32 %v2205_v5, %v2122_v28 }
 0x841   : > { %v2207_v50 = vpop.f32.mrf.mxu1 }
 0x842   : > { %v2212_v12 = vmul.f32 0.70710677, %v5193_v54  ;;  %v5196_v2 = vadd.f32 %v2207_v50, %v2122_v28  ;;  %v3656_v50 = vpop.eup %3655 }
 0x844   : > { %v3231_v58 = vclamps-f32 %v2212_v12, 4.0  ;;  %v2213_v31 = vmul.f32 0.70710677, %v5196_v2 }
 0x846   : > { %v2218_v23 = vmul.f32 %v3231_v58, %v3231_v58  ;;  %v3232_v46 = vclamps-f32 %v2213_v31, 4.0 }
 0x848   : > { %v2238_v11 = vmul.f32 -1.1791603e-07, %v2218_v23  ;;  %v2219_v40 = vmul.f32 %v3232_v46, %v3232_v46  ;;  %v2220_v0 = vmul.f32 0.00022905065, %v2218_v23 }
 0x84a   : > { %v2240_v32 = vadd.f32 2.3547966e-05, %v2238_v11  ;;  %v2239_v27 = vmul.f32 -1.1791603e-07, %v2219_v40  ;;  %v2221_v34 = vmul.f32 0.00022905065, %v2219_v40 }
 0x84b   : > { %v2222_v53 = vadd.f32 0.003408291, %v2220_v0 }
 0x84c   : > { %v2242_v3 = vmul.f32 %v2240_v32, %v2218_v23  ;;  %v2241_v30 = vadd.f32 2.3547966e-05, %v2239_v27  ;;  %v2223_v1 = vadd.f32 0.003408291, %v2221_v34  ;;  %v1140_v27 = vadd.f32 1.0, %v3656_v50 }
 0x84d   : > { %v2224_v42 = vmul.f32 %v2222_v53, %v2218_v23 }
 0x84e   : > { %v2244_v55 = vadd.f32 0.0010179626, %v2242_v3  ;;  %v2243_v39 = vmul.f32 %v2241_v30, %v2219_v40  ;;  %v2225_v4 = vmul.f32 %v2223_v1, %v2219_v40 }
 0x84f   : > { %v2226_v16 = vadd.f32 0.050955694, %v2224_v42 }
 0x850   : > { %v2246_v37 = vmul.f32 %v2244_v55, %v2218_v23  ;;  %v2245_v9 = vadd.f32 0.0010179626, %v2243_v39  ;;  %v2227_v28 = vadd.f32 0.050955694, %v2225_v4  ;;  %v2210_v55 = vmul.f32 0.5, %v5193_v54 }
 0x851   : > { %v2228_v22 = vmul.f32 %v2226_v16, %v2218_v23 }
 0x852   : > { %v2248_v41 = vadd.f32 0.01407047, %v2246_v37  ;;  %v2247_v59 = vmul.f32 %v2245_v9, %v2219_v40  ;;  %v2229_v6 = vmul.f32 %v2227_v28, %v2219_v40  ;;  %v1142_v37 = vmul.f32 0.5, %v1140_v27  ;;  %v5620_v28 = vld [vmem:[#allocation25_spill] sm:$0xff] }
 0x853   : > { %v2230_v33 = vadd.f32 0.18520832, %v2228_v22  ;;  %v5621_v22 = vld [vmem:[#allocation27_spill] sm:$0xff] }
 0x854   : > { %v2250_v62 = vmul.f32 %v2248_v41, %v2218_v23  ;;  %v2249_v63 = vadd.f32 0.01407047, %v2247_v59  ;;  %v2231_v47 = vadd.f32 0.18520832, %v2229_v6  ;;  %v2470_v6 = vpop.permute.xlu1 %2469 }
 0x855   : > { %v2232_v26 = vmul.f32 %v2230_v33, %v2218_v23  ;;  %v5623_v33 = vld [vmem:[#allocation36_spill] sm:$0xff] }
 0x856   : > { %v2252_v44 = vadd.f32 0.11098505, %v2250_v62  ;;  %v2251_v48 = vmul.f32 %v2249_v63, %v2219_v40  ;;  %v2233_v18 = vmul.f32 %v2231_v47, %v2219_v40 }
 0x857   : > { %v2234_v5 = vadd.f32 1.1283791, %v2232_v26 }
 0x858   : > { %v2254_v38 = vmul.f32 %v2252_v44, %v2218_v23  ;;  %v2253_v45 = vadd.f32 0.11098505, %v2251_v48  ;;  %v2235_v12 = vadd.f32 1.1283791, %v2233_v18  ;;  %v5617_v44 = vld [vmem:[#allocation34_spill] sm:$0xff] }
 0x859   : > { %v2236_v31 = vmul.f32 %v3231_v58, %v2234_v5  ;;  %v5618_v48 = vld [vmem:[#allocation30_spill] sm:$0xff] }
 0x85a   : > { %v2256_v25 = vadd.f32 0.49746925, %v2254_v38  ;;  %v2255_v20 = vmul.f32 %v2253_v45, %v2219_v40  ;;  %v2237_v3 = vmul.f32 %v3232_v46, %v2235_v12  ;;  %v5616_v46 = vld [vmem:[#allocation33_spill] sm:$0xff]  ;;  %v5625_v5 = vld [vmem:[#allocation38_spill] sm:$0xff]  ;;  %v5626_v12 = vld [vmem:[#allocation39_spill] sm:$0xff] }
 0x85c   : > { %v2258_v61 = vmul.f32 %v2256_v25, %v2218_v23  ;;  %v2257_v51 = vadd.f32 0.49746925, %v2255_v20  ;;  %v2211_v23 = vmul.f32 0.5, %v5196_v2 }
 0x85e   : > { %v2260_v17 = vadd.f32 1.0, %v2258_v61  ;;  %v2259_v35 = vmul.f32 %v2257_v51, %v2219_v40  ;;  %v5622_v51 = vld [vmem:[#allocation35_spill] sm:$0xff] }
 0x860   : > { %3657 = vrcp.f32 %v2260_v17  ;;  %v2261_v43 = vadd.f32 1.0, %v2259_v35 }
 0x861   : > { %3659 = vtanh.f32 %v1137_v14 }
 0x862   : > { %3661 = vrcp.f32 %v2261_v43 }
 0x86d   : > { %v3658_v11 = vpop.eup %3657 }
 0x86e   : > { %v3660_v32 = vpop.eup %3659  ;;  %v2263_v0 = vmul.f32 %v3658_v11, %v2236_v31  ;;  %v2474_v31 = vmul.f32 %v2470_v6, %v5626_v12  ;;  %v2285_v11 = vpop.permute.xlu0 %2284 }
 0x86f   : > { %v3662_v30 = vpop.eup %3661  ;;  %v1141_v39 = vadd.f32 1.0, %v3660_v32 }
 0x870   : > { %v2266_v34 = vadd.f32 1.0, %v2263_v0  ;;  %v2265_v53 = vmul.f32 %v3662_v30, %v2237_v3 }
 0x871   : > { %v1143_v1 = vmul.f32 0.5, %v1141_v39 }
 0x872   : > { %v2268_v9 = vmul.f32 %v2266_v34, %v2210_v55  ;;  %v2267_v40 = vadd.f32 1.0, %v2265_v53  ;;  %v2355_v27 = vpop.permute.xlu0 %2354 }
 0x874   : > { %v5203_v41 = vmul.f32 %v2268_v9, %v1142_v37  ;;  %v2269_v58 = vmul.f32 %v2267_v40, %v2211_v23  ;;  %v5627_v40 = vld [vmem:[#allocation42_spill] sm:$0xff] }
 0x876   : > { %v2295_v59 = vmul.f32 %v5168_v29, %v5203_v41  ;;  %v5207_v42 = vmul.f32 %v2269_v58, %v1143_v1  ;;  %v2315_v62 = vmul.f32 %v5203_v41, %v5616_v46  ;;  %v2372_v2 = vmul.f32 %v5182_v8, %v5203_v41  ;;  %v2432_v3 = vpop.permute.xlu0 %2431  ;;  %v5628_v58 = vld [vmem:[#allocation41_spill] sm:$0xff] }
 0x877   : > { %v2445_v57 = vmul.f32 %v5189_v49, %v5203_v41  ;;  %v2342_v4 = vmul.f32 %v5203_v41, %v5617_v44  ;;  %v2414_v16 = vmul.f32 %v5618_v48, %v5203_v41  ;;  %v2387_v45 = vmul.f32 %v5619_v13, %v5203_v41 }
 0x878   : > { %2302 = vrot.lane.b32.xlu1 %v2295_v59, %s4017_s2  ;;  %v2296_v54 = vmul.f32 %v5168_v29, %v5207_v42  ;;  %v2322_v63 = vmul.f32 %v5177_v10, %v2315_v62  ;;  %v2373_v29 = vmul.f32 %v5182_v8, %v5207_v42  ;;  %v2316_v20 = vmul.f32 %v5620_v28, %v5207_v42  ;;  %v5629_v62 = vld [vmem:[#allocation40_spill] sm:$0xff] }
 0x879   : > { %v2349_v38 = vmul.f32 %v5163_v36, %v2342_v4  ;;  %v2421_v15 = vmul.f32 %v5171_v56, %v2414_v16  ;;  %v2394_v25 = vmul.f32 %v5184_v60, %v2387_v45  ;;  %v2446_v8 = vmul.f32 %v5189_v49, %v5207_v42  ;;  %v5624_v49 = vld [vmem:[#allocation37_spill] sm:$0xff] }
 0x87a   : > { %2304 = vrot.lane.b32.xlu0 %v2296_v54, %s4017_s2  ;;  %v2343_v61 = vmul.f32 %v5621_v22, %v5207_v42  ;;  %v2323_v14 = vmul.f32 %v5177_v10, %v2316_v20  ;;  %v2465_v17 = vmul.f32 %v5622_v51, %v5203_v41  ;;  %v2388_v43 = vmul.f32 %v5207_v42, %v5623_v33 }
 0x87b   : > { %v2415_v26 = vmul.f32 %v5207_v42, %v5624_v49  ;;  %v2466_v50 = vmul.f32 %v5207_v42, %v5625_v5  ;;  %v2287_v1 = vmul.f32 %v2285_v11, %v5627_v40 }
 0x87c   : > { %2376 = vrot.lane.b32.xlu1 %v2372_v2, %s4022_s24  ;;  %v2350_v35 = vmul.f32 %v5163_v36, %v2343_v61  ;;  %v2472_v47 = vmul.f32 %v2470_v6, %v2465_v17  ;;  %v2395_v10 = vmul.f32 %v5184_v60, %v2388_v43  ;;  %v2301_v60 = vpop.permute.xlu1 %2300  ;;  %v2281_v2 = vmul.f32 %v5629_v62, %v5207_v42 }
 0x87d   : > { %v2422_v18 = vmul.f32 %v5171_v56, %v2415_v26  ;;  %v2473_v36 = vmul.f32 %v2470_v6, %v2466_v50 }
 0x87e   : > { %2329 = vrot.lane.b32.xlu0 %v2322_v63, %s4026_s29 }
 0x880   : > { %2451 = vrot.lane.b32.xlu1 %v2445_v57, %s4030_s25  ;;  %v2328_v56 = vpop.permute.xlu1 %2327 }
 0x882   : > { %2378 = vrot.lane.b32.xlu0 %v2373_v29, %s4022_s24 }
 0x884   : > { %2356 = vrot.lane.b32.xlu1 %v2349_v38, %s4027_s26  ;;  %v2405_v32 = vpop.permute.xlu1 %2404  ;;  %v2289_v38 = vmul.f32 %v2285_v11, %v2281_v2 }
 0x886   : > { %2427 = vrot.lane.b32.xlu0 %v2421_v15, %s4029_s22 }
 0x888   : > { %2400 = vrot.lane.b32.xlu1 %v2394_v25, %s4028_s27  ;;  %v2456_v0 = vpop.permute.xlu1 %2455 }
 0x88a   : > { %2453 = vrot.lane.b32.xlu0 %v2446_v8, %s4030_s25 }
 0x88c   : > { %2331 = vrot.lane.b32.xlu1 %v2323_v14, %s4026_s29 }
 0x88e   : > { %2358 = vrot.lane.b32.xlu0 %v2350_v35, %s4027_s26 }
 0x890   : > { %2478 = vrot.lane.b32.xlu1 %v2472_v47, %s4031_s17 }
 0x892   : > { %2402 = vrot.lane.b32.xlu0 %v2395_v10, %s4028_s27 }
 0x894   : > { %2429 = vrot.lane.b32.xlu1 %v2422_v18, %s4029_s22  ;;  %s3249_s22 = sshll.u32 %s4160_s19, 8  ;;  %s4080_s19 = smov [#allocation18]  }
 0x895   : > { %s5437_s5 = scalar_lea.hbm %s5490_s10, %s3249_s22  ;;  %s3920_s20 = sshll.u32 %s4080_s19, 4  ;;  %s3921_s20 = int_to_ptr.vmem [resolvable:$false] %s3920_s20 }
 0x896   : > { %2493 = vperm.xlu0 %3646, %v5135_v24   ;;  %s3922_s23 = scalar_lea.vmem %s3921_s20, 1024 }
 0x898   : > { %2480 = vrot.lane.b32.xlu1 %v2473_v36, %s4031_s17 }
 0x89a   : > { %2482 = vrot.lane.b32.xlu0 %v2474_v31, %s4031_s17 }
 0x89b   : > { %3648 = vset.pattern.permute.xlu0 %v5598_v7  ;;  %v2280_v7 = vmul.f32 %v5203_v41, %v5628_v58 }
 0x89d   : > { %v2288_v29 = vmul.f32 %v2285_v11, %v2280_v7 }
 0x8ea   : > { %v2303_v30 = vpop.permute.xlu1 %2302 }
 0x8eb   : > { %v2306_v9 = vsel %vm589_vm7, %v2301_v60, %v2303_v30 }
 0x8ec   : > { %v2305_v55 = vpop.permute.xlu0 %2304  ;;  %v2311_v54 = vadd.f32 %v2306_v9, %v2287_v1 }
 0x8ed   : > { %v2307_v44 = vsel %vm589_vm7, %v2303_v30, %v2305_v55  ;;  %v2313_v15 = vadd.f32 %v2305_v55, %v2289_v38 }
 0x8ee   : > { %v2377_v34 = vpop.permute.xlu1 %2376  ;;  %v2312_v13 = vadd.f32 %v2307_v44, %v2288_v29 }
 0x8f0   : > { %v2330_v39 = vpop.permute.xlu0 %2329 }
 0x8f1   : > { %v2333_v59 = vsel %vm626_vm12, %v2328_v56, %v2330_v39 }
 0x8f2   : > { %v2452_v53 = vpop.permute.xlu1 %2451  ;;  %v2338_v4 = vadd.f32 %v2333_v59, %v2311_v54 }
 0x8f4   : > { %v2379_v37 = vpop.permute.xlu0 %2378 }
 0x8f5   : > { %v2380_v14 = vsel %vm557_vm11, %v2377_v34, %v2379_v37 }
 0x8f6   : > { %v2357_v23 = vpop.permute.xlu1 %2356 }
 0x8f7   : > { %v2360_v63 = vsel %vm662_vm13, %v2355_v27, %v2357_v23 }
 0x8f8   : > { %v2428_v46 = vpop.permute.xlu0 %2427  ;;  %v2365_v48 = vadd.f32 %v2360_v63, %v2338_v4 }
 0x8fa   : > { %v2401_v57 = vpop.permute.xlu1 %2400  ;;  %v2384_v28 = vadd.f32 %v2377_v34, %v2365_v48 }
 0x8fc   : > { %v2454_v16 = vpop.permute.xlu0 %2453  ;;  %v2411_v51 = vadd.f32 %v2401_v57, %v2384_v28 }
 0x8fd   : > { %v2457_v36 = vsel %vm780_vm0, %v2452_v53, %v2454_v16 }
 0x8fe   : > { %v2332_v45 = vpop.permute.xlu1 %2331  ;;  %v2438_v26 = vadd.f32 %v2428_v46, %v2411_v51 }
 0x8ff   : > { %v2334_v41 = vsel %vm626_vm12, %v2330_v39, %v2332_v45  ;;  %v2340_v8 = vadd.f32 %v2332_v45, %v2313_v15  ;;  %v3679_v45 = vld [vmem:[%s4319_s4] sm:$0xff] }
 0x900   : > { %v2339_v25 = vadd.f32 %v2334_v41, %v2312_v13  ;;  %v2359_v20 = vpop.permute.xlu0 %2358  ;;  %v2462_v12 = vadd.f32 %v2452_v53, %v2438_v26  ;;  %v3678_v13 = vld [vmem:[%s4319_s4 + $0x8] sm:$0xff] }
 0x901   : > { %v2361_v42 = vsel %vm662_vm13, %v2357_v23, %v2359_v20  ;;  %v2367_v35 = vadd.f32 %v2359_v20, %v2340_v8 }
 0x902   : > { %v2479_v22 = vpop.permute.xlu1 %2478  ;;  %v2366_v61 = vadd.f32 %v2361_v42, %v2339_v25 }
 0x903   : > { %v2386_v18 = vadd.f32 %v2379_v37, %v2367_v35  ;;  %v2489_v27 = vadd.f32 %v2479_v22, %v2462_v12 }
 0x904   : > { %v2385_v17 = vadd.f32 %v2380_v14, %v2366_v61  ;;  %v2403_v6 = vpop.permute.xlu0 %2402 }
 0x905   : > { %v2406_v33 = vsel %vm718_vm14, %v2401_v57, %v2403_v6  ;;  %v2407_v5 = vsel %vm718_vm14, %v2403_v6, %v2405_v32  ;;  %v2458_v32 = vsel %vm780_vm0, %v2454_v16, %v2456_v0 }
 0x906   : > { %v2430_v43 = vpop.permute.xlu1 %2429  ;;  %v2412_v47 = vadd.f32 %v2406_v33, %v2385_v17  ;;  %v2413_v60 = vadd.f32 %v2407_v5, %v2386_v18 }
 0x907   : > { %v2433_v49 = vsel %vm755_vm15, %v2428_v46, %v2430_v43  ;;  %v2434_v11 = vsel %vm755_vm15, %v2430_v43, %v2432_v3  ;;  %v2932_v43 = vld [vmem:[%s5489_s9] sm:$0xff] }
 0x908   : > { %v2439_v10 = vadd.f32 %v2433_v49, %v2412_v47  ;;  %v2440_v55 = vadd.f32 %v2434_v11, %v2413_v60 }
 0x90a   : > { %v2481_v50 = vpop.permute.xlu1 %2480  ;;  %v2463_v31 = vadd.f32 %v2457_v36, %v2439_v10  ;;  %v2464_v53 = vadd.f32 %v2458_v32, %v2440_v55  ;;  %v2706_v36 = vld [vmem:[#allocation17] sm:$0xff] }
 0x90b   : > { %v2484_v56 = vsel %vm817_vm1, %v2479_v22, %v2481_v50 }
 0x90c   : > { %v2490_v30 = vadd.f32 %v2484_v56, %v2463_v31 }
 0x911   : > { %v2494_v34 = vpop.permute.xlu0 %2493 }
 0x912   : > { %v5285_v39 = vadd.f32 %v2494_v34, %v2489_v27  ;;  %v5287_v9 = vadd.f32 %v2494_v34, %v2490_v30 }
 0x914   : > { %2504 = vrot.lane.b32.xlu0 %v5287_v9, %s4023_s11  ;;  %2502 = vrot.lane.b32.xlu1 %v5285_v39, %s4023_s11  ;;  %v2515_v23 = vmul.f32 %v5285_v39, %v5285_v39  ;;  %v2516_v58 = vmul.f32 %v5287_v9, %v5287_v9 }
 0x915   : > { %v2483_v37 = vpop.permute.xlu0 %2482 }
 0x916   : > { %v2485_v3 = vsel %vm817_vm1, %v2481_v50, %v2483_v37  ;;  %v2707_v50 = vld [vmem:[#allocation17 + $0x8] sm:$0xff] }
 0x917   : > { %v2491_v40 = vadd.f32 %v2485_v3, %v2464_v53 }
 0x918   : > { %2521 = vrot.lane.b32.xlu0 %v2515_v23, %s4023_s11 }
 0x919   : > { %v5298_v1 = vadd.f32 %v2494_v34, %v2491_v40 }
 0x91b   : > { %2506 = vrot.lane.b32.xlu1 %v5298_v1, %s4023_s11  ;;  %v2517_v0 = vmul.f32 %v5298_v1, %v5298_v1 }
 0x91d   : > { %2525 = vrot.lane.b32.xlu0 %v2517_v0, %s4023_s11 }
 0x91f   : > { %2523 = vrot.lane.b32.xlu1 %v2516_v58, %s4023_s11 }
 0x986   : > { %v2505_v7 = vpop.permute.xlu0 %2504  ;;  %v2503_v59 = vpop.permute.xlu1 %2502 }
 0x987   : > { %v2508_v62 = vsel %vm793_vm10, %v2503_v59, %v2505_v7 }
 0x98a   : > { %v2522_v54 = vpop.permute.xlu0 %2521 }
 0x98d   : > { %v2507_v46 = vpop.permute.xlu1 %2506 }
 0x98e   : > { %v2509_v2 = vsel %vm793_vm10, %v2505_v7, %v2507_v46 }
 0x98f   : > { %v2512_v63 = vadd.f32 %v2509_v2, %v2508_v62  ;;  %v2526_v57 = vpop.permute.xlu0 %2525 }
 0x991   : > { %v2524_v44 = vpop.permute.xlu1 %2523  ;;  %2513 = vadd.xlane.f32.xlu1 %v2512_v63 }
 0x992   : > { %v2527_v4 = vsel %vm793_vm10, %v2522_v54, %v2524_v44  ;;  %v2528_v29 = vsel %vm793_vm10, %v2524_v44, %v2526_v57 }
 0x993   : > { %v2531_v48 = vadd.f32 %v2528_v29, %v2527_v4 }
 0x995   : > { %2532 = vadd.xlane.f32.xlu0 %v2531_v48 }
 0x9ab   : > { %2680 = vrot.lane.b32.xlu0 %v5135_v24, %s4058_s28  ;;  %s3034_s28 = scalar_lea.sflag [#allocation5], %s4315_s3 }
 0xa1a   : > { %v2514_v16 = vpop.xlane.xlu1 %2513 }
 0xa1b   : > { %3283 = vmatpush3.msra.mxu0 %v2514_v16 }
 0xa1c   : > { %3285 = vmatmul.mubr.msk.f32.vlgmr.msra.gmra.mxu0 %vm868_vm3, %v5107_v52 }
 0xa1d   : > { %2799 = vmatprep.mubr.f32.mxu0 %v5602_v19 }
 0xa1e   : > { %v2533_v38 = vpop.xlane.xlu0 %2532 }
 0xa1f   : > { %3288 = vmatpush3.msra.mxu1 %v2533_v38 }
 0xa20   : > { %3290 = vmatmul.mubr.msk.f32.vlgmr.msra.gmra.mxu1 %vm868_vm3, %v5107_v52  ;;  %2978 = vmatprep.subr.mxu1 %v3678_v13 }
 0xa21   : > { %2979 = vmatpush1.msra.mxu1 %v3679_v45  ;;  %3012 = vmatprep.mubr.f32.mxu1 %v5602_v19 }
 0xa22   : > { %v2681_v14 = vpop.permute.xlu0 %2680 }
 0xa24   : > { %3241 = vmatmul.mubr.msk.f32.vlgmr.msra.gmra.mxu1 %vm868_vm3, %v2932_v43 }
 0xa25   : > { %3018 = vmatprep.mubr.f32.mxu1 %v5602_v19 }
 0xadc   : > { %v2600_v41 = vpop.f32.mrf.mxu0 }
 0xadd   : > { %v2604_v15 = vmul.f32 0.001953125, %v2600_v41 }
 0xade   : > { %v3286_v25 = vpop.f32.mrf.mxu0 }
 0xadf   : > { %v2676_v28 = vmul.f32 %v2604_v15, %v2604_v15 }
 0xae0   : > { %v2671_v20 = vpop.f32.mrf.mxu1 }
 0xae1   : > { %v2675_v8 = vmul.f32 0.001953125, %v2671_v20 }
 0xae2   : > { %v3291_v42 = vpop.f32.mrf.mxu1 }
 0xae3   : > { %v2677_v22 = vsub.f32 %v2675_v8, %v2676_v28 }
 0xae5   : > { %v2678_v61 = vadd.f32 1e-05, %v2677_v22 }
 0xae7   : > { %3663 = vrsqrt.f32 %v2678_v61 }
 0xaf4   : > { %v3664_v51 = vpop.eup %3663 }
 0xaf5   : > { %v2683_v17 = vmul.f32 %v3664_v51, %v2681_v14 }
 0xaf7   : > { %v2684_v52 = vmul.f32 %v2683_v17, %v2604_v15 }
 0xaf9   : > { %2686 = vrot.lane.b32.xlu1 %v2684_v52, %s4076_s1 }
 0xafd   : > { %2692 = vperm.xlu1 %3647, %v2683_v17  }
 0xb01   : > { %3649 = vset.pattern.permute.xlu1 %v5603_v21 }
 0xb6b   : > { %v2687_v6 = vpop.permute.xlu1 %2686 }
 0xb6c   : > { %v2689_v35 = vsub.f32 %v5135_v24, %v2687_v6 }
 0xb6e   : > { %2700 = vperm.xlu0 %3648, %v2689_v35  }
 0xb72   : > { %3650 = vset.pattern.permute.xlu0 %v5603_v21  ;;  %v2933_v21 = vld [vmem:[%s5489_s9 + $0x8] sm:$0xff] }
 0xb73   : > { %3242 = vmatmul.mubr.msk.f32.gmra.mxu1 %vm868_vm3, %v2933_v21 }
 0xb78   : > { %v2693_v33 = vpop.permute.xlu1 %2692 }
 0xb79   : > { %v2695_v47 = vmul.f32 %v2693_v33, %v5285_v39  ;;  %v2696_v49 = vmul.f32 %v2693_v33, %v5287_v9  ;;  %v2697_v24 = vmul.f32 %v2693_v33, %v5298_v1 }
 0xbe9   : > { %v2701_v26 = vpop.permute.xlu0 %2700 }
 0xbea   : > { %v2703_v10 = vadd.f32 %v2701_v26, %v2695_v47  ;;  %v2704_v18 = vadd.f32 %v2701_v26, %v2696_v49  ;;  %v2705_v5 = vadd.f32 %v2701_v26, %v2697_v24 }
 0xbec   : > { %2723 = vrot.lane.b32.xlu1 %v2704_v18, %s4023_s11  ;;  %2721 = vrot.lane.b32.xlu0 %v2703_v10, %s4023_s11 }
 0xbf0   : > { %2725 = vrot.lane.b32.xlu1 %v2705_v5, %s4023_s11  ;;  %2715 = vperm.xlu0 %3650, %v2707_v50   ;;  %s3220_s11 = sshll.u32 %s4315_s3, 5 }
 0xbf1   : > { %s477_s26 = scalar_lea.vmem [#allocation18], %s3220_s11 }
 0xbf2   : > { %s3047_s27 = sshll.u32 %s477_s26, 4  ;;  %s5432_s27 = int_to_ptr.vmem [resolvable:$true] %s3047_s27 }
 0xbf3   : > { %s3916_s1 = scalar_lea.vmem %s5432_s27, 512  ;;  %p3923_p0 = scmp.lt.s32.totalorder %s5432_s27, %s3921_s20 }
 0xbf4   : > { %2710 = vperm.xlu1 %3649, %v2706_v36   ;;  %p3917_p10 = scmp.ne.s32.totalorder %s5432_s27, %s3916_s1  ;;  %p3924_p7 = scmp.lt.s32.totalorder %s3922_s23, %s3916_s1 }
 0xbf6   : > { %p3918_p4 = pnand %p3917_p10, %p5630_p11  ;;  %p3925_p6 = por %p3924_p7, %p3923_p0 }
 0xbf8   : > { %2936 = vperm.xlu1 %3649, %v2932_v43   ;;  %p3919_p3 = pneg %p3918_p4 }
 0xbfa   : > { %p3926_p12 = pnand %p3925_p6, %p3919_p3 }
 0xbfc   : > { %2941 = vperm.xlu1 %3649, %v2933_v21  }
 0xc5e   : > { %v2724_v12 = vpop.permute.xlu1 %2723  ;;  %v2722_v31 = vpop.permute.xlu0 %2721 }
 0xc5f   : > { %v2727_v11 = vsel %vm793_vm10, %v2722_v31, %v2724_v12 }
 0xc62   : > { %v2726_v60 = vpop.permute.xlu1 %2725 }
 0xc63   : > { %v2728_v56 = vsel %vm793_vm10, %v2724_v12, %v2726_v60 }
 0xc64   : > { %2765 = vmatprep.subr.mxu0 %v2728_v56 }
 0xc65   : > { %2766 = vmatpush1.msra.mxu0 %v2727_v11 }
 0xc66   : > { %3235 = vmatmul.mubr.msk.f32.vlgmr.msra.gmra.mxu0 %vm868_vm3, %v2706_v36 }
 0xc67   : > { %2805 = vmatprep.mubr.f32.mxu0 %v5602_v19 }
 0xc6a   : > { %3236 = vmatmul.mubr.msk.f32.gmra.mxu0 %vm868_vm3, %v2707_v50 }
 0xc6b   : > { %v2716_v39 = vpop.permute.xlu0 %2715 }
 0xc6f   : > { %v2711_v27 = vpop.permute.xlu1 %2710 }
 0xd26   : > { %v2801_v30 = vpop.f32.mrf.mxu0 }
 0xd27   : > { %v5346_v55 = vadd.f32 %v2801_v30, %v2711_v27 }
 0xd28   : > { %v2803_v34 = vpop.f32.mrf.mxu0 }
 0xd29   : > { %v2816_v9 = vmul.f32 0.70710677, %v5346_v55  ;;  %v5349_v32 = vadd.f32 %v2803_v34, %v2711_v27 }
 0xd2a   : > { %v2807_v53 = vpop.f32.mrf.mxu0 }
 0xd2b   : > { %v5351_v37 = vclamps-f32 %v2816_v9, 4.0  ;;  %v2817_v3 = vmul.f32 0.70710677, %v5349_v32  ;;  %v5354_v23 = vadd.f32 %v2807_v53, %v2716_v39 }
 0xd2c   : > { %v2809_v19 = vpop.f32.mrf.mxu0 }
 0xd2d   : > { %v5358_v40 = vmul.f32 %v5351_v37, %v5351_v37  ;;  %v5360_v1 = vclamps-f32 %v2817_v3, 4.0  ;;  %v2818_v0 = vmul.f32 0.70710677, %v5354_v23  ;;  %v5363_v58 = vadd.f32 %v2809_v19, %v2716_v39 }
 0xd2f   : > { %v2868_v7 = vmul.f32 -1.1791603e-07, %v5358_v40  ;;  %v5368_v59 = vmul.f32 %v5360_v1, %v5360_v1  ;;  %v5370_v54 = vclamps-f32 %v2818_v0, 4.0  ;;  %v2819_v46 = vmul.f32 0.70710677, %v5363_v58 }
 0xd30   : > { %v2832_v44 = vmul.f32 0.00022905065, %v5358_v40 }
 0xd31   : > { %v2872_v62 = vadd.f32 2.3547966e-05, %v2868_v7  ;;  %v5375_v2 = vmul.f32 %v5370_v54, %v5370_v54  ;;  %v2869_v63 = vmul.f32 -1.1791603e-07, %v5368_v59  ;;  %v5378_v57 = vclamps-f32 %v2819_v46, 4.0 }
 0xd32   : > { %v2833_v13 = vmul.f32 0.00022905065, %v5368_v59  ;;  %v2836_v25 = vadd.f32 0.003408291, %v2832_v44 }
 0xd33   : > { %v2876_v4 = vmul.f32 %v2872_v62, %v5358_v40  ;;  %v2873_v29 = vadd.f32 2.3547966e-05, %v2869_v63  ;;  %v5384_v48 = vmul.f32 %v5378_v57, %v5378_v57  ;;  %v2870_v16 = vmul.f32 -1.1791603e-07, %v5375_v2 }
 0xd34   : > { %v2834_v8 = vmul.f32 0.00022905065, %v5375_v2  ;;  %v2837_v14 = vadd.f32 0.003408291, %v2833_v13  ;;  %v2840_v35 = vmul.f32 %v2836_v25, %v5358_v40 }
 0xd35   : > { %v2880_v38 = vadd.f32 0.0010179626, %v2876_v4  ;;  %v2877_v45 = vmul.f32 %v2873_v29, %v5368_v59  ;;  %v2871_v41 = vmul.f32 -1.1791603e-07, %v5384_v48  ;;  %v2874_v15 = vadd.f32 2.3547966e-05, %v2870_v16 }
 0xd36   : > { %v2835_v17 = vmul.f32 0.00022905065, %v5384_v48  ;;  %v2838_v47 = vadd.f32 0.003408291, %v2834_v8  ;;  %v2841_v18 = vmul.f32 %v2837_v14, %v5368_v59  ;;  %v2844_v36 = vadd.f32 0.050955694, %v2840_v35  ;;  %v3014_v35 = vpop.f32.mrf.mxu1 }
 0xd37   : > { %v2884_v28 = vmul.f32 %v2880_v38, %v5358_v40  ;;  %v2881_v20 = vadd.f32 0.0010179626, %v2877_v45  ;;  %v2875_v42 = vadd.f32 2.3547966e-05, %v2871_v41  ;;  %v2878_v22 = vmul.f32 %v2874_v15, %v5375_v2 }
 0xd38   : > { %v2839_v24 = vadd.f32 0.003408291, %v2835_v17  ;;  %v2842_v60 = vmul.f32 %v2838_v47, %v5375_v2  ;;  %v2845_v30 = vadd.f32 0.050955694, %v2841_v18  ;;  %v2848_v3 = vmul.f32 %v2844_v36, %v5358_v40  ;;  %v3016_v18 = vpop.f32.mrf.mxu1 }
 0xd39   : > { %v2888_v61 = vadd.f32 0.01407047, %v2884_v28  ;;  %v2885_v51 = vmul.f32 %v2881_v20, %v5368_v59  ;;  %v2879_v52 = vmul.f32 %v2875_v42, %v5384_v48  ;;  %v2882_v6 = vadd.f32 0.0010179626, %v2878_v22 }
 0xd3a   : > { %v2843_v39 = vmul.f32 %v2839_v24, %v5384_v48  ;;  %v2846_v7 = vadd.f32 0.050955694, %v2842_v60  ;;  %v2849_v44 = vmul.f32 %v2845_v30, %v5368_v59  ;;  %v2852_v13 = vadd.f32 0.18520832, %v2848_v3 }
 0xd3b   : > { %v2892_v33 = vmul.f32 %v2888_v61, %v5358_v40  ;;  %v2889_v43 = vadd.f32 0.01407047, %v2885_v51  ;;  %v2883_v49 = vadd.f32 0.0010179626, %v2879_v52  ;;  %v2886_v26 = vmul.f32 %v2882_v6, %v5375_v2 }
 0xd3c   : > { %v2847_v29 = vadd.f32 0.050955694, %v2843_v39  ;;  %v2850_v41 = vmul.f32 %v2846_v7, %v5375_v2  ;;  %v2853_v28 = vadd.f32 0.18520832, %v2849_v44  ;;  %v2856_v22 = vmul.f32 %v2852_v13, %v5358_v40 }
 0xd3d   : > { %v2896_v10 = vadd.f32 0.11098505, %v2892_v33  ;;  %v2893_v21 = vmul.f32 %v2889_v43, %v5368_v59  ;;  %v2887_v5 = vmul.f32 %v2883_v49, %v5384_v48  ;;  %v2890_v50 = vadd.f32 0.01407047, %v2886_v26 }
 0xd3e   : > { %v2851_v20 = vmul.f32 %v2847_v29, %v5384_v48  ;;  %v2854_v61 = vadd.f32 0.18520832, %v2850_v41  ;;  %v2857_v51 = vmul.f32 %v2853_v28, %v5368_v59  ;;  %v2860_v52 = vadd.f32 1.1283791, %v2856_v22 }
 0xd3f   : > { %v2900_v12 = vmul.f32 %v2896_v10, %v5358_v40  ;;  %v2897_v31 = vadd.f32 0.11098505, %v2893_v21  ;;  %v2891_v56 = vadd.f32 0.01407047, %v2887_v5  ;;  %v2894_v11 = vmul.f32 %v2890_v50, %v5375_v2 }
 0xd40   : > { %v2855_v17 = vadd.f32 0.18520832, %v2851_v20  ;;  %v2858_v6 = vmul.f32 %v2854_v61, %v5375_v2  ;;  %v2861_v33 = vadd.f32 1.1283791, %v2857_v51  ;;  %v2864_v47 = vmul.f32 %v5351_v37, %v2860_v52  ;;  %v3020_v37 = vpop.f32.mrf.mxu1 }
 0xd41   : > { %v2904_v27 = vadd.f32 0.49746925, %v2900_v12  ;;  %v2901_v34 = vmul.f32 %v2897_v31, %v5368_v59  ;;  %v2895_v9 = vmul.f32 %v2891_v56, %v5384_v48  ;;  %v2898_v53 = vadd.f32 0.11098505, %v2894_v11 }
 0xd42   : > { %v2859_v43 = vmul.f32 %v2855_v17, %v5384_v48  ;;  %v2862_v26 = vadd.f32 1.1283791, %v2858_v6  ;;  %v2865_v21 = vmul.f32 %v5360_v1, %v2861_v33  ;;  %v2812_v5 = vmul.f32 0.5, %v5346_v55  ;;  %v3022_v3 = vpop.f32.mrf.mxu1 }
 0xd43   : > { %v2908_v19 = vmul.f32 %v2904_v27, %v5358_v40  ;;  %v2905_v0 = vadd.f32 0.49746925, %v2901_v34  ;;  %v2899_v46 = vadd.f32 0.11098505, %v2895_v9  ;;  %v2902_v62 = vmul.f32 %v2898_v53, %v5375_v2  ;;  %v2937_v40 = vpop.permute.xlu1 %2936 }
 0xd44   : > { %v2866_v36 = vmul.f32 %v5370_v54, %v2862_v26  ;;  %v3015_v31 = vadd.f32 %v3014_v35, %v2937_v40  ;;  %v2813_v60 = vmul.f32 0.5, %v5349_v32  ;;  %v3017_v34 = vadd.f32 %v3016_v18, %v2937_v40 }
 0xd45   : > { %v2912_v63 = vadd.f32 1.0, %v2908_v19  ;;  %v2909_v4 = vmul.f32 %v2905_v0, %v5368_v59  ;;  %v2903_v16 = vmul.f32 %v2899_v46, %v5384_v48  ;;  %v2906_v38 = vadd.f32 0.49746925, %v2902_v62 }
 0xd46   : > { %v2863_v59 = vadd.f32 1.1283791, %v2859_v43  ;;  %v2814_v9 = vmul.f32 0.5, %v5354_v23 }
 0xd47   : > { %3665 = vrcp.f32 %v2912_v63  ;;  %v2913_v45 = vadd.f32 1.0, %v2909_v4  ;;  %v2907_v15 = vadd.f32 0.49746925, %v2903_v16  ;;  %v2910_v25 = vmul.f32 %v2906_v38, %v5375_v2  ;;  %v2942_v27 = vpop.permute.xlu1 %2941 }
 0xd48   : > { %v2867_v11 = vmul.f32 %v5378_v57, %v2863_v59  ;;  %v3021_v32 = vadd.f32 %v3020_v37, %v2942_v27  ;;  %v2815_v57 = vmul.f32 0.5, %v5363_v58  ;;  %v3023_v46 = vadd.f32 %v3022_v3, %v2942_v27 }
 0xd49   : > { %3667 = vrcp.f32 %v2913_v45  ;;  %v2911_v8 = vmul.f32 %v2907_v15, %v5384_v48  ;;  %v2914_v42 = vadd.f32 1.0, %v2910_v25 }
 0xd4b   : > { %v2915_v14 = vadd.f32 1.0, %v2911_v8  ;;  %3669 = vrcp.f32 %v2914_v42 }
 0xd4d   : > { %3671 = vrcp.f32 %v2915_v14 }
 0xd54   : > { %v3666_v49 = vpop.eup %3665 }
 0xd55   : > { %v2917_v10 = vmul.f32 %v3666_v49, %v2864_v47 }
 0xd56   : > { %v3668_v24 = vpop.eup %3667 }
 0xd57   : > { %v2924_v50 = vadd.f32 1.0, %v2917_v10  ;;  %v2919_v2 = vmul.f32 %v3668_v24, %v2865_v21 }
 0xd58   : > { %v3670_v12 = vpop.eup %3669 }
 0xd59   : > { %v2928_v48 = vmul.f32 %v2924_v50, %v2812_v5  ;;  %v2925_v56 = vadd.f32 1.0, %v2919_v2  ;;  %v2921_v1 = vmul.f32 %v3670_v12, %v2866_v36 }
 0xd5a   : > { %v3672_v30 = vpop.eup %3671 }
 0xd5b   : > { %v3025_v55 = vadd.f32 %v3015_v31, %v2928_v48  ;;  %v2929_v39 = vmul.f32 %v2925_v56, %v2813_v60  ;;  %v2923_v53 = vmul.f32 %v3672_v30, %v2867_v11  ;;  %v2926_v54 = vadd.f32 1.0, %v2921_v1 }
 0xd5d   : > { %3029 = vst [vmem:[%s477_s26] sm:$0xff] %v3025_v55  ;;  %v3026_v19 = vadd.f32 %v3017_v34, %v2929_v39  ;;  %v2927_v0 = vadd.f32 1.0, %v2923_v53  ;;  %v2930_v7 = vmul.f32 %v2926_v54, %v2814_v9 }
 0xd5f   : > { %3030 = vst [vmem:[%s477_s26 + $0x8] sm:$0xff] %v3026_v19  ;;  %v2931_v23 = vmul.f32 %v2927_v0, %v2815_v57  ;;  %v3027_v62 = vadd.f32 %v3021_v32, %v2930_v7 }
 0xd61   : > { %v3028_v63 = vadd.f32 %v3023_v46, %v2931_v23  ;;  %3031 = vst [vmem:[%s477_s26 + $0x10] sm:$0xff] %v3027_v62 }
 0xd63   : > { %3032 = vst [vmem:[%s477_s26 + $0x18] sm:$0xff] %v3028_v63 }
 0xd64   : > { %3929 = shalt.err (!%p3926_p12)
}
 0xd65   : > { %s3930_s4 = scalar_lea.hbm %s5437_s5, 512  ;;  %s3934_s29 = scalar_lea.hbm %s5490_s10, 1024 }
 0xd66   : > { %p3931_p13 = scmp.ne.s32.totalorder %s5437_s5, %s3930_s4  ;;  %p3935_p5 = scmp.lt.s32.totalorder %s5437_s5, %s5490_s10 }
 0xd67   : > { %p3936_p8 = scmp.lt.s32.totalorder %s3934_s29, %s3930_s4 }
 0xd68   : > { %p3932_p1 = pnand %p3931_p13, %p5630_p11 }
 0xd69   : > { %p3937_p9 = por %p3936_p8, %p3935_p5 }
 0xd6a   : > { %p3933_p2 = pneg %p3932_p1 }
 0xd6c   : > { %p3938_p10 = pnand %p3937_p9, %p3933_p2 }
 0xd6e   : > { %3941 = shalt.err (!%p3938_p10)
}
 0xd6f   : > { %s4081_s22 = smov 256   ;;  %s4082_s25 = smov 512  }
 0xd70   : > { %s4083_s17 = smov 16  }
 0xd71   : > { %3326 = dma.vmem_to_hbm [thread:$0]  (%p5630_p11), %s5432_s27, 512, %s5437_s5, %s3034_s28, %s4081_s22, %s4082_s25, %s4083_s17  }
 0xd72 PF: > { %s3062_s1 = sand.u32 1, %s3984_s13   ;;  %p5631_p4 = scmp.ne.s32.totalorder %s5556_s18, 0 }
 0xd73   : > { %p5632_p3 = scmp.ge.s32.totalorder %s3996_s16, 2  ;;  %s3063_s19 = scalar_lea.sflag [#allocation5], %s3062_s1 }
 0xd75   : > { %p3358_p0 = pnand %p5632_p3, %p5631_p4 }
 0xd77   : > { %p3359_p7 = pneg %p3358_p0 }
 0xd79   : > { %3979 = dma.done.wait (%p3359_p7), %s3063_s19, 512  }
 0xd7a   : > { %3981 = vsyncadd (%p3359_p7), %s3063_s19, 4294966784  ;;  %p27_p6 = scmp.ge.s32.totalorder %s4252_s30, 4   ;;  %s5633_s13 = smov %s3988_s14 }
 0xd7b   : > { %s5634_s14 = smov %s3992_s15  ;;  %s5635_s15 = smov %s4263_s12 }
 0xd7c   : > { %s5636_s16 = smov %s4252_s30  ;;  %29 = sbr.rel (!%p27_p6) target bundleno = 15 (0xf), region = 137 }
 0xd81   :  { %3068 = vsyncpa [#allocation4], 1 }
 0xd82   :  { %3070 = vsyncpa [#allocation4 + $0x1], 1 }
 0xd83   :  { %3071 = vsyncpa [#allocation7], 1 }
 0xd84   :  { %3072 = vsyncpa [#allocation10], 1 }
 0xd85   :  { %3073 = vsyncpa [#allocation13], 1 }
 0xd86   :  { %3074 = vsyncpa [#allocation16], 1 }
 0xd87   :  { %3075 = vsyncpa [#allocation5], 1 }
 0xd88   :  { %3077 = vsyncpa [#allocation5 + $0x1], 1 }

</bundles_post_ra>
